<compile_context>
chip_gen: v5e
topology: v5e:2x2
jax: 0.10.0
libtpu: 0.0.40
codegen_flags: <defaults>
</compile_context>

<pallas_src>
import math

import jax
import jax.numpy as jnp
from jax.experimental import pallas as pl
from jax.experimental.pallas import tpu as pltpu

# ---- small, forward-consistent hyperparameters -------------------------------
D_MODEL   = 32
NHEAD     = 4
HEAD_DIM  = D_MODEL // NHEAD
DIM_FF    = 64
NUM_ENC   = 2
NUM_DEC   = 2
SRC_VOCAB = 11
TGT_VOCAB = 13
MAX_LEN   = 64
EPS       = 1e-5

# Fixed flattening order of the stacked per-layer parameter arrays.
ENC_KEYS = ("wqkv", "bqkv", "wo", "bo", "ln1g", "ln1b",
            "w1", "b1", "w2", "b2", "ln2g", "ln2b")
DEC_KEYS = ("sa_wqkv", "sa_bqkv", "sa_wo", "sa_bo", "ln1g", "ln1b",
            "ca_wq", "ca_bq", "ca_wkv", "ca_bkv", "ca_wo", "ca_bo",
            "ln2g", "ln2b", "w1", "b1", "w2", "b2", "ln3g", "ln3b")


# =========================== the fused Pallas kernel ==========================

def _transformer_kernel(*refs):
    """One grid step processes one batch element: full encoder + decoder + fc."""
    src_ref, tgt_ref, pe_s_ref, pe_t_ref = refs[0:4]
    i = 4
    enc = dict(zip(ENC_KEYS, refs[i:i + len(ENC_KEYS)])); i += len(ENC_KEYS)
    dec = dict(zip(DEC_KEYS, refs[i:i + len(DEC_KEYS)])); i += len(DEC_KEYS)
    fc_w_ref, fc_b_ref, out_ref = refs[i], refs[i + 1], refs[i + 2]

    E = D_MODEL
    scale = 1.0 / math.sqrt(HEAD_DIM)

    def _mm(a, b):
        return jnp.dot(a, b, preferred_element_type=jnp.float32)

    def _ln(x, g, b):
        mu = jnp.mean(x, axis=-1, keepdims=True)
        var = jnp.mean((x - mu) ** 2, axis=-1, keepdims=True)
        return (x - mu) * jax.lax.rsqrt(var + EPS) * g + b

    def _attn(q, k, v):
        """q: (Lq, E), k/v: (Lk, E) already projected; multi-head via lane slices."""
        outs = []
        for h in range(NHEAD):
            lo, hi = h * HEAD_DIM, (h + 1) * HEAD_DIM
            qh = q[:, lo:hi] * scale                     # scale Q once (not the scores)
            kh = k[:, lo:hi]
            vh = v[:, lo:hi]
            # q @ k^T without an explicit transpose (contract last dims).
            s = jax.lax.dot_general(qh, kh, (((1,), (1,)), ((), ())),
                                    preferred_element_type=jnp.float32)
            m = jnp.max(s, axis=-1, keepdims=True)
            p = jnp.exp(s - m)
            denom = jnp.sum(p, axis=-1, keepdims=True)
            o = _mm(p, vh)
            outs.append(o * pl.reciprocal(denom, approx=True))   # EUP reciprocal
        return jnp.concatenate(outs, axis=-1)            # (Lq, E)

    # ------------------------------ encoder -----------------------------------
    x = src_ref[0] + pe_s_ref[...]                       # (S, E); dropout = identity
    for l in range(NUM_ENC):
        qkv = _mm(x, enc["wqkv"][l]) + enc["bqkv"][l]    # fused Q/K/V projection
        a = _mm(_attn(qkv[:, :E], qkv[:, E:2 * E], qkv[:, 2 * E:]),
                enc["wo"][l]) + enc["bo"][l]
        x = _ln(x + a, enc["ln1g"][l], enc["ln1b"][l])   # fused add + LayerNorm
        h = jnp.maximum(_mm(x, enc["w1"][l]) + enc["b1"][l], 0.0)   # ReLU FFN
        f = _mm(h, enc["w2"][l]) + enc["b2"][l]
        x = _ln(x + f, enc["ln2g"][l], enc["ln2b"][l])
    memory = x                                           # (S, E)

    # ------------------------------ decoder -----------------------------------
    y = tgt_ref[0] + pe_t_ref[...]                       # (T, E)
    for l in range(NUM_DEC):
        # self-attention
        qkv = _mm(y, dec["sa_wqkv"][l]) + dec["sa_bqkv"][l]
        a = _mm(_attn(qkv[:, :E], qkv[:, E:2 * E], qkv[:, 2 * E:]),
                dec["sa_wo"][l]) + dec["sa_bo"][l]
        y = _ln(y + a, dec["ln1g"][l], dec["ln1b"][l])
        # cross-attention (Q from decoder state, K/V from encoder memory)
        cq = _mm(y, dec["ca_wq"][l]) + dec["ca_bq"][l]
        ckv = _mm(memory, dec["ca_wkv"][l]) + dec["ca_bkv"][l]
        c = _mm(_attn(cq, ckv[:, :E], ckv[:, E:]),
                dec["ca_wo"][l]) + dec["ca_bo"][l]
        y = _ln(y + c, dec["ln2g"][l], dec["ln2b"][l])
        # FFN
        h = jnp.maximum(_mm(y, dec["w1"][l]) + dec["b1"][l], 0.0)
        f = _mm(h, dec["w2"][l]) + dec["b2"][l]
        y = _ln(y + f, dec["ln3g"][l], dec["ln3b"][l])

    # ------------------------------ final linear -------------------------------
    out_ref[0] = _mm(y, fc_w_ref[...]) + fc_b_ref[...]   # (T, TGT_VOCAB)


# =========================== JAX glue =========================================

def positional_encoding_table():
    pos = jnp.arange(MAX_LEN, dtype=jnp.float32)[:, None]
    div = jnp.exp(jnp.arange(0, D_MODEL, 2, dtype=jnp.float32)
                  * (-math.log(10000.0) / D_MODEL))
    pe = jnp.zeros((MAX_LEN, D_MODEL), jnp.float32)
    pe = pe.at[:, 0::2].set(jnp.sin(pos * div))
    pe = pe.at[:, 1::2].set(jnp.cos(pos * div))
    return pe  # (MAX_LEN, D_MODEL)


def transformer_forward(params, src, tgt):
    """src: (S, B) int32, tgt: (T, B) int32 -> (T, B, TGT_VOCAB) float32."""
    S, B = src.shape
    T, _ = tgt.shape
    E, V = D_MODEL, TGT_VOCAB

    # Embedding gather stays in JAX glue (single fused XLA op).
    src_emb = jnp.take(params["enc_emb"], src, axis=0)       # (S, B, E)
    tgt_emb = jnp.take(params["dec_emb"], tgt, axis=0)       # (T, B, E)
    src_b = jnp.transpose(src_emb, (1, 0, 2))                # (B, S, E)
    tgt_b = jnp.transpose(tgt_emb, (1, 0, 2))                # (B, T, E)
    pe_s = params["pe"][:S]                                  # (S, E)
    pe_t = params["pe"][:T]                                  # (T, E)

    weight_inputs = ([params["enc"][k] for k in ENC_KEYS]
                     + [params["dec"][k] for k in DEC_KEYS]
                     + [params["fc_w"], params["fc_b"]])
    inputs = [src_b, tgt_b, pe_s, pe_t] + weight_inputs

    def _whole(a):
        # Whole-array VMEM-resident block, identical at every grid step.
        return pl.BlockSpec(a.shape, lambda b, n=a.ndim: (0,) * n)

    in_specs = (
        [pl.BlockSpec((1, S, E), lambda b: (b, 0, 0)),
         pl.BlockSpec((1, T, E), lambda b: (b, 0, 0)),
         _whole(pe_s), _whole(pe_t)]
        + [_whole(a) for a in weight_inputs]
    )

    out = pl.pallas_call(
        _transformer_kernel,
        out_shape=jax.ShapeDtypeStruct((B, T, V), jnp.float32),
        grid=(B,),
        in_specs=in_specs,
        out_specs=pl.BlockSpec((1, T, V), lambda b: (b, 0, 0)),
        compiler_params=pltpu.CompilerParams(
            dimension_semantics=("parallel",)),
    )(*inputs)

    return jnp.transpose(out, (1, 0, 2))                     # (T, B, V)


# =========================== deterministic param init =========================

def _w(key, shape, scale=0.05):
    return jax.random.normal(key, shape, jnp.float32) * scale


def init_params(key):
    E, F = D_MODEL, DIM_FF
    ks = jax.random.split(key, 14)
    enc = {
        "wqkv": _w(ks[3], (NUM_ENC, E, 3 * E)),
        "bqkv": jnp.zeros((NUM_ENC, 1, 3 * E), jnp.float32),
        "wo":   _w(ks[4], (NUM_ENC, E, E)),
        "bo":   jnp.zeros((NUM_ENC, 1, E), jnp.float32),
        "ln1g": jnp.ones((NUM_ENC, 1, E), jnp.float32),
        "ln1b": jnp.zeros((NUM_ENC, 1, E), jnp.float32),
        "w1":   _w(ks[5], (NUM_ENC, E, F)),
        "b1":   jnp.zeros((NUM_ENC, 1, F), jnp.float32),
        "w2":   _w(ks[6], (NUM_ENC, F, E)),
        "b2":   jnp.zeros((NUM_ENC, 1, E), jnp.float32),
        "ln2g": jnp.ones((NUM_ENC, 1, E), jnp.float32),
        "ln2b": jnp.zeros((NUM_ENC, 1, E), jnp.float32),
    }
    dec = {
        "sa_wqkv": _w(ks[7], (NUM_DEC, E, 3 * E)),
        "sa_bqkv": jnp.zeros((NUM_DEC, 1, 3 * E), jnp.float32),
        "sa_wo":   _w(ks[8], (NUM_DEC, E, E)),
        "sa_bo":   jnp.zeros((NUM_DEC, 1, E), jnp.float32),
        "ln1g":    jnp.ones((NUM_DEC, 1, E), jnp.float32),
        "ln1b":    jnp.zeros((NUM_DEC, 1, E), jnp.float32),
        "ca_wq":   _w(ks[9], (NUM_DEC, E, E)),
        "ca_bq":   jnp.zeros((NUM_DEC, 1, E), jnp.float32),
        "ca_wkv":  _w(ks[10], (NUM_DEC, E, 2 * E)),
        "ca_bkv":  jnp.zeros((NUM_DEC, 1, 2 * E), jnp.float32),
        "ca_wo":   _w(ks[11], (NUM_DEC, E, E)),
        "ca_bo":   jnp.zeros((NUM_DEC, 1, E), jnp.float32),
        "ln2g":    jnp.ones((NUM_DEC, 1, E), jnp.float32),
        "ln2b":    jnp.zeros((NUM_DEC, 1, E), jnp.float32),
        "w1":      _w(ks[12], (NUM_DEC, E, F)),
        "b1":      jnp.zeros((NUM_DEC, 1, F), jnp.float32),
        "w2":      _w(ks[13], (NUM_DEC, F, E)),
        "b2":      jnp.zeros((NUM_DEC, 1, E), jnp.float32),
        "ln3g":    jnp.ones((NUM_DEC, 1, E), jnp.float32),
        "ln3b":    jnp.zeros((NUM_DEC, 1, E), jnp.float32),
    }
    return {
        "enc_emb": _w(ks[0], (SRC_VOCAB, E), scale=1.0),
        "dec_emb": _w(ks[1], (TGT_VOCAB, E), scale=1.0),
        "fc_w":    _w(ks[2], (E, TGT_VOCAB)),
        "fc_b":    jnp.zeros((1, TGT_VOCAB), jnp.float32),
        "pe":      positional_encoding_table(),
        "enc":     enc,
        "dec":     dec,
    }


# =========================== main =============================================

if __name__ == "__main__":
    key = jax.random.PRNGKey(0)
    k_params, k_src, k_tgt = jax.random.split(key, 3)

    params = init_params(k_params)

    S, T, B = 8, 8, 2
    src = jax.random.randint(k_src, (S, B), 0, SRC_VOCAB, dtype=jnp.int32)
    tgt = jax.random.randint(k_tgt, (T, B), 0, TGT_VOCAB, dtype=jnp.int32)

    fwd = jax.jit(transformer_forward)
    logits = fwd(params, src, tgt)
    jax.block_until_ready(logits)

    assert logits.shape == (T, B, TGT_VOCAB)
    assert bool(jnp.all(jnp.isfinite(logits)))
    print("KERNEL_OK")
</pallas_src>

<mosaic_0001>
module attributes {stable_mosaic.version = 11 : i64} {
  func.func @_transformer_kernel(%arg0: i32, %arg1: memref<1x8x32xf32, #tpu.memory_space<vmem>>, %arg2: memref<1x8x32xf32, #tpu.memory_space<vmem>>, %arg3: memref<8x32xf32, #tpu.memory_space<vmem>>, %arg4: memref<8x32xf32, #tpu.memory_space<vmem>>, %arg5: memref<2x32x96xf32, #tpu.memory_space<vmem>>, %arg6: memref<2x1x96xf32, #tpu.memory_space<vmem>>, %arg7: memref<2x32x32xf32, #tpu.memory_space<vmem>>, %arg8: memref<2x1x32xf32, #tpu.memory_space<vmem>>, %arg9: memref<2x1x32xf32, #tpu.memory_space<vmem>>, %arg10: memref<2x1x32xf32, #tpu.memory_space<vmem>>, %arg11: memref<2x32x64xf32, #tpu.memory_space<vmem>>, %arg12: memref<2x1x64xf32, #tpu.memory_space<vmem>>, %arg13: memref<2x64x32xf32, #tpu.memory_space<vmem>>, %arg14: memref<2x1x32xf32, #tpu.memory_space<vmem>>, %arg15: memref<2x1x32xf32, #tpu.memory_space<vmem>>, %arg16: memref<2x1x32xf32, #tpu.memory_space<vmem>>, %arg17: memref<2x32x96xf32, #tpu.memory_space<vmem>>, %arg18: memref<2x1x96xf32, #tpu.memory_space<vmem>>, %arg19: memref<2x32x32xf32, #tpu.memory_space<vmem>>, %arg20: memref<2x1x32xf32, #tpu.memory_space<vmem>>, %arg21: memref<2x1x32xf32, #tpu.memory_space<vmem>>, %arg22: memref<2x1x32xf32, #tpu.memory_space<vmem>>, %arg23: memref<2x32x32xf32, #tpu.memory_space<vmem>>, %arg24: memref<2x1x32xf32, #tpu.memory_space<vmem>>, %arg25: memref<2x32x64xf32, #tpu.memory_space<vmem>>, %arg26: memref<2x1x64xf32, #tpu.memory_space<vmem>>, %arg27: memref<2x32x32xf32, #tpu.memory_space<vmem>>, %arg28: memref<2x1x32xf32, #tpu.memory_space<vmem>>, %arg29: memref<2x1x32xf32, #tpu.memory_space<vmem>>, %arg30: memref<2x1x32xf32, #tpu.memory_space<vmem>>, %arg31: memref<2x32x64xf32, #tpu.memory_space<vmem>>, %arg32: memref<2x1x64xf32, #tpu.memory_space<vmem>>, %arg33: memref<2x64x32xf32, #tpu.memory_space<vmem>>, %arg34: memref<2x1x32xf32, #tpu.memory_space<vmem>>, %arg35: memref<2x1x32xf32, #tpu.memory_space<vmem>>, %arg36: memref<2x1x32xf32, #tpu.memory_space<vmem>>, %arg37: memref<32x13xf32, #tpu.memory_space<vmem>>, %arg38: memref<1x13xf32, #tpu.memory_space<vmem>>, %arg39: memref<1x8x13xf32, #tpu.memory_space<vmem>>) attributes {dimension_semantics = [#tpu.dimension_semantics<parallel>], iteration_bounds = array<i64: 2>, scalar_prefetch = 0 : i64, scratch_operands = 0 : i64, tpu.core_type = #tpu.core_type<tc>, window_params = [{transform_indices = @transform_0, window_bounds = array<i64: 1, 8, 32>}, {transform_indices = @transform_1, window_bounds = array<i64: 1, 8, 32>}, {pipeline_mode = #tpu.pipeline_mode<synchronous>, transform_indices = @transform_2, window_bounds = array<i64: 8, 32>}, {pipeline_mode = #tpu.pipeline_mode<synchronous>, transform_indices = @transform_3, window_bounds = array<i64: 8, 32>}, {pipeline_mode = #tpu.pipeline_mode<synchronous>, transform_indices = @transform_4, window_bounds = array<i64: 2, 32, 96>}, {pipeline_mode = #tpu.pipeline_mode<synchronous>, transform_indices = @transform_5, window_bounds = array<i64: 2, 1, 96>}, {pipeline_mode = #tpu.pipeline_mode<synchronous>, transform_indices = @transform_6, window_bounds = array<i64: 2, 32, 32>}, {pipeline_mode = #tpu.pipeline_mode<synchronous>, transform_indices = @transform_7, window_bounds = array<i64: 2, 1, 32>}, {pipeline_mode = #tpu.pipeline_mode<synchronous>, transform_indices = @transform_8, window_bounds = array<i64: 2, 1, 32>}, {pipeline_mode = #tpu.pipeline_mode<synchronous>, transform_indices = @transform_9, window_bounds = array<i64: 2, 1, 32>}, {pipeline_mode = #tpu.pipeline_mode<synchronous>, transform_indices = @transform_10, window_bounds = array<i64: 2, 32, 64>}, {pipeline_mode = #tpu.pipeline_mode<synchronous>, transform_indices = @transform_11, window_bounds = array<i64: 2, 1, 64>}, {pipeline_mode = #tpu.pipeline_mode<synchronous>, transform_indices = @transform_12, window_bounds = array<i64: 2, 64, 32>}, {pipeline_mode = #tpu.pipeline_mode<synchronous>, transform_indices = @transform_13, window_bounds = array<i64: 2, 1, 32>}, {pipeline_mode = #tpu.pipeline_mode<synchronous>, transform_indices = @transform_14, window_bounds = array<i64: 2, 1, 32>}, {pipeline_mode = #tpu.pipeline_mode<synchronous>, transform_indices = @transform_15, window_bounds = array<i64: 2, 1, 32>}, {pipeline_mode = #tpu.pipeline_mode<synchronous>, transform_indices = @transform_16, window_bounds = array<i64: 2, 32, 96>}, {pipeline_mode = #tpu.pipeline_mode<synchronous>, transform_indices = @transform_17, window_bounds = array<i64: 2, 1, 96>}, {pipeline_mode = #tpu.pipeline_mode<synchronous>, transform_indices = @transform_18, window_bounds = array<i64: 2, 32, 32>}, {pipeline_mode = #tpu.pipeline_mode<synchronous>, transform_indices = @transform_19, window_bounds = array<i64: 2, 1, 32>}, {pipeline_mode = #tpu.pipeline_mode<synchronous>, transform_indices = @transform_20, window_bounds = array<i64: 2, 1, 32>}, {pipeline_mode = #tpu.pipeline_mode<synchronous>, transform_indices = @transform_21, window_bounds = array<i64: 2, 1, 32>}, {pipeline_mode = #tpu.pipeline_mode<synchronous>, transform_indices = @transform_22, window_bounds = array<i64: 2, 32, 32>}, {pipeline_mode = #tpu.pipeline_mode<synchronous>, transform_indices = @transform_23, window_bounds = array<i64: 2, 1, 32>}, {pipeline_mode = #tpu.pipeline_mode<synchronous>, transform_indices = @transform_24, window_bounds = array<i64: 2, 32, 64>}, {pipeline_mode = #tpu.pipeline_mode<synchronous>, transform_indices = @transform_25, window_bounds = array<i64: 2, 1, 64>}, {pipeline_mode = #tpu.pipeline_mode<synchronous>, transform_indices = @transform_26, window_bounds = array<i64: 2, 32, 32>}, {pipeline_mode = #tpu.pipeline_mode<synchronous>, transform_indices = @transform_27, window_bounds = array<i64: 2, 1, 32>}, {pipeline_mode = #tpu.pipeline_mode<synchronous>, transform_indices = @transform_28, window_bounds = array<i64: 2, 1, 32>}, {pipeline_mode = #tpu.pipeline_mode<synchronous>, transform_indices = @transform_29, window_bounds = array<i64: 2, 1, 32>}, {pipeline_mode = #tpu.pipeline_mode<synchronous>, transform_indices = @transform_30, window_bounds = array<i64: 2, 32, 64>}, {pipeline_mode = #tpu.pipeline_mode<synchronous>, transform_indices = @transform_31, window_bounds = array<i64: 2, 1, 64>}, {pipeline_mode = #tpu.pipeline_mode<synchronous>, transform_indices = @transform_32, window_bounds = array<i64: 2, 64, 32>}, {pipeline_mode = #tpu.pipeline_mode<synchronous>, transform_indices = @transform_33, window_bounds = array<i64: 2, 1, 32>}, {pipeline_mode = #tpu.pipeline_mode<synchronous>, transform_indices = @transform_34, window_bounds = array<i64: 2, 1, 32>}, {pipeline_mode = #tpu.pipeline_mode<synchronous>, transform_indices = @transform_35, window_bounds = array<i64: 2, 1, 32>}, {pipeline_mode = #tpu.pipeline_mode<synchronous>, transform_indices = @transform_36, window_bounds = array<i64: 32, 13>}, {pipeline_mode = #tpu.pipeline_mode<synchronous>, transform_indices = @transform_37, window_bounds = array<i64: 1, 13>}, {transform_indices = @transform_38, window_bounds = array<i64: 1, 8, 13>}]} {
    %c0 = arith.constant 0 : index
    %c0_0 = arith.constant 0 : index
    %c0_1 = arith.constant 0 : index
    %0 = vector.load %arg1[%c0, %c0_0, %c0_1] : memref<1x8x32xf32, #tpu.memory_space<vmem>>, vector<1x8x32xf32>
    %1 = vector.shape_cast %0 : vector<1x8x32xf32> to vector<8x32xf32>
    %c0_2 = arith.constant 0 : index
    %c0_3 = arith.constant 0 : index
    %2 = vector.load %arg3[%c0_2, %c0_3] : memref<8x32xf32, #tpu.memory_space<vmem>>, vector<8x32xf32>
    %3 = arith.addf %1, %2 : vector<8x32xf32>
    %c0_4 = arith.constant 0 : index
    %c0_5 = arith.constant 0 : index
    %c0_6 = arith.constant 0 : index
    %4 = vector.load %arg5[%c0_4, %c0_5, %c0_6] : memref<2x32x96xf32, #tpu.memory_space<vmem>>, vector<1x32x96xf32>
    %5 = vector.shape_cast %4 : vector<1x32x96xf32> to vector<32x96xf32>
    %cst = arith.constant dense<0.000000e+00> : vector<8x96xf32>
    %6 = tpu.matmul %3, %5, %cst {dimension_numbers = #tpu.dot_dimension_numbers<[1], [0], [0], [1], [0, 0, 1, 1], [], []>} : vector<8x32xf32>, vector<32x96xf32>, vector<8x96xf32> -> vector<8x96xf32>
    %c0_7 = arith.constant 0 : index
    %c0_8 = arith.constant 0 : index
    %c0_9 = arith.constant 0 : index
    %7 = vector.load %arg6[%c0_7, %c0_8, %c0_9] : memref<2x1x96xf32, #tpu.memory_space<vmem>>, vector<1x1x96xf32>
    %8 = vector.shape_cast %7 : vector<1x1x96xf32> to vector<1x96xf32>
    %9 = vector.broadcast %8 : vector<1x96xf32> to vector<8x96xf32>
    %10 = arith.addf %6, %9 : vector<8x96xf32>
    %11 = vector.extract_strided_slice %10 {offsets = [0, 0], sizes = [8, 32], strides = [1, 1]} : vector<8x96xf32> to vector<8x32xf32>
    %12 = vector.extract_strided_slice %10 {offsets = [0, 32], sizes = [8, 32], strides = [1, 1]} : vector<8x96xf32> to vector<8x32xf32>
    %13 = vector.extract_strided_slice %10 {offsets = [0, 64], sizes = [8, 32], strides = [1, 1]} : vector<8x96xf32> to vector<8x32xf32>
    %14 = vector.extract_strided_slice %11 {offsets = [0, 0], sizes = [8, 8], strides = [1, 1]} : vector<8x32xf32> to vector<8x8xf32>
    %cst_10 = arith.constant 0.353553385 : f32
    %15 = vector.broadcast %cst_10 : f32 to vector<8x8xf32>
    %16 = arith.mulf %14, %15 : vector<8x8xf32>
    %17 = vector.extract_strided_slice %12 {offsets = [0, 0], sizes = [8, 8], strides = [1, 1]} : vector<8x32xf32> to vector<8x8xf32>
    %18 = vector.extract_strided_slice %13 {offsets = [0, 0], sizes = [8, 8], strides = [1, 1]} : vector<8x32xf32> to vector<8x8xf32>
    %cst_11 = arith.constant dense<0.000000e+00> : vector<8x8xf32>
    %19 = tpu.matmul %16, %17, %cst_11 {dimension_numbers = #tpu.dot_dimension_numbers<[1], [1], [0], [0], [0, 0, 1, 0], [], []>} : vector<8x8xf32>, vector<8x8xf32>, vector<8x8xf32> -> vector<8x8xf32>
    %cst_12 = arith.constant dense<0xFF800000> : vector<8xf32>
    %20 = vector.multi_reduction <maximumf>, %19, %cst_12 [1] : vector<8x8xf32> to vector<8xf32>
    %21 = vector.shape_cast %20 : vector<8xf32> to vector<8x1xf32>
    %22 = vector.broadcast %21 : vector<8x1xf32> to vector<8x8xf32>
    %23 = arith.subf %19, %22 : vector<8x8xf32>
    %24 = math.exp %23 : vector<8x8xf32>
    %cst_13 = arith.constant dense<0.000000e+00> : vector<8xf32>
    %25 = vector.multi_reduction <add>, %24, %cst_13 [1] : vector<8x8xf32> to vector<8xf32>
    %26 = vector.shape_cast %25 : vector<8xf32> to vector<8x1xf32>
    %cst_14 = arith.constant dense<0.000000e+00> : vector<8x8xf32>
    %27 = tpu.matmul %24, %18, %cst_14 {dimension_numbers = #tpu.dot_dimension_numbers<[1], [0], [0], [1], [0, 0, 1, 1], [], []>} : vector<8x8xf32>, vector<8x8xf32>, vector<8x8xf32> -> vector<8x8xf32>
    %28 = tpu.reciprocal %26 {approx = true} : vector<8x1xf32> -> vector<8x1xf32>
    %29 = vector.broadcast %28 : vector<8x1xf32> to vector<8x8xf32>
    %30 = arith.mulf %27, %29 : vector<8x8xf32>
    %31 = vector.extract_strided_slice %11 {offsets = [0, 8], sizes = [8, 8], strides = [1, 1]} : vector<8x32xf32> to vector<8x8xf32>
    %cst_15 = arith.constant 0.353553385 : f32
    %32 = vector.broadcast %cst_15 : f32 to vector<8x8xf32>
    %33 = arith.mulf %31, %32 : vector<8x8xf32>
    %34 = vector.extract_strided_slice %12 {offsets = [0, 8], sizes = [8, 8], strides = [1, 1]} : vector<8x32xf32> to vector<8x8xf32>
    %35 = vector.extract_strided_slice %13 {offsets = [0, 8], sizes = [8, 8], strides = [1, 1]} : vector<8x32xf32> to vector<8x8xf32>
    %cst_16 = arith.constant dense<0.000000e+00> : vector<8x8xf32>
    %36 = tpu.matmul %33, %34, %cst_16 {dimension_numbers = #tpu.dot_dimension_numbers<[1], [1], [0], [0], [0, 0, 1, 0], [], []>} : vector<8x8xf32>, vector<8x8xf32>, vector<8x8xf32> -> vector<8x8xf32>
    %cst_17 = arith.constant dense<0xFF800000> : vector<8xf32>
    %37 = vector.multi_reduction <maximumf>, %36, %cst_17 [1] : vector<8x8xf32> to vector<8xf32>
    %38 = vector.shape_cast %37 : vector<8xf32> to vector<8x1xf32>
    %39 = vector.broadcast %38 : vector<8x1xf32> to vector<8x8xf32>
    %40 = arith.subf %36, %39 : vector<8x8xf32>
    %41 = math.exp %40 : vector<8x8xf32>
    %cst_18 = arith.constant dense<0.000000e+00> : vector<8xf32>
    %42 = vector.multi_reduction <add>, %41, %cst_18 [1] : vector<8x8xf32> to vector<8xf32>
    %43 = vector.shape_cast %42 : vector<8xf32> to vector<8x1xf32>
    %cst_19 = arith.constant dense<0.000000e+00> : vector<8x8xf32>
    %44 = tpu.matmul %41, %35, %cst_19 {dimension_numbers = #tpu.dot_dimension_numbers<[1], [0], [0], [1], [0, 0, 1, 1], [], []>} : vector<8x8xf32>, vector<8x8xf32>, vector<8x8xf32> -> vector<8x8xf32>
    %45 = tpu.reciprocal %43 {approx = true} : vector<8x1xf32> -> vector<8x1xf32>
    %46 = vector.broadcast %45 : vector<8x1xf32> to vector<8x8xf32>
    %47 = arith.mulf %44, %46 : vector<8x8xf32>
    %48 = vector.extract_strided_slice %11 {offsets = [0, 16], sizes = [8, 8], strides = [1, 1]} : vector<8x32xf32> to vector<8x8xf32>
    %cst_20 = arith.constant 0.353553385 : f32
    %49 = vector.broadcast %cst_20 : f32 to vector<8x8xf32>
    %50 = arith.mulf %48, %49 : vector<8x8xf32>
    %51 = vector.extract_strided_slice %12 {offsets = [0, 16], sizes = [8, 8], strides = [1, 1]} : vector<8x32xf32> to vector<8x8xf32>
    %52 = vector.extract_strided_slice %13 {offsets = [0, 16], sizes = [8, 8], strides = [1, 1]} : vector<8x32xf32> to vector<8x8xf32>
    %cst_21 = arith.constant dense<0.000000e+00> : vector<8x8xf32>
    %53 = tpu.matmul %50, %51, %cst_21 {dimension_numbers = #tpu.dot_dimension_numbers<[1], [1], [0], [0], [0, 0, 1, 0], [], []>} : vector<8x8xf32>, vector<8x8xf32>, vector<8x8xf32> -> vector<8x8xf32>
    %cst_22 = arith.constant dense<0xFF800000> : vector<8xf32>
    %54 = vector.multi_reduction <maximumf>, %53, %cst_22 [1] : vector<8x8xf32> to vector<8xf32>
    %55 = vector.shape_cast %54 : vector<8xf32> to vector<8x1xf32>
    %56 = vector.broadcast %55 : vector<8x1xf32> to vector<8x8xf32>
    %57 = arith.subf %53, %56 : vector<8x8xf32>
    %58 = math.exp %57 : vector<8x8xf32>
    %cst_23 = arith.constant dense<0.000000e+00> : vector<8xf32>
    %59 = vector.multi_reduction <add>, %58, %cst_23 [1] : vector<8x8xf32> to vector<8xf32>
    %60 = vector.shape_cast %59 : vector<8xf32> to vector<8x1xf32>
    %cst_24 = arith.constant dense<0.000000e+00> : vector<8x8xf32>
    %61 = tpu.matmul %58, %52, %cst_24 {dimension_numbers = #tpu.dot_dimension_numbers<[1], [0], [0], [1], [0, 0, 1, 1], [], []>} : vector<8x8xf32>, vector<8x8xf32>, vector<8x8xf32> -> vector<8x8xf32>
    %62 = tpu.reciprocal %60 {approx = true} : vector<8x1xf32> -> vector<8x1xf32>
    %63 = vector.broadcast %62 : vector<8x1xf32> to vector<8x8xf32>
    %64 = arith.mulf %61, %63 : vector<8x8xf32>
    %65 = vector.extract_strided_slice %11 {offsets = [0, 24], sizes = [8, 8], strides = [1, 1]} : vector<8x32xf32> to vector<8x8xf32>
    %cst_25 = arith.constant 0.353553385 : f32
    %66 = vector.broadcast %cst_25 : f32 to vector<8x8xf32>
    %67 = arith.mulf %65, %66 : vector<8x8xf32>
    %68 = vector.extract_strided_slice %12 {offsets = [0, 24], sizes = [8, 8], strides = [1, 1]} : vector<8x32xf32> to vector<8x8xf32>
    %69 = vector.extract_strided_slice %13 {offsets = [0, 24], sizes = [8, 8], strides = [1, 1]} : vector<8x32xf32> to vector<8x8xf32>
    %cst_26 = arith.constant dense<0.000000e+00> : vector<8x8xf32>
    %70 = tpu.matmul %67, %68, %cst_26 {dimension_numbers = #tpu.dot_dimension_numbers<[1], [1], [0], [0], [0, 0, 1, 0], [], []>} : vector<8x8xf32>, vector<8x8xf32>, vector<8x8xf32> -> vector<8x8xf32>
    %cst_27 = arith.constant dense<0xFF800000> : vector<8xf32>
    %71 = vector.multi_reduction <maximumf>, %70, %cst_27 [1] : vector<8x8xf32> to vector<8xf32>
    %72 = vector.shape_cast %71 : vector<8xf32> to vector<8x1xf32>
    %73 = vector.broadcast %72 : vector<8x1xf32> to vector<8x8xf32>
    %74 = arith.subf %70, %73 : vector<8x8xf32>
    %75 = math.exp %74 : vector<8x8xf32>
    %cst_28 = arith.constant dense<0.000000e+00> : vector<8xf32>
    %76 = vector.multi_reduction <add>, %75, %cst_28 [1] : vector<8x8xf32> to vector<8xf32>
    %77 = vector.shape_cast %76 : vector<8xf32> to vector<8x1xf32>
    %cst_29 = arith.constant dense<0.000000e+00> : vector<8x8xf32>
    %78 = tpu.matmul %75, %69, %cst_29 {dimension_numbers = #tpu.dot_dimension_numbers<[1], [0], [0], [1], [0, 0, 1, 1], [], []>} : vector<8x8xf32>, vector<8x8xf32>, vector<8x8xf32> -> vector<8x8xf32>
    %79 = tpu.reciprocal %77 {approx = true} : vector<8x1xf32> -> vector<8x1xf32>
    %80 = vector.broadcast %79 : vector<8x1xf32> to vector<8x8xf32>
    %81 = arith.mulf %78, %80 : vector<8x8xf32>
    %82 = tpu.concatenate %30, %47, %64, %81 in 1 : vector<8x8xf32>, vector<8x8xf32>, vector<8x8xf32>, vector<8x8xf32> -> vector<8x32xf32>
    %c0_30 = arith.constant 0 : index
    %c0_31 = arith.constant 0 : index
    %c0_32 = arith.constant 0 : index
    %83 = vector.load %arg7[%c0_30, %c0_31, %c0_32] : memref<2x32x32xf32, #tpu.memory_space<vmem>>, vector<1x32x32xf32>
    %84 = vector.shape_cast %83 : vector<1x32x32xf32> to vector<32x32xf32>
    %cst_33 = arith.constant dense<0.000000e+00> : vector<8x32xf32>
    %85 = tpu.matmul %82, %84, %cst_33 {dimension_numbers = #tpu.dot_dimension_numbers<[1], [0], [0], [1], [0, 0, 1, 1], [], []>} : vector<8x32xf32>, vector<32x32xf32>, vector<8x32xf32> -> vector<8x32xf32>
    %c0_34 = arith.constant 0 : index
    %c0_35 = arith.constant 0 : index
    %c0_36 = arith.constant 0 : index
    %86 = vector.load %arg8[%c0_34, %c0_35, %c0_36] : memref<2x1x32xf32, #tpu.memory_space<vmem>>, vector<1x1x32xf32>
    %87 = vector.shape_cast %86 : vector<1x1x32xf32> to vector<1x32xf32>
    %88 = vector.broadcast %87 : vector<1x32xf32> to vector<8x32xf32>
    %89 = arith.addf %85, %88 : vector<8x32xf32>
    %90 = arith.addf %3, %89 : vector<8x32xf32>
    %c0_37 = arith.constant 0 : index
    %c0_38 = arith.constant 0 : index
    %c0_39 = arith.constant 0 : index
    %91 = vector.load %arg9[%c0_37, %c0_38, %c0_39] : memref<2x1x32xf32, #tpu.memory_space<vmem>>, vector<1x1x32xf32>
    %92 = vector.shape_cast %91 : vector<1x1x32xf32> to vector<1x32xf32>
    %c0_40 = arith.constant 0 : index
    %c0_41 = arith.constant 0 : index
    %c0_42 = arith.constant 0 : index
    %93 = vector.load %arg10[%c0_40, %c0_41, %c0_42] : memref<2x1x32xf32, #tpu.memory_space<vmem>>, vector<1x1x32xf32>
    %94 = vector.shape_cast %93 : vector<1x1x32xf32> to vector<1x32xf32>
    %cst_43 = arith.constant dense<0.000000e+00> : vector<8xf32>
    %95 = vector.multi_reduction <add>, %90, %cst_43 [1] : vector<8x32xf32> to vector<8xf32>
    %96 = vector.shape_cast %95 : vector<8xf32> to vector<8x1xf32>
    %cst_44 = arith.constant 3.200000e+01 : f32
    %97 = vector.broadcast %cst_44 : f32 to vector<8x1xf32>
    %98 = arith.divf %96, %97 : vector<8x1xf32>
    %99 = vector.broadcast %98 : vector<8x1xf32> to vector<8x32xf32>
    %100 = arith.subf %90, %99 : vector<8x32xf32>
    %101 = arith.mulf %100, %100 : vector<8x32xf32>
    %cst_45 = arith.constant dense<0.000000e+00> : vector<8xf32>
    %102 = vector.multi_reduction <add>, %101, %cst_45 [1] : vector<8x32xf32> to vector<8xf32>
    %103 = vector.shape_cast %102 : vector<8xf32> to vector<8x1xf32>
    %cst_46 = arith.constant 3.200000e+01 : f32
    %104 = vector.broadcast %cst_46 : f32 to vector<8x1xf32>
    %105 = arith.divf %103, %104 : vector<8x1xf32>
    %106 = vector.broadcast %98 : vector<8x1xf32> to vector<8x32xf32>
    %107 = arith.subf %90, %106 : vector<8x32xf32>
    %cst_47 = arith.constant 9.99999974E-6 : f32
    %108 = vector.broadcast %cst_47 : f32 to vector<8x1xf32>
    %109 = arith.addf %105, %108 : vector<8x1xf32>
    %110 = math.rsqrt %109 : vector<8x1xf32>
    %111 = vector.broadcast %110 : vector<8x1xf32> to vector<8x32xf32>
    %112 = arith.mulf %107, %111 : vector<8x32xf32>
    %113 = vector.broadcast %92 : vector<1x32xf32> to vector<8x32xf32>
    %114 = arith.mulf %112, %113 : vector<8x32xf32>
    %115 = vector.broadcast %94 : vector<1x32xf32> to vector<8x32xf32>
    %116 = arith.addf %114, %115 : vector<8x32xf32>
    %c0_48 = arith.constant 0 : index
    %c0_49 = arith.constant 0 : index
    %c0_50 = arith.constant 0 : index
    %117 = vector.load %arg11[%c0_48, %c0_49, %c0_50] : memref<2x32x64xf32, #tpu.memory_space<vmem>>, vector<1x32x64xf32>
    %118 = vector.shape_cast %117 : vector<1x32x64xf32> to vector<32x64xf32>
    %cst_51 = arith.constant dense<0.000000e+00> : vector<8x64xf32>
    %119 = tpu.matmul %116, %118, %cst_51 {dimension_numbers = #tpu.dot_dimension_numbers<[1], [0], [0], [1], [0, 0, 1, 1], [], []>} : vector<8x32xf32>, vector<32x64xf32>, vector<8x64xf32> -> vector<8x64xf32>
    %c0_52 = arith.constant 0 : index
    %c0_53 = arith.constant 0 : index
    %c0_54 = arith.constant 0 : index
    %120 = vector.load %arg12[%c0_52, %c0_53, %c0_54] : memref<2x1x64xf32, #tpu.memory_space<vmem>>, vector<1x1x64xf32>
    %121 = vector.shape_cast %120 : vector<1x1x64xf32> to vector<1x64xf32>
    %122 = vector.broadcast %121 : vector<1x64xf32> to vector<8x64xf32>
    %123 = arith.addf %119, %122 : vector<8x64xf32>
    %cst_55 = arith.constant 0.000000e+00 : f32
    %124 = vector.broadcast %cst_55 : f32 to vector<8x64xf32>
    %125 = arith.maximumf %123, %124 : vector<8x64xf32>
    %c0_56 = arith.constant 0 : index
    %c0_57 = arith.constant 0 : index
    %c0_58 = arith.constant 0 : index
    %126 = vector.load %arg13[%c0_56, %c0_57, %c0_58] : memref<2x64x32xf32, #tpu.memory_space<vmem>>, vector<1x64x32xf32>
    %127 = vector.shape_cast %126 : vector<1x64x32xf32> to vector<64x32xf32>
    %cst_59 = arith.constant dense<0.000000e+00> : vector<8x32xf32>
    %128 = tpu.matmul %125, %127, %cst_59 {dimension_numbers = #tpu.dot_dimension_numbers<[1], [0], [0], [1], [0, 0, 1, 1], [], []>} : vector<8x64xf32>, vector<64x32xf32>, vector<8x32xf32> -> vector<8x32xf32>
    %c0_60 = arith.constant 0 : index
    %c0_61 = arith.constant 0 : index
    %c0_62 = arith.constant 0 : index
    %129 = vector.load %arg14[%c0_60, %c0_61, %c0_62] : memref<2x1x32xf32, #tpu.memory_space<vmem>>, vector<1x1x32xf32>
    %130 = vector.shape_cast %129 : vector<1x1x32xf32> to vector<1x32xf32>
    %131 = vector.broadcast %130 : vector<1x32xf32> to vector<8x32xf32>
    %132 = arith.addf %128, %131 : vector<8x32xf32>
    %133 = arith.addf %116, %132 : vector<8x32xf32>
    %c0_63 = arith.constant 0 : index
    %c0_64 = arith.constant 0 : index
    %c0_65 = arith.constant 0 : index
    %134 = vector.load %arg15[%c0_63, %c0_64, %c0_65] : memref<2x1x32xf32, #tpu.memory_space<vmem>>, vector<1x1x32xf32>
    %135 = vector.shape_cast %134 : vector<1x1x32xf32> to vector<1x32xf32>
    %c0_66 = arith.constant 0 : index
    %c0_67 = arith.constant 0 : index
    %c0_68 = arith.constant 0 : index
    %136 = vector.load %arg16[%c0_66, %c0_67, %c0_68] : memref<2x1x32xf32, #tpu.memory_space<vmem>>, vector<1x1x32xf32>
    %137 = vector.shape_cast %136 : vector<1x1x32xf32> to vector<1x32xf32>
    %cst_69 = arith.constant dense<0.000000e+00> : vector<8xf32>
    %138 = vector.multi_reduction <add>, %133, %cst_69 [1] : vector<8x32xf32> to vector<8xf32>
    %139 = vector.shape_cast %138 : vector<8xf32> to vector<8x1xf32>
    %cst_70 = arith.constant 3.200000e+01 : f32
    %140 = vector.broadcast %cst_70 : f32 to vector<8x1xf32>
    %141 = arith.divf %139, %140 : vector<8x1xf32>
    %142 = vector.broadcast %141 : vector<8x1xf32> to vector<8x32xf32>
    %143 = arith.subf %133, %142 : vector<8x32xf32>
    %144 = arith.mulf %143, %143 : vector<8x32xf32>
    %cst_71 = arith.constant dense<0.000000e+00> : vector<8xf32>
    %145 = vector.multi_reduction <add>, %144, %cst_71 [1] : vector<8x32xf32> to vector<8xf32>
    %146 = vector.shape_cast %145 : vector<8xf32> to vector<8x1xf32>
    %cst_72 = arith.constant 3.200000e+01 : f32
    %147 = vector.broadcast %cst_72 : f32 to vector<8x1xf32>
    %148 = arith.divf %146, %147 : vector<8x1xf32>
    %149 = vector.broadcast %141 : vector<8x1xf32> to vector<8x32xf32>
    %150 = arith.subf %133, %149 : vector<8x32xf32>
    %cst_73 = arith.constant 9.99999974E-6 : f32
    %151 = vector.broadcast %cst_73 : f32 to vector<8x1xf32>
    %152 = arith.addf %148, %151 : vector<8x1xf32>
    %153 = math.rsqrt %152 : vector<8x1xf32>
    %154 = vector.broadcast %153 : vector<8x1xf32> to vector<8x32xf32>
    %155 = arith.mulf %150, %154 : vector<8x32xf32>
    %156 = vector.broadcast %135 : vector<1x32xf32> to vector<8x32xf32>
    %157 = arith.mulf %155, %156 : vector<8x32xf32>
    %158 = vector.broadcast %137 : vector<1x32xf32> to vector<8x32xf32>
    %159 = arith.addf %157, %158 : vector<8x32xf32>
    %c1 = arith.constant 1 : index
    %c0_74 = arith.constant 0 : index
    %c0_75 = arith.constant 0 : index
    %160 = vector.load %arg5[%c1, %c0_74, %c0_75] : memref<2x32x96xf32, #tpu.memory_space<vmem>>, vector<1x32x96xf32>
    %161 = vector.shape_cast %160 : vector<1x32x96xf32> to vector<32x96xf32>
    %cst_76 = arith.constant dense<0.000000e+00> : vector<8x96xf32>
    %162 = tpu.matmul %159, %161, %cst_76 {dimension_numbers = #tpu.dot_dimension_numbers<[1], [0], [0], [1], [0, 0, 1, 1], [], []>} : vector<8x32xf32>, vector<32x96xf32>, vector<8x96xf32> -> vector<8x96xf32>
    %c1_77 = arith.constant 1 : index
    %c0_78 = arith.constant 0 : index
    %c0_79 = arith.constant 0 : index
    %163 = vector.load %arg6[%c1_77, %c0_78, %c0_79] : memref<2x1x96xf32, #tpu.memory_space<vmem>>, vector<1x1x96xf32>
    %164 = vector.shape_cast %163 : vector<1x1x96xf32> to vector<1x96xf32>
    %165 = vector.broadcast %164 : vector<1x96xf32> to vector<8x96xf32>
    %166 = arith.addf %162, %165 : vector<8x96xf32>
    %167 = vector.extract_strided_slice %166 {offsets = [0, 0], sizes = [8, 32], strides = [1, 1]} : vector<8x96xf32> to vector<8x32xf32>
    %168 = vector.extract_strided_slice %166 {offsets = [0, 32], sizes = [8, 32], strides = [1, 1]} : vector<8x96xf32> to vector<8x32xf32>
    %169 = vector.extract_strided_slice %166 {offsets = [0, 64], sizes = [8, 32], strides = [1, 1]} : vector<8x96xf32> to vector<8x32xf32>
    %170 = vector.extract_strided_slice %167 {offsets = [0, 0], sizes = [8, 8], strides = [1, 1]} : vector<8x32xf32> to vector<8x8xf32>
    %cst_80 = arith.constant 0.353553385 : f32
    %171 = vector.broadcast %cst_80 : f32 to vector<8x8xf32>
    %172 = arith.mulf %170, %171 : vector<8x8xf32>
    %173 = vector.extract_strided_slice %168 {offsets = [0, 0], sizes = [8, 8], strides = [1, 1]} : vector<8x32xf32> to vector<8x8xf32>
    %174 = vector.extract_strided_slice %169 {offsets = [0, 0], sizes = [8, 8], strides = [1, 1]} : vector<8x32xf32> to vector<8x8xf32>
    %cst_81 = arith.constant dense<0.000000e+00> : vector<8x8xf32>
    %175 = tpu.matmul %172, %173, %cst_81 {dimension_numbers = #tpu.dot_dimension_numbers<[1], [1], [0], [0], [0, 0, 1, 0], [], []>} : vector<8x8xf32>, vector<8x8xf32>, vector<8x8xf32> -> vector<8x8xf32>
    %cst_82 = arith.constant dense<0xFF800000> : vector<8xf32>
    %176 = vector.multi_reduction <maximumf>, %175, %cst_82 [1] : vector<8x8xf32> to vector<8xf32>
    %177 = vector.shape_cast %176 : vector<8xf32> to vector<8x1xf32>
    %178 = vector.broadcast %177 : vector<8x1xf32> to vector<8x8xf32>
    %179 = arith.subf %175, %178 : vector<8x8xf32>
    %180 = math.exp %179 : vector<8x8xf32>
    %cst_83 = arith.constant dense<0.000000e+00> : vector<8xf32>
    %181 = vector.multi_reduction <add>, %180, %cst_83 [1] : vector<8x8xf32> to vector<8xf32>
    %182 = vector.shape_cast %181 : vector<8xf32> to vector<8x1xf32>
    %cst_84 = arith.constant dense<0.000000e+00> : vector<8x8xf32>
    %183 = tpu.matmul %180, %174, %cst_84 {dimension_numbers = #tpu.dot_dimension_numbers<[1], [0], [0], [1], [0, 0, 1, 1], [], []>} : vector<8x8xf32>, vector<8x8xf32>, vector<8x8xf32> -> vector<8x8xf32>
    %184 = tpu.reciprocal %182 {approx = true} : vector<8x1xf32> -> vector<8x1xf32>
    %185 = vector.broadcast %184 : vector<8x1xf32> to vector<8x8xf32>
    %186 = arith.mulf %183, %185 : vector<8x8xf32>
    %187 = vector.extract_strided_slice %167 {offsets = [0, 8], sizes = [8, 8], strides = [1, 1]} : vector<8x32xf32> to vector<8x8xf32>
    %cst_85 = arith.constant 0.353553385 : f32
    %188 = vector.broadcast %cst_85 : f32 to vector<8x8xf32>
    %189 = arith.mulf %187, %188 : vector<8x8xf32>
    %190 = vector.extract_strided_slice %168 {offsets = [0, 8], sizes = [8, 8], strides = [1, 1]} : vector<8x32xf32> to vector<8x8xf32>
    %191 = vector.extract_strided_slice %169 {offsets = [0, 8], sizes = [8, 8], strides = [1, 1]} : vector<8x32xf32> to vector<8x8xf32>
    %cst_86 = arith.constant dense<0.000000e+00> : vector<8x8xf32>
    %192 = tpu.matmul %189, %190, %cst_86 {dimension_numbers = #tpu.dot_dimension_numbers<[1], [1], [0], [0], [0, 0, 1, 0], [], []>} : vector<8x8xf32>, vector<8x8xf32>, vector<8x8xf32> -> vector<8x8xf32>
    %cst_87 = arith.constant dense<0xFF800000> : vector<8xf32>
    %193 = vector.multi_reduction <maximumf>, %192, %cst_87 [1] : vector<8x8xf32> to vector<8xf32>
    %194 = vector.shape_cast %193 : vector<8xf32> to vector<8x1xf32>
    %195 = vector.broadcast %194 : vector<8x1xf32> to vector<8x8xf32>
    %196 = arith.subf %192, %195 : vector<8x8xf32>
    %197 = math.exp %196 : vector<8x8xf32>
    %cst_88 = arith.constant dense<0.000000e+00> : vector<8xf32>
    %198 = vector.multi_reduction <add>, %197, %cst_88 [1] : vector<8x8xf32> to vector<8xf32>
    %199 = vector.shape_cast %198 : vector<8xf32> to vector<8x1xf32>
    %cst_89 = arith.constant dense<0.000000e+00> : vector<8x8xf32>
    %200 = tpu.matmul %197, %191, %cst_89 {dimension_numbers = #tpu.dot_dimension_numbers<[1], [0], [0], [1], [0, 0, 1, 1], [], []>} : vector<8x8xf32>, vector<8x8xf32>, vector<8x8xf32> -> vector<8x8xf32>
    %201 = tpu.reciprocal %199 {approx = true} : vector<8x1xf32> -> vector<8x1xf32>
    %202 = vector.broadcast %201 : vector<8x1xf32> to vector<8x8xf32>
    %203 = arith.mulf %200, %202 : vector<8x8xf32>
    %204 = vector.extract_strided_slice %167 {offsets = [0, 16], sizes = [8, 8], strides = [1, 1]} : vector<8x32xf32> to vector<8x8xf32>
    %cst_90 = arith.constant 0.353553385 : f32
    %205 = vector.broadcast %cst_90 : f32 to vector<8x8xf32>
    %206 = arith.mulf %204, %205 : vector<8x8xf32>
    %207 = vector.extract_strided_slice %168 {offsets = [0, 16], sizes = [8, 8], strides = [1, 1]} : vector<8x32xf32> to vector<8x8xf32>
    %208 = vector.extract_strided_slice %169 {offsets = [0, 16], sizes = [8, 8], strides = [1, 1]} : vector<8x32xf32> to vector<8x8xf32>
    %cst_91 = arith.constant dense<0.000000e+00> : vector<8x8xf32>
    %209 = tpu.matmul %206, %207, %cst_91 {dimension_numbers = #tpu.dot_dimension_numbers<[1], [1], [0], [0], [0, 0, 1, 0], [], []>} : vector<8x8xf32>, vector<8x8xf32>, vector<8x8xf32> -> vector<8x8xf32>
    %cst_92 = arith.constant dense<0xFF800000> : vector<8xf32>
    %210 = vector.multi_reduction <maximumf>, %209, %cst_92 [1] : vector<8x8xf32> to vector<8xf32>
    %211 = vector.shape_cast %210 : vector<8xf32> to vector<8x1xf32>
    %212 = vector.broadcast %211 : vector<8x1xf32> to vector<8x8xf32>
    %213 = arith.subf %209, %212 : vector<8x8xf32>
    %214 = math.exp %213 : vector<8x8xf32>
    %cst_93 = arith.constant dense<0.000000e+00> : vector<8xf32>
    %215 = vector.multi_reduction <add>, %214, %cst_93 [1] : vector<8x8xf32> to vector<8xf32>
    %216 = vector.shape_cast %215 : vector<8xf32> to vector<8x1xf32>
    %cst_94 = arith.constant dense<0.000000e+00> : vector<8x8xf32>
    %217 = tpu.matmul %214, %208, %cst_94 {dimension_numbers = #tpu.dot_dimension_numbers<[1], [0], [0], [1], [0, 0, 1, 1], [], []>} : vector<8x8xf32>, vector<8x8xf32>, vector<8x8xf32> -> vector<8x8xf32>
    %218 = tpu.reciprocal %216 {approx = true} : vector<8x1xf32> -> vector<8x1xf32>
    %219 = vector.broadcast %218 : vector<8x1xf32> to vector<8x8xf32>
    %220 = arith.mulf %217, %219 : vector<8x8xf32>
    %221 = vector.extract_strided_slice %167 {offsets = [0, 24], sizes = [8, 8], strides = [1, 1]} : vector<8x32xf32> to vector<8x8xf32>
    %cst_95 = arith.constant 0.353553385 : f32
    %222 = vector.broadcast %cst_95 : f32 to vector<8x8xf32>
    %223 = arith.mulf %221, %222 : vector<8x8xf32>
    %224 = vector.extract_strided_slice %168 {offsets = [0, 24], sizes = [8, 8], strides = [1, 1]} : vector<8x32xf32> to vector<8x8xf32>
    %225 = vector.extract_strided_slice %169 {offsets = [0, 24], sizes = [8, 8], strides = [1, 1]} : vector<8x32xf32> to vector<8x8xf32>
    %cst_96 = arith.constant dense<0.000000e+00> : vector<8x8xf32>
    %226 = tpu.matmul %223, %224, %cst_96 {dimension_numbers = #tpu.dot_dimension_numbers<[1], [1], [0], [0], [0, 0, 1, 0], [], []>} : vector<8x8xf32>, vector<8x8xf32>, vector<8x8xf32> -> vector<8x8xf32>
    %cst_97 = arith.constant dense<0xFF800000> : vector<8xf32>
    %227 = vector.multi_reduction <maximumf>, %226, %cst_97 [1] : vector<8x8xf32> to vector<8xf32>
    %228 = vector.shape_cast %227 : vector<8xf32> to vector<8x1xf32>
    %229 = vector.broadcast %228 : vector<8x1xf32> to vector<8x8xf32>
    %230 = arith.subf %226, %229 : vector<8x8xf32>
    %231 = math.exp %230 : vector<8x8xf32>
    %cst_98 = arith.constant dense<0.000000e+00> : vector<8xf32>
    %232 = vector.multi_reduction <add>, %231, %cst_98 [1] : vector<8x8xf32> to vector<8xf32>
    %233 = vector.shape_cast %232 : vector<8xf32> to vector<8x1xf32>
    %cst_99 = arith.constant dense<0.000000e+00> : vector<8x8xf32>
    %234 = tpu.matmul %231, %225, %cst_99 {dimension_numbers = #tpu.dot_dimension_numbers<[1], [0], [0], [1], [0, 0, 1, 1], [], []>} : vector<8x8xf32>, vector<8x8xf32>, vector<8x8xf32> -> vector<8x8xf32>
    %235 = tpu.reciprocal %233 {approx = true} : vector<8x1xf32> -> vector<8x1xf32>
    %236 = vector.broadcast %235 : vector<8x1xf32> to vector<8x8xf32>
    %237 = arith.mulf %234, %236 : vector<8x8xf32>
    %238 = tpu.concatenate %186, %203, %220, %237 in 1 : vector<8x8xf32>, vector<8x8xf32>, vector<8x8xf32>, vector<8x8xf32> -> vector<8x32xf32>
    %c1_100 = arith.constant 1 : index
    %c0_101 = arith.constant 0 : index
    %c0_102 = arith.constant 0 : index
    %239 = vector.load %arg7[%c1_100, %c0_101, %c0_102] : memref<2x32x32xf32, #tpu.memory_space<vmem>>, vector<1x32x32xf32>
    %240 = vector.shape_cast %239 : vector<1x32x32xf32> to vector<32x32xf32>
    %cst_103 = arith.constant dense<0.000000e+00> : vector<8x32xf32>
    %241 = tpu.matmul %238, %240, %cst_103 {dimension_numbers = #tpu.dot_dimension_numbers<[1], [0], [0], [1], [0, 0, 1, 1], [], []>} : vector<8x32xf32>, vector<32x32xf32>, vector<8x32xf32> -> vector<8x32xf32>
    %c1_104 = arith.constant 1 : index
    %c0_105 = arith.constant 0 : index
    %c0_106 = arith.constant 0 : index
    %242 = vector.load %arg8[%c1_104, %c0_105, %c0_106] : memref<2x1x32xf32, #tpu.memory_space<vmem>>, vector<1x1x32xf32>
    %243 = vector.shape_cast %242 : vector<1x1x32xf32> to vector<1x32xf32>
    %244 = vector.broadcast %243 : vector<1x32xf32> to vector<8x32xf32>
    %245 = arith.addf %241, %244 : vector<8x32xf32>
    %246 = arith.addf %159, %245 : vector<8x32xf32>
    %c1_107 = arith.constant 1 : index
    %c0_108 = arith.constant 0 : index
    %c0_109 = arith.constant 0 : index
    %247 = vector.load %arg9[%c1_107, %c0_108, %c0_109] : memref<2x1x32xf32, #tpu.memory_space<vmem>>, vector<1x1x32xf32>
    %248 = vector.shape_cast %247 : vector<1x1x32xf32> to vector<1x32xf32>
    %c1_110 = arith.constant 1 : index
    %c0_111 = arith.constant 0 : index
    %c0_112 = arith.constant 0 : index
    %249 = vector.load %arg10[%c1_110, %c0_111, %c0_112] : memref<2x1x32xf32, #tpu.memory_space<vmem>>, vector<1x1x32xf32>
    %250 = vector.shape_cast %249 : vector<1x1x32xf32> to vector<1x32xf32>
    %cst_113 = arith.constant dense<0.000000e+00> : vector<8xf32>
    %251 = vector.multi_reduction <add>, %246, %cst_113 [1] : vector<8x32xf32> to vector<8xf32>
    %252 = vector.shape_cast %251 : vector<8xf32> to vector<8x1xf32>
    %cst_114 = arith.constant 3.200000e+01 : f32
    %253 = vector.broadcast %cst_114 : f32 to vector<8x1xf32>
    %254 = arith.divf %252, %253 : vector<8x1xf32>
    %255 = vector.broadcast %254 : vector<8x1xf32> to vector<8x32xf32>
    %256 = arith.subf %246, %255 : vector<8x32xf32>
    %257 = arith.mulf %256, %256 : vector<8x32xf32>
    %cst_115 = arith.constant dense<0.000000e+00> : vector<8xf32>
    %258 = vector.multi_reduction <add>, %257, %cst_115 [1] : vector<8x32xf32> to vector<8xf32>
    %259 = vector.shape_cast %258 : vector<8xf32> to vector<8x1xf32>
    %cst_116 = arith.constant 3.200000e+01 : f32
    %260 = vector.broadcast %cst_116 : f32 to vector<8x1xf32>
    %261 = arith.divf %259, %260 : vector<8x1xf32>
    %262 = vector.broadcast %254 : vector<8x1xf32> to vector<8x32xf32>
    %263 = arith.subf %246, %262 : vector<8x32xf32>
    %cst_117 = arith.constant 9.99999974E-6 : f32
    %264 = vector.broadcast %cst_117 : f32 to vector<8x1xf32>
    %265 = arith.addf %261, %264 : vector<8x1xf32>
    %266 = math.rsqrt %265 : vector<8x1xf32>
    %267 = vector.broadcast %266 : vector<8x1xf32> to vector<8x32xf32>
    %268 = arith.mulf %263, %267 : vector<8x32xf32>
    %269 = vector.broadcast %248 : vector<1x32xf32> to vector<8x32xf32>
    %270 = arith.mulf %268, %269 : vector<8x32xf32>
    %271 = vector.broadcast %250 : vector<1x32xf32> to vector<8x32xf32>
    %272 = arith.addf %270, %271 : vector<8x32xf32>
    %c1_118 = arith.constant 1 : index
    %c0_119 = arith.constant 0 : index
    %c0_120 = arith.constant 0 : index
    %273 = vector.load %arg11[%c1_118, %c0_119, %c0_120] : memref<2x32x64xf32, #tpu.memory_space<vmem>>, vector<1x32x64xf32>
    %274 = vector.shape_cast %273 : vector<1x32x64xf32> to vector<32x64xf32>
    %cst_121 = arith.constant dense<0.000000e+00> : vector<8x64xf32>
    %275 = tpu.matmul %272, %274, %cst_121 {dimension_numbers = #tpu.dot_dimension_numbers<[1], [0], [0], [1], [0, 0, 1, 1], [], []>} : vector<8x32xf32>, vector<32x64xf32>, vector<8x64xf32> -> vector<8x64xf32>
    %c1_122 = arith.constant 1 : index
    %c0_123 = arith.constant 0 : index
    %c0_124 = arith.constant 0 : index
    %276 = vector.load %arg12[%c1_122, %c0_123, %c0_124] : memref<2x1x64xf32, #tpu.memory_space<vmem>>, vector<1x1x64xf32>
    %277 = vector.shape_cast %276 : vector<1x1x64xf32> to vector<1x64xf32>
    %278 = vector.broadcast %277 : vector<1x64xf32> to vector<8x64xf32>
    %279 = arith.addf %275, %278 : vector<8x64xf32>
    %cst_125 = arith.constant 0.000000e+00 : f32
    %280 = vector.broadcast %cst_125 : f32 to vector<8x64xf32>
    %281 = arith.maximumf %279, %280 : vector<8x64xf32>
    %c1_126 = arith.constant 1 : index
    %c0_127 = arith.constant 0 : index
    %c0_128 = arith.constant 0 : index
    %282 = vector.load %arg13[%c1_126, %c0_127, %c0_128] : memref<2x64x32xf32, #tpu.memory_space<vmem>>, vector<1x64x32xf32>
    %283 = vector.shape_cast %282 : vector<1x64x32xf32> to vector<64x32xf32>
    %cst_129 = arith.constant dense<0.000000e+00> : vector<8x32xf32>
    %284 = tpu.matmul %281, %283, %cst_129 {dimension_numbers = #tpu.dot_dimension_numbers<[1], [0], [0], [1], [0, 0, 1, 1], [], []>} : vector<8x64xf32>, vector<64x32xf32>, vector<8x32xf32> -> vector<8x32xf32>
    %c1_130 = arith.constant 1 : index
    %c0_131 = arith.constant 0 : index
    %c0_132 = arith.constant 0 : index
    %285 = vector.load %arg14[%c1_130, %c0_131, %c0_132] : memref<2x1x32xf32, #tpu.memory_space<vmem>>, vector<1x1x32xf32>
    %286 = vector.shape_cast %285 : vector<1x1x32xf32> to vector<1x32xf32>
    %287 = vector.broadcast %286 : vector<1x32xf32> to vector<8x32xf32>
    %288 = arith.addf %284, %287 : vector<8x32xf32>
    %289 = arith.addf %272, %288 : vector<8x32xf32>
    %c1_133 = arith.constant 1 : index
    %c0_134 = arith.constant 0 : index
    %c0_135 = arith.constant 0 : index
    %290 = vector.load %arg15[%c1_133, %c0_134, %c0_135] : memref<2x1x32xf32, #tpu.memory_space<vmem>>, vector<1x1x32xf32>
    %291 = vector.shape_cast %290 : vector<1x1x32xf32> to vector<1x32xf32>
    %c1_136 = arith.constant 1 : index
    %c0_137 = arith.constant 0 : index
    %c0_138 = arith.constant 0 : index
    %292 = vector.load %arg16[%c1_136, %c0_137, %c0_138] : memref<2x1x32xf32, #tpu.memory_space<vmem>>, vector<1x1x32xf32>
    %293 = vector.shape_cast %292 : vector<1x1x32xf32> to vector<1x32xf32>
    %cst_139 = arith.constant dense<0.000000e+00> : vector<8xf32>
    %294 = vector.multi_reduction <add>, %289, %cst_139 [1] : vector<8x32xf32> to vector<8xf32>
    %295 = vector.shape_cast %294 : vector<8xf32> to vector<8x1xf32>
    %cst_140 = arith.constant 3.200000e+01 : f32
    %296 = vector.broadcast %cst_140 : f32 to vector<8x1xf32>
    %297 = arith.divf %295, %296 : vector<8x1xf32>
    %298 = vector.broadcast %297 : vector<8x1xf32> to vector<8x32xf32>
    %299 = arith.subf %289, %298 : vector<8x32xf32>
    %300 = arith.mulf %299, %299 : vector<8x32xf32>
    %cst_141 = arith.constant dense<0.000000e+00> : vector<8xf32>
    %301 = vector.multi_reduction <add>, %300, %cst_141 [1] : vector<8x32xf32> to vector<8xf32>
    %302 = vector.shape_cast %301 : vector<8xf32> to vector<8x1xf32>
    %cst_142 = arith.constant 3.200000e+01 : f32
    %303 = vector.broadcast %cst_142 : f32 to vector<8x1xf32>
    %304 = arith.divf %302, %303 : vector<8x1xf32>
    %305 = vector.broadcast %297 : vector<8x1xf32> to vector<8x32xf32>
    %306 = arith.subf %289, %305 : vector<8x32xf32>
    %cst_143 = arith.constant 9.99999974E-6 : f32
    %307 = vector.broadcast %cst_143 : f32 to vector<8x1xf32>
    %308 = arith.addf %304, %307 : vector<8x1xf32>
    %309 = math.rsqrt %308 : vector<8x1xf32>
    %310 = vector.broadcast %309 : vector<8x1xf32> to vector<8x32xf32>
    %311 = arith.mulf %306, %310 : vector<8x32xf32>
    %312 = vector.broadcast %291 : vector<1x32xf32> to vector<8x32xf32>
    %313 = arith.mulf %311, %312 : vector<8x32xf32>
    %314 = vector.broadcast %293 : vector<1x32xf32> to vector<8x32xf32>
    %315 = arith.addf %313, %314 : vector<8x32xf32>
    %c0_144 = arith.constant 0 : index
    %c0_145 = arith.constant 0 : index
    %c0_146 = arith.constant 0 : index
    %316 = vector.load %arg2[%c0_144, %c0_145, %c0_146] : memref<1x8x32xf32, #tpu.memory_space<vmem>>, vector<1x8x32xf32>
    %317 = vector.shape_cast %316 : vector<1x8x32xf32> to vector<8x32xf32>
    %c0_147 = arith.constant 0 : index
    %c0_148 = arith.constant 0 : index
    %318 = vector.load %arg4[%c0_147, %c0_148] : memref<8x32xf32, #tpu.memory_space<vmem>>, vector<8x32xf32>
    %319 = arith.addf %317, %318 : vector<8x32xf32>
    %c0_149 = arith.constant 0 : index
    %c0_150 = arith.constant 0 : index
    %c0_151 = arith.constant 0 : index
    %320 = vector.load %arg17[%c0_149, %c0_150, %c0_151] : memref<2x32x96xf32, #tpu.memory_space<vmem>>, vector<1x32x96xf32>
    %321 = vector.shape_cast %320 : vector<1x32x96xf32> to vector<32x96xf32>
    %cst_152 = arith.constant dense<0.000000e+00> : vector<8x96xf32>
    %322 = tpu.matmul %319, %321, %cst_152 {dimension_numbers = #tpu.dot_dimension_numbers<[1], [0], [0], [1], [0, 0, 1, 1], [], []>} : vector<8x32xf32>, vector<32x96xf32>, vector<8x96xf32> -> vector<8x96xf32>
    %c0_153 = arith.constant 0 : index
    %c0_154 = arith.constant 0 : index
    %c0_155 = arith.constant 0 : index
    %323 = vector.load %arg18[%c0_153, %c0_154, %c0_155] : memref<2x1x96xf32, #tpu.memory_space<vmem>>, vector<1x1x96xf32>
    %324 = vector.shape_cast %323 : vector<1x1x96xf32> to vector<1x96xf32>
    %325 = vector.broadcast %324 : vector<1x96xf32> to vector<8x96xf32>
    %326 = arith.addf %322, %325 : vector<8x96xf32>
    %327 = vector.extract_strided_slice %326 {offsets = [0, 0], sizes = [8, 32], strides = [1, 1]} : vector<8x96xf32> to vector<8x32xf32>
    %328 = vector.extract_strided_slice %326 {offsets = [0, 32], sizes = [8, 32], strides = [1, 1]} : vector<8x96xf32> to vector<8x32xf32>
    %329 = vector.extract_strided_slice %326 {offsets = [0, 64], sizes = [8, 32], strides = [1, 1]} : vector<8x96xf32> to vector<8x32xf32>
    %330 = vector.extract_strided_slice %327 {offsets = [0, 0], sizes = [8, 8], strides = [1, 1]} : vector<8x32xf32> to vector<8x8xf32>
    %cst_156 = arith.constant 0.353553385 : f32
    %331 = vector.broadcast %cst_156 : f32 to vector<8x8xf32>
    %332 = arith.mulf %330, %331 : vector<8x8xf32>
    %333 = vector.extract_strided_slice %328 {offsets = [0, 0], sizes = [8, 8], strides = [1, 1]} : vector<8x32xf32> to vector<8x8xf32>
    %334 = vector.extract_strided_slice %329 {offsets = [0, 0], sizes = [8, 8], strides = [1, 1]} : vector<8x32xf32> to vector<8x8xf32>
    %cst_157 = arith.constant dense<0.000000e+00> : vector<8x8xf32>
    %335 = tpu.matmul %332, %333, %cst_157 {dimension_numbers = #tpu.dot_dimension_numbers<[1], [1], [0], [0], [0, 0, 1, 0], [], []>} : vector<8x8xf32>, vector<8x8xf32>, vector<8x8xf32> -> vector<8x8xf32>
    %cst_158 = arith.constant dense<0xFF800000> : vector<8xf32>
    %336 = vector.multi_reduction <maximumf>, %335, %cst_158 [1] : vector<8x8xf32> to vector<8xf32>
    %337 = vector.shape_cast %336 : vector<8xf32> to vector<8x1xf32>
    %338 = vector.broadcast %337 : vector<8x1xf32> to vector<8x8xf32>
    %339 = arith.subf %335, %338 : vector<8x8xf32>
    %340 = math.exp %339 : vector<8x8xf32>
    %cst_159 = arith.constant dense<0.000000e+00> : vector<8xf32>
    %341 = vector.multi_reduction <add>, %340, %cst_159 [1] : vector<8x8xf32> to vector<8xf32>
    %342 = vector.shape_cast %341 : vector<8xf32> to vector<8x1xf32>
    %cst_160 = arith.constant dense<0.000000e+00> : vector<8x8xf32>
    %343 = tpu.matmul %340, %334, %cst_160 {dimension_numbers = #tpu.dot_dimension_numbers<[1], [0], [0], [1], [0, 0, 1, 1], [], []>} : vector<8x8xf32>, vector<8x8xf32>, vector<8x8xf32> -> vector<8x8xf32>
    %344 = tpu.reciprocal %342 {approx = true} : vector<8x1xf32> -> vector<8x1xf32>
    %345 = vector.broadcast %344 : vector<8x1xf32> to vector<8x8xf32>
    %346 = arith.mulf %343, %345 : vector<8x8xf32>
    %347 = vector.extract_strided_slice %327 {offsets = [0, 8], sizes = [8, 8], strides = [1, 1]} : vector<8x32xf32> to vector<8x8xf32>
    %cst_161 = arith.constant 0.353553385 : f32
    %348 = vector.broadcast %cst_161 : f32 to vector<8x8xf32>
    %349 = arith.mulf %347, %348 : vector<8x8xf32>
    %350 = vector.extract_strided_slice %328 {offsets = [0, 8], sizes = [8, 8], strides = [1, 1]} : vector<8x32xf32> to vector<8x8xf32>
    %351 = vector.extract_strided_slice %329 {offsets = [0, 8], sizes = [8, 8], strides = [1, 1]} : vector<8x32xf32> to vector<8x8xf32>
    %cst_162 = arith.constant dense<0.000000e+00> : vector<8x8xf32>
    %352 = tpu.matmul %349, %350, %cst_162 {dimension_numbers = #tpu.dot_dimension_numbers<[1], [1], [0], [0], [0, 0, 1, 0], [], []>} : vector<8x8xf32>, vector<8x8xf32>, vector<8x8xf32> -> vector<8x8xf32>
    %cst_163 = arith.constant dense<0xFF800000> : vector<8xf32>
    %353 = vector.multi_reduction <maximumf>, %352, %cst_163 [1] : vector<8x8xf32> to vector<8xf32>
    %354 = vector.shape_cast %353 : vector<8xf32> to vector<8x1xf32>
    %355 = vector.broadcast %354 : vector<8x1xf32> to vector<8x8xf32>
    %356 = arith.subf %352, %355 : vector<8x8xf32>
    %357 = math.exp %356 : vector<8x8xf32>
    %cst_164 = arith.constant dense<0.000000e+00> : vector<8xf32>
    %358 = vector.multi_reduction <add>, %357, %cst_164 [1] : vector<8x8xf32> to vector<8xf32>
    %359 = vector.shape_cast %358 : vector<8xf32> to vector<8x1xf32>
    %cst_165 = arith.constant dense<0.000000e+00> : vector<8x8xf32>
    %360 = tpu.matmul %357, %351, %cst_165 {dimension_numbers = #tpu.dot_dimension_numbers<[1], [0], [0], [1], [0, 0, 1, 1], [], []>} : vector<8x8xf32>, vector<8x8xf32>, vector<8x8xf32> -> vector<8x8xf32>
    %361 = tpu.reciprocal %359 {approx = true} : vector<8x1xf32> -> vector<8x1xf32>
    %362 = vector.broadcast %361 : vector<8x1xf32> to vector<8x8xf32>
    %363 = arith.mulf %360, %362 : vector<8x8xf32>
    %364 = vector.extract_strided_slice %327 {offsets = [0, 16], sizes = [8, 8], strides = [1, 1]} : vector<8x32xf32> to vector<8x8xf32>
    %cst_166 = arith.constant 0.353553385 : f32
    %365 = vector.broadcast %cst_166 : f32 to vector<8x8xf32>
    %366 = arith.mulf %364, %365 : vector<8x8xf32>
    %367 = vector.extract_strided_slice %328 {offsets = [0, 16], sizes = [8, 8], strides = [1, 1]} : vector<8x32xf32> to vector<8x8xf32>
    %368 = vector.extract_strided_slice %329 {offsets = [0, 16], sizes = [8, 8], strides = [1, 1]} : vector<8x32xf32> to vector<8x8xf32>
    %cst_167 = arith.constant dense<0.000000e+00> : vector<8x8xf32>
    %369 = tpu.matmul %366, %367, %cst_167 {dimension_numbers = #tpu.dot_dimension_numbers<[1], [1], [0], [0], [0, 0, 1, 0], [], []>} : vector<8x8xf32>, vector<8x8xf32>, vector<8x8xf32> -> vector<8x8xf32>
    %cst_168 = arith.constant dense<0xFF800000> : vector<8xf32>
    %370 = vector.multi_reduction <maximumf>, %369, %cst_168 [1] : vector<8x8xf32> to vector<8xf32>
    %371 = vector.shape_cast %370 : vector<8xf32> to vector<8x1xf32>
    %372 = vector.broadcast %371 : vector<8x1xf32> to vector<8x8xf32>
    %373 = arith.subf %369, %372 : vector<8x8xf32>
    %374 = math.exp %373 : vector<8x8xf32>
    %cst_169 = arith.constant dense<0.000000e+00> : vector<8xf32>
    %375 = vector.multi_reduction <add>, %374, %cst_169 [1] : vector<8x8xf32> to vector<8xf32>
    %376 = vector.shape_cast %375 : vector<8xf32> to vector<8x1xf32>
    %cst_170 = arith.constant dense<0.000000e+00> : vector<8x8xf32>
    %377 = tpu.matmul %374, %368, %cst_170 {dimension_numbers = #tpu.dot_dimension_numbers<[1], [0], [0], [1], [0, 0, 1, 1], [], []>} : vector<8x8xf32>, vector<8x8xf32>, vector<8x8xf32> -> vector<8x8xf32>
    %378 = tpu.reciprocal %376 {approx = true} : vector<8x1xf32> -> vector<8x1xf32>
    %379 = vector.broadcast %378 : vector<8x1xf32> to vector<8x8xf32>
    %380 = arith.mulf %377, %379 : vector<8x8xf32>
    %381 = vector.extract_strided_slice %327 {offsets = [0, 24], sizes = [8, 8], strides = [1, 1]} : vector<8x32xf32> to vector<8x8xf32>
    %cst_171 = arith.constant 0.353553385 : f32
    %382 = vector.broadcast %cst_171 : f32 to vector<8x8xf32>
    %383 = arith.mulf %381, %382 : vector<8x8xf32>
    %384 = vector.extract_strided_slice %328 {offsets = [0, 24], sizes = [8, 8], strides = [1, 1]} : vector<8x32xf32> to vector<8x8xf32>
    %385 = vector.extract_strided_slice %329 {offsets = [0, 24], sizes = [8, 8], strides = [1, 1]} : vector<8x32xf32> to vector<8x8xf32>
    %cst_172 = arith.constant dense<0.000000e+00> : vector<8x8xf32>
    %386 = tpu.matmul %383, %384, %cst_172 {dimension_numbers = #tpu.dot_dimension_numbers<[1], [1], [0], [0], [0, 0, 1, 0], [], []>} : vector<8x8xf32>, vector<8x8xf32>, vector<8x8xf32> -> vector<8x8xf32>
    %cst_173 = arith.constant dense<0xFF800000> : vector<8xf32>
    %387 = vector.multi_reduction <maximumf>, %386, %cst_173 [1] : vector<8x8xf32> to vector<8xf32>
    %388 = vector.shape_cast %387 : vector<8xf32> to vector<8x1xf32>
    %389 = vector.broadcast %388 : vector<8x1xf32> to vector<8x8xf32>
    %390 = arith.subf %386, %389 : vector<8x8xf32>
    %391 = math.exp %390 : vector<8x8xf32>
    %cst_174 = arith.constant dense<0.000000e+00> : vector<8xf32>
    %392 = vector.multi_reduction <add>, %391, %cst_174 [1] : vector<8x8xf32> to vector<8xf32>
    %393 = vector.shape_cast %392 : vector<8xf32> to vector<8x1xf32>
    %cst_175 = arith.constant dense<0.000000e+00> : vector<8x8xf32>
    %394 = tpu.matmul %391, %385, %cst_175 {dimension_numbers = #tpu.dot_dimension_numbers<[1], [0], [0], [1], [0, 0, 1, 1], [], []>} : vector<8x8xf32>, vector<8x8xf32>, vector<8x8xf32> -> vector<8x8xf32>
    %395 = tpu.reciprocal %393 {approx = true} : vector<8x1xf32> -> vector<8x1xf32>
    %396 = vector.broadcast %395 : vector<8x1xf32> to vector<8x8xf32>
    %397 = arith.mulf %394, %396 : vector<8x8xf32>
    %398 = tpu.concatenate %346, %363, %380, %397 in 1 : vector<8x8xf32>, vector<8x8xf32>, vector<8x8xf32>, vector<8x8xf32> -> vector<8x32xf32>
    %c0_176 = arith.constant 0 : index
    %c0_177 = arith.constant 0 : index
    %c0_178 = arith.constant 0 : index
    %399 = vector.load %arg19[%c0_176, %c0_177, %c0_178] : memref<2x32x32xf32, #tpu.memory_space<vmem>>, vector<1x32x32xf32>
    %400 = vector.shape_cast %399 : vector<1x32x32xf32> to vector<32x32xf32>
    %cst_179 = arith.constant dense<0.000000e+00> : vector<8x32xf32>
    %401 = tpu.matmul %398, %400, %cst_179 {dimension_numbers = #tpu.dot_dimension_numbers<[1], [0], [0], [1], [0, 0, 1, 1], [], []>} : vector<8x32xf32>, vector<32x32xf32>, vector<8x32xf32> -> vector<8x32xf32>
    %c0_180 = arith.constant 0 : index
    %c0_181 = arith.constant 0 : index
    %c0_182 = arith.constant 0 : index
    %402 = vector.load %arg20[%c0_180, %c0_181, %c0_182] : memref<2x1x32xf32, #tpu.memory_space<vmem>>, vector<1x1x32xf32>
    %403 = vector.shape_cast %402 : vector<1x1x32xf32> to vector<1x32xf32>
    %404 = vector.broadcast %403 : vector<1x32xf32> to vector<8x32xf32>
    %405 = arith.addf %401, %404 : vector<8x32xf32>
    %406 = arith.addf %319, %405 : vector<8x32xf32>
    %c0_183 = arith.constant 0 : index
    %c0_184 = arith.constant 0 : index
    %c0_185 = arith.constant 0 : index
    %407 = vector.load %arg21[%c0_183, %c0_184, %c0_185] : memref<2x1x32xf32, #tpu.memory_space<vmem>>, vector<1x1x32xf32>
    %408 = vector.shape_cast %407 : vector<1x1x32xf32> to vector<1x32xf32>
    %c0_186 = arith.constant 0 : index
    %c0_187 = arith.constant 0 : index
    %c0_188 = arith.constant 0 : index
    %409 = vector.load %arg22[%c0_186, %c0_187, %c0_188] : memref<2x1x32xf32, #tpu.memory_space<vmem>>, vector<1x1x32xf32>
    %410 = vector.shape_cast %409 : vector<1x1x32xf32> to vector<1x32xf32>
    %cst_189 = arith.constant dense<0.000000e+00> : vector<8xf32>
    %411 = vector.multi_reduction <add>, %406, %cst_189 [1] : vector<8x32xf32> to vector<8xf32>
    %412 = vector.shape_cast %411 : vector<8xf32> to vector<8x1xf32>
    %cst_190 = arith.constant 3.200000e+01 : f32
    %413 = vector.broadcast %cst_190 : f32 to vector<8x1xf32>
    %414 = arith.divf %412, %413 : vector<8x1xf32>
    %415 = vector.broadcast %414 : vector<8x1xf32> to vector<8x32xf32>
    %416 = arith.subf %406, %415 : vector<8x32xf32>
    %417 = arith.mulf %416, %416 : vector<8x32xf32>
    %cst_191 = arith.constant dense<0.000000e+00> : vector<8xf32>
    %418 = vector.multi_reduction <add>, %417, %cst_191 [1] : vector<8x32xf32> to vector<8xf32>
    %419 = vector.shape_cast %418 : vector<8xf32> to vector<8x1xf32>
    %cst_192 = arith.constant 3.200000e+01 : f32
    %420 = vector.broadcast %cst_192 : f32 to vector<8x1xf32>
    %421 = arith.divf %419, %420 : vector<8x1xf32>
    %422 = vector.broadcast %414 : vector<8x1xf32> to vector<8x32xf32>
    %423 = arith.subf %406, %422 : vector<8x32xf32>
    %cst_193 = arith.constant 9.99999974E-6 : f32
    %424 = vector.broadcast %cst_193 : f32 to vector<8x1xf32>
    %425 = arith.addf %421, %424 : vector<8x1xf32>
    %426 = math.rsqrt %425 : vector<8x1xf32>
    %427 = vector.broadcast %426 : vector<8x1xf32> to vector<8x32xf32>
    %428 = arith.mulf %423, %427 : vector<8x32xf32>
    %429 = vector.broadcast %408 : vector<1x32xf32> to vector<8x32xf32>
    %430 = arith.mulf %428, %429 : vector<8x32xf32>
    %431 = vector.broadcast %410 : vector<1x32xf32> to vector<8x32xf32>
    %432 = arith.addf %430, %431 : vector<8x32xf32>
    %c0_194 = arith.constant 0 : index
    %c0_195 = arith.constant 0 : index
    %c0_196 = arith.constant 0 : index
    %433 = vector.load %arg23[%c0_194, %c0_195, %c0_196] : memref<2x32x32xf32, #tpu.memory_space<vmem>>, vector<1x32x32xf32>
    %434 = vector.shape_cast %433 : vector<1x32x32xf32> to vector<32x32xf32>
    %cst_197 = arith.constant dense<0.000000e+00> : vector<8x32xf32>
    %435 = tpu.matmul %432, %434, %cst_197 {dimension_numbers = #tpu.dot_dimension_numbers<[1], [0], [0], [1], [0, 0, 1, 1], [], []>} : vector<8x32xf32>, vector<32x32xf32>, vector<8x32xf32> -> vector<8x32xf32>
    %c0_198 = arith.constant 0 : index
    %c0_199 = arith.constant 0 : index
    %c0_200 = arith.constant 0 : index
    %436 = vector.load %arg24[%c0_198, %c0_199, %c0_200] : memref<2x1x32xf32, #tpu.memory_space<vmem>>, vector<1x1x32xf32>
    %437 = vector.shape_cast %436 : vector<1x1x32xf32> to vector<1x32xf32>
    %438 = vector.broadcast %437 : vector<1x32xf32> to vector<8x32xf32>
    %439 = arith.addf %435, %438 : vector<8x32xf32>
    %c0_201 = arith.constant 0 : index
    %c0_202 = arith.constant 0 : index
    %c0_203 = arith.constant 0 : index
    %440 = vector.load %arg25[%c0_201, %c0_202, %c0_203] : memref<2x32x64xf32, #tpu.memory_space<vmem>>, vector<1x32x64xf32>
    %441 = vector.shape_cast %440 : vector<1x32x64xf32> to vector<32x64xf32>
    %cst_204 = arith.constant dense<0.000000e+00> : vector<8x64xf32>
    %442 = tpu.matmul %315, %441, %cst_204 {dimension_numbers = #tpu.dot_dimension_numbers<[1], [0], [0], [1], [0, 0, 1, 1], [], []>} : vector<8x32xf32>, vector<32x64xf32>, vector<8x64xf32> -> vector<8x64xf32>
    %c0_205 = arith.constant 0 : index
    %c0_206 = arith.constant 0 : index
    %c0_207 = arith.constant 0 : index
    %443 = vector.load %arg26[%c0_205, %c0_206, %c0_207] : memref<2x1x64xf32, #tpu.memory_space<vmem>>, vector<1x1x64xf32>
    %444 = vector.shape_cast %443 : vector<1x1x64xf32> to vector<1x64xf32>
    %445 = vector.broadcast %444 : vector<1x64xf32> to vector<8x64xf32>
    %446 = arith.addf %442, %445 : vector<8x64xf32>
    %447 = vector.extract_strided_slice %446 {offsets = [0, 0], sizes = [8, 32], strides = [1, 1]} : vector<8x64xf32> to vector<8x32xf32>
    %448 = vector.extract_strided_slice %446 {offsets = [0, 32], sizes = [8, 32], strides = [1, 1]} : vector<8x64xf32> to vector<8x32xf32>
    %449 = vector.extract_strided_slice %439 {offsets = [0, 0], sizes = [8, 8], strides = [1, 1]} : vector<8x32xf32> to vector<8x8xf32>
    %cst_208 = arith.constant 0.353553385 : f32
    %450 = vector.broadcast %cst_208 : f32 to vector<8x8xf32>
    %451 = arith.mulf %449, %450 : vector<8x8xf32>
    %452 = vector.extract_strided_slice %447 {offsets = [0, 0], sizes = [8, 8], strides = [1, 1]} : vector<8x32xf32> to vector<8x8xf32>
    %453 = vector.extract_strided_slice %448 {offsets = [0, 0], sizes = [8, 8], strides = [1, 1]} : vector<8x32xf32> to vector<8x8xf32>
    %cst_209 = arith.constant dense<0.000000e+00> : vector<8x8xf32>
    %454 = tpu.matmul %451, %452, %cst_209 {dimension_numbers = #tpu.dot_dimension_numbers<[1], [1], [0], [0], [0, 0, 1, 0], [], []>} : vector<8x8xf32>, vector<8x8xf32>, vector<8x8xf32> -> vector<8x8xf32>
    %cst_210 = arith.constant dense<0xFF800000> : vector<8xf32>
    %455 = vector.multi_reduction <maximumf>, %454, %cst_210 [1] : vector<8x8xf32> to vector<8xf32>
    %456 = vector.shape_cast %455 : vector<8xf32> to vector<8x1xf32>
    %457 = vector.broadcast %456 : vector<8x1xf32> to vector<8x8xf32>
    %458 = arith.subf %454, %457 : vector<8x8xf32>
    %459 = math.exp %458 : vector<8x8xf32>
    %cst_211 = arith.constant dense<0.000000e+00> : vector<8xf32>
    %460 = vector.multi_reduction <add>, %459, %cst_211 [1] : vector<8x8xf32> to vector<8xf32>
    %461 = vector.shape_cast %460 : vector<8xf32> to vector<8x1xf32>
    %cst_212 = arith.constant dense<0.000000e+00> : vector<8x8xf32>
    %462 = tpu.matmul %459, %453, %cst_212 {dimension_numbers = #tpu.dot_dimension_numbers<[1], [0], [0], [1], [0, 0, 1, 1], [], []>} : vector<8x8xf32>, vector<8x8xf32>, vector<8x8xf32> -> vector<8x8xf32>
    %463 = tpu.reciprocal %461 {approx = true} : vector<8x1xf32> -> vector<8x1xf32>
    %464 = vector.broadcast %463 : vector<8x1xf32> to vector<8x8xf32>
    %465 = arith.mulf %462, %464 : vector<8x8xf32>
    %466 = vector.extract_strided_slice %439 {offsets = [0, 8], sizes = [8, 8], strides = [1, 1]} : vector<8x32xf32> to vector<8x8xf32>
    %cst_213 = arith.constant 0.353553385 : f32
    %467 = vector.broadcast %cst_213 : f32 to vector<8x8xf32>
    %468 = arith.mulf %466, %467 : vector<8x8xf32>
    %469 = vector.extract_strided_slice %447 {offsets = [0, 8], sizes = [8, 8], strides = [1, 1]} : vector<8x32xf32> to vector<8x8xf32>
    %470 = vector.extract_strided_slice %448 {offsets = [0, 8], sizes = [8, 8], strides = [1, 1]} : vector<8x32xf32> to vector<8x8xf32>
    %cst_214 = arith.constant dense<0.000000e+00> : vector<8x8xf32>
    %471 = tpu.matmul %468, %469, %cst_214 {dimension_numbers = #tpu.dot_dimension_numbers<[1], [1], [0], [0], [0, 0, 1, 0], [], []>} : vector<8x8xf32>, vector<8x8xf32>, vector<8x8xf32> -> vector<8x8xf32>
    %cst_215 = arith.constant dense<0xFF800000> : vector<8xf32>
    %472 = vector.multi_reduction <maximumf>, %471, %cst_215 [1] : vector<8x8xf32> to vector<8xf32>
    %473 = vector.shape_cast %472 : vector<8xf32> to vector<8x1xf32>
    %474 = vector.broadcast %473 : vector<8x1xf32> to vector<8x8xf32>
    %475 = arith.subf %471, %474 : vector<8x8xf32>
    %476 = math.exp %475 : vector<8x8xf32>
    %cst_216 = arith.constant dense<0.000000e+00> : vector<8xf32>
    %477 = vector.multi_reduction <add>, %476, %cst_216 [1] : vector<8x8xf32> to vector<8xf32>
    %478 = vector.shape_cast %477 : vector<8xf32> to vector<8x1xf32>
    %cst_217 = arith.constant dense<0.000000e+00> : vector<8x8xf32>
    %479 = tpu.matmul %476, %470, %cst_217 {dimension_numbers = #tpu.dot_dimension_numbers<[1], [0], [0], [1], [0, 0, 1, 1], [], []>} : vector<8x8xf32>, vector<8x8xf32>, vector<8x8xf32> -> vector<8x8xf32>
    %480 = tpu.reciprocal %478 {approx = true} : vector<8x1xf32> -> vector<8x1xf32>
    %481 = vector.broadcast %480 : vector<8x1xf32> to vector<8x8xf32>
    %482 = arith.mulf %479, %481 : vector<8x8xf32>
    %483 = vector.extract_strided_slice %439 {offsets = [0, 16], sizes = [8, 8], strides = [1, 1]} : vector<8x32xf32> to vector<8x8xf32>
    %cst_218 = arith.constant 0.353553385 : f32
    %484 = vector.broadcast %cst_218 : f32 to vector<8x8xf32>
    %485 = arith.mulf %483, %484 : vector<8x8xf32>
    %486 = vector.extract_strided_slice %447 {offsets = [0, 16], sizes = [8, 8], strides = [1, 1]} : vector<8x32xf32> to vector<8x8xf32>
    %487 = vector.extract_strided_slice %448 {offsets = [0, 16], sizes = [8, 8], strides = [1, 1]} : vector<8x32xf32> to vector<8x8xf32>
    %cst_219 = arith.constant dense<0.000000e+00> : vector<8x8xf32>
    %488 = tpu.matmul %485, %486, %cst_219 {dimension_numbers = #tpu.dot_dimension_numbers<[1], [1], [0], [0], [0, 0, 1, 0], [], []>} : vector<8x8xf32>, vector<8x8xf32>, vector<8x8xf32> -> vector<8x8xf32>
    %cst_220 = arith.constant dense<0xFF800000> : vector<8xf32>
    %489 = vector.multi_reduction <maximumf>, %488, %cst_220 [1] : vector<8x8xf32> to vector<8xf32>
    %490 = vector.shape_cast %489 : vector<8xf32> to vector<8x1xf32>
    %491 = vector.broadcast %490 : vector<8x1xf32> to vector<8x8xf32>
    %492 = arith.subf %488, %491 : vector<8x8xf32>
    %493 = math.exp %492 : vector<8x8xf32>
    %cst_221 = arith.constant dense<0.000000e+00> : vector<8xf32>
    %494 = vector.multi_reduction <add>, %493, %cst_221 [1] : vector<8x8xf32> to vector<8xf32>
    %495 = vector.shape_cast %494 : vector<8xf32> to vector<8x1xf32>
    %cst_222 = arith.constant dense<0.000000e+00> : vector<8x8xf32>
    %496 = tpu.matmul %493, %487, %cst_222 {dimension_numbers = #tpu.dot_dimension_numbers<[1], [0], [0], [1], [0, 0, 1, 1], [], []>} : vector<8x8xf32>, vector<8x8xf32>, vector<8x8xf32> -> vector<8x8xf32>
    %497 = tpu.reciprocal %495 {approx = true} : vector<8x1xf32> -> vector<8x1xf32>
    %498 = vector.broadcast %497 : vector<8x1xf32> to vector<8x8xf32>
    %499 = arith.mulf %496, %498 : vector<8x8xf32>
    %500 = vector.extract_strided_slice %439 {offsets = [0, 24], sizes = [8, 8], strides = [1, 1]} : vector<8x32xf32> to vector<8x8xf32>
    %cst_223 = arith.constant 0.353553385 : f32
    %501 = vector.broadcast %cst_223 : f32 to vector<8x8xf32>
    %502 = arith.mulf %500, %501 : vector<8x8xf32>
    %503 = vector.extract_strided_slice %447 {offsets = [0, 24], sizes = [8, 8], strides = [1, 1]} : vector<8x32xf32> to vector<8x8xf32>
    %504 = vector.extract_strided_slice %448 {offsets = [0, 24], sizes = [8, 8], strides = [1, 1]} : vector<8x32xf32> to vector<8x8xf32>
    %cst_224 = arith.constant dense<0.000000e+00> : vector<8x8xf32>
    %505 = tpu.matmul %502, %503, %cst_224 {dimension_numbers = #tpu.dot_dimension_numbers<[1], [1], [0], [0], [0, 0, 1, 0], [], []>} : vector<8x8xf32>, vector<8x8xf32>, vector<8x8xf32> -> vector<8x8xf32>
    %cst_225 = arith.constant dense<0xFF800000> : vector<8xf32>
    %506 = vector.multi_reduction <maximumf>, %505, %cst_225 [1] : vector<8x8xf32> to vector<8xf32>
    %507 = vector.shape_cast %506 : vector<8xf32> to vector<8x1xf32>
    %508 = vector.broadcast %507 : vector<8x1xf32> to vector<8x8xf32>
    %509 = arith.subf %505, %508 : vector<8x8xf32>
    %510 = math.exp %509 : vector<8x8xf32>
    %cst_226 = arith.constant dense<0.000000e+00> : vector<8xf32>
    %511 = vector.multi_reduction <add>, %510, %cst_226 [1] : vector<8x8xf32> to vector<8xf32>
    %512 = vector.shape_cast %511 : vector<8xf32> to vector<8x1xf32>
    %cst_227 = arith.constant dense<0.000000e+00> : vector<8x8xf32>
    %513 = tpu.matmul %510, %504, %cst_227 {dimension_numbers = #tpu.dot_dimension_numbers<[1], [0], [0], [1], [0, 0, 1, 1], [], []>} : vector<8x8xf32>, vector<8x8xf32>, vector<8x8xf32> -> vector<8x8xf32>
    %514 = tpu.reciprocal %512 {approx = true} : vector<8x1xf32> -> vector<8x1xf32>
    %515 = vector.broadcast %514 : vector<8x1xf32> to vector<8x8xf32>
    %516 = arith.mulf %513, %515 : vector<8x8xf32>
    %517 = tpu.concatenate %465, %482, %499, %516 in 1 : vector<8x8xf32>, vector<8x8xf32>, vector<8x8xf32>, vector<8x8xf32> -> vector<8x32xf32>
    %c0_228 = arith.constant 0 : index
    %c0_229 = arith.constant 0 : index
    %c0_230 = arith.constant 0 : index
    %518 = vector.load %arg27[%c0_228, %c0_229, %c0_230] : memref<2x32x32xf32, #tpu.memory_space<vmem>>, vector<1x32x32xf32>
    %519 = vector.shape_cast %518 : vector<1x32x32xf32> to vector<32x32xf32>
    %cst_231 = arith.constant dense<0.000000e+00> : vector<8x32xf32>
    %520 = tpu.matmul %517, %519, %cst_231 {dimension_numbers = #tpu.dot_dimension_numbers<[1], [0], [0], [1], [0, 0, 1, 1], [], []>} : vector<8x32xf32>, vector<32x32xf32>, vector<8x32xf32> -> vector<8x32xf32>
    %c0_232 = arith.constant 0 : index
    %c0_233 = arith.constant 0 : index
    %c0_234 = arith.constant 0 : index
    %521 = vector.load %arg28[%c0_232, %c0_233, %c0_234] : memref<2x1x32xf32, #tpu.memory_space<vmem>>, vector<1x1x32xf32>
    %522 = vector.shape_cast %521 : vector<1x1x32xf32> to vector<1x32xf32>
    %523 = vector.broadcast %522 : vector<1x32xf32> to vector<8x32xf32>
    %524 = arith.addf %520, %523 : vector<8x32xf32>
    %525 = arith.addf %432, %524 : vector<8x32xf32>
    %c0_235 = arith.constant 0 : index
    %c0_236 = arith.constant 0 : index
    %c0_237 = arith.constant 0 : index
    %526 = vector.load %arg29[%c0_235, %c0_236, %c0_237] : memref<2x1x32xf32, #tpu.memory_space<vmem>>, vector<1x1x32xf32>
    %527 = vector.shape_cast %526 : vector<1x1x32xf32> to vector<1x32xf32>
    %c0_238 = arith.constant 0 : index
    %c0_239 = arith.constant 0 : index
    %c0_240 = arith.constant 0 : index
    %528 = vector.load %arg30[%c0_238, %c0_239, %c0_240] : memref<2x1x32xf32, #tpu.memory_space<vmem>>, vector<1x1x32xf32>
    %529 = vector.shape_cast %528 : vector<1x1x32xf32> to vector<1x32xf32>
    %cst_241 = arith.constant dense<0.000000e+00> : vector<8xf32>
    %530 = vector.multi_reduction <add>, %525, %cst_241 [1] : vector<8x32xf32> to vector<8xf32>
    %531 = vector.shape_cast %530 : vector<8xf32> to vector<8x1xf32>
    %cst_242 = arith.constant 3.200000e+01 : f32
    %532 = vector.broadcast %cst_242 : f32 to vector<8x1xf32>
    %533 = arith.divf %531, %532 : vector<8x1xf32>
    %534 = vector.broadcast %533 : vector<8x1xf32> to vector<8x32xf32>
    %535 = arith.subf %525, %534 : vector<8x32xf32>
    %536 = arith.mulf %535, %535 : vector<8x32xf32>
    %cst_243 = arith.constant dense<0.000000e+00> : vector<8xf32>
    %537 = vector.multi_reduction <add>, %536, %cst_243 [1] : vector<8x32xf32> to vector<8xf32>
    %538 = vector.shape_cast %537 : vector<8xf32> to vector<8x1xf32>
    %cst_244 = arith.constant 3.200000e+01 : f32
    %539 = vector.broadcast %cst_244 : f32 to vector<8x1xf32>
    %540 = arith.divf %538, %539 : vector<8x1xf32>
    %541 = vector.broadcast %533 : vector<8x1xf32> to vector<8x32xf32>
    %542 = arith.subf %525, %541 : vector<8x32xf32>
    %cst_245 = arith.constant 9.99999974E-6 : f32
    %543 = vector.broadcast %cst_245 : f32 to vector<8x1xf32>
    %544 = arith.addf %540, %543 : vector<8x1xf32>
    %545 = math.rsqrt %544 : vector<8x1xf32>
    %546 = vector.broadcast %545 : vector<8x1xf32> to vector<8x32xf32>
    %547 = arith.mulf %542, %546 : vector<8x32xf32>
    %548 = vector.broadcast %527 : vector<1x32xf32> to vector<8x32xf32>
    %549 = arith.mulf %547, %548 : vector<8x32xf32>
    %550 = vector.broadcast %529 : vector<1x32xf32> to vector<8x32xf32>
    %551 = arith.addf %549, %550 : vector<8x32xf32>
    %c0_246 = arith.constant 0 : index
    %c0_247 = arith.constant 0 : index
    %c0_248 = arith.constant 0 : index
    %552 = vector.load %arg31[%c0_246, %c0_247, %c0_248] : memref<2x32x64xf32, #tpu.memory_space<vmem>>, vector<1x32x64xf32>
    %553 = vector.shape_cast %552 : vector<1x32x64xf32> to vector<32x64xf32>
    %cst_249 = arith.constant dense<0.000000e+00> : vector<8x64xf32>
    %554 = tpu.matmul %551, %553, %cst_249 {dimension_numbers = #tpu.dot_dimension_numbers<[1], [0], [0], [1], [0, 0, 1, 1], [], []>} : vector<8x32xf32>, vector<32x64xf32>, vector<8x64xf32> -> vector<8x64xf32>
    %c0_250 = arith.constant 0 : index
    %c0_251 = arith.constant 0 : index
    %c0_252 = arith.constant 0 : index
    %555 = vector.load %arg32[%c0_250, %c0_251, %c0_252] : memref<2x1x64xf32, #tpu.memory_space<vmem>>, vector<1x1x64xf32>
    %556 = vector.shape_cast %555 : vector<1x1x64xf32> to vector<1x64xf32>
    %557 = vector.broadcast %556 : vector<1x64xf32> to vector<8x64xf32>
    %558 = arith.addf %554, %557 : vector<8x64xf32>
    %cst_253 = arith.constant 0.000000e+00 : f32
    %559 = vector.broadcast %cst_253 : f32 to vector<8x64xf32>
    %560 = arith.maximumf %558, %559 : vector<8x64xf32>
    %c0_254 = arith.constant 0 : index
    %c0_255 = arith.constant 0 : index
    %c0_256 = arith.constant 0 : index
    %561 = vector.load %arg33[%c0_254, %c0_255, %c0_256] : memref<2x64x32xf32, #tpu.memory_space<vmem>>, vector<1x64x32xf32>
    %562 = vector.shape_cast %561 : vector<1x64x32xf32> to vector<64x32xf32>
    %cst_257 = arith.constant dense<0.000000e+00> : vector<8x32xf32>
    %563 = tpu.matmul %560, %562, %cst_257 {dimension_numbers = #tpu.dot_dimension_numbers<[1], [0], [0], [1], [0, 0, 1, 1], [], []>} : vector<8x64xf32>, vector<64x32xf32>, vector<8x32xf32> -> vector<8x32xf32>
    %c0_258 = arith.constant 0 : index
    %c0_259 = arith.constant 0 : index
    %c0_260 = arith.constant 0 : index
    %564 = vector.load %arg34[%c0_258, %c0_259, %c0_260] : memref<2x1x32xf32, #tpu.memory_space<vmem>>, vector<1x1x32xf32>
    %565 = vector.shape_cast %564 : vector<1x1x32xf32> to vector<1x32xf32>
    %566 = vector.broadcast %565 : vector<1x32xf32> to vector<8x32xf32>
    %567 = arith.addf %563, %566 : vector<8x32xf32>
    %568 = arith.addf %551, %567 : vector<8x32xf32>
    %c0_261 = arith.constant 0 : index
    %c0_262 = arith.constant 0 : index
    %c0_263 = arith.constant 0 : index
    %569 = vector.load %arg35[%c0_261, %c0_262, %c0_263] : memref<2x1x32xf32, #tpu.memory_space<vmem>>, vector<1x1x32xf32>
    %570 = vector.shape_cast %569 : vector<1x1x32xf32> to vector<1x32xf32>
    %c0_264 = arith.constant 0 : index
    %c0_265 = arith.constant 0 : index
    %c0_266 = arith.constant 0 : index
    %571 = vector.load %arg36[%c0_264, %c0_265, %c0_266] : memref<2x1x32xf32, #tpu.memory_space<vmem>>, vector<1x1x32xf32>
    %572 = vector.shape_cast %571 : vector<1x1x32xf32> to vector<1x32xf32>
    %cst_267 = arith.constant dense<0.000000e+00> : vector<8xf32>
    %573 = vector.multi_reduction <add>, %568, %cst_267 [1] : vector<8x32xf32> to vector<8xf32>
    %574 = vector.shape_cast %573 : vector<8xf32> to vector<8x1xf32>
    %cst_268 = arith.constant 3.200000e+01 : f32
    %575 = vector.broadcast %cst_268 : f32 to vector<8x1xf32>
    %576 = arith.divf %574, %575 : vector<8x1xf32>
    %577 = vector.broadcast %576 : vector<8x1xf32> to vector<8x32xf32>
    %578 = arith.subf %568, %577 : vector<8x32xf32>
    %579 = arith.mulf %578, %578 : vector<8x32xf32>
    %cst_269 = arith.constant dense<0.000000e+00> : vector<8xf32>
    %580 = vector.multi_reduction <add>, %579, %cst_269 [1] : vector<8x32xf32> to vector<8xf32>
    %581 = vector.shape_cast %580 : vector<8xf32> to vector<8x1xf32>
    %cst_270 = arith.constant 3.200000e+01 : f32
    %582 = vector.broadcast %cst_270 : f32 to vector<8x1xf32>
    %583 = arith.divf %581, %582 : vector<8x1xf32>
    %584 = vector.broadcast %576 : vector<8x1xf32> to vector<8x32xf32>
    %585 = arith.subf %568, %584 : vector<8x32xf32>
    %cst_271 = arith.constant 9.99999974E-6 : f32
    %586 = vector.broadcast %cst_271 : f32 to vector<8x1xf32>
    %587 = arith.addf %583, %586 : vector<8x1xf32>
    %588 = math.rsqrt %587 : vector<8x1xf32>
    %589 = vector.broadcast %588 : vector<8x1xf32> to vector<8x32xf32>
    %590 = arith.mulf %585, %589 : vector<8x32xf32>
    %591 = vector.broadcast %570 : vector<1x32xf32> to vector<8x32xf32>
    %592 = arith.mulf %590, %591 : vector<8x32xf32>
    %593 = vector.broadcast %572 : vector<1x32xf32> to vector<8x32xf32>
    %594 = arith.addf %592, %593 : vector<8x32xf32>
    %c1_272 = arith.constant 1 : index
    %c0_273 = arith.constant 0 : index
    %c0_274 = arith.constant 0 : index
    %595 = vector.load %arg17[%c1_272, %c0_273, %c0_274] : memref<2x32x96xf32, #tpu.memory_space<vmem>>, vector<1x32x96xf32>
    %596 = vector.shape_cast %595 : vector<1x32x96xf32> to vector<32x96xf32>
    %cst_275 = arith.constant dense<0.000000e+00> : vector<8x96xf32>
    %597 = tpu.matmul %594, %596, %cst_275 {dimension_numbers = #tpu.dot_dimension_numbers<[1], [0], [0], [1], [0, 0, 1, 1], [], []>} : vector<8x32xf32>, vector<32x96xf32>, vector<8x96xf32> -> vector<8x96xf32>
    %c1_276 = arith.constant 1 : index
    %c0_277 = arith.constant 0 : index
    %c0_278 = arith.constant 0 : index
    %598 = vector.load %arg18[%c1_276, %c0_277, %c0_278] : memref<2x1x96xf32, #tpu.memory_space<vmem>>, vector<1x1x96xf32>
    %599 = vector.shape_cast %598 : vector<1x1x96xf32> to vector<1x96xf32>
    %600 = vector.broadcast %599 : vector<1x96xf32> to vector<8x96xf32>
    %601 = arith.addf %597, %600 : vector<8x96xf32>
    %602 = vector.extract_strided_slice %601 {offsets = [0, 0], sizes = [8, 32], strides = [1, 1]} : vector<8x96xf32> to vector<8x32xf32>
    %603 = vector.extract_strided_slice %601 {offsets = [0, 32], sizes = [8, 32], strides = [1, 1]} : vector<8x96xf32> to vector<8x32xf32>
    %604 = vector.extract_strided_slice %601 {offsets = [0, 64], sizes = [8, 32], strides = [1, 1]} : vector<8x96xf32> to vector<8x32xf32>
    %605 = vector.extract_strided_slice %602 {offsets = [0, 0], sizes = [8, 8], strides = [1, 1]} : vector<8x32xf32> to vector<8x8xf32>
    %cst_279 = arith.constant 0.353553385 : f32
    %606 = vector.broadcast %cst_279 : f32 to vector<8x8xf32>
    %607 = arith.mulf %605, %606 : vector<8x8xf32>
    %608 = vector.extract_strided_slice %603 {offsets = [0, 0], sizes = [8, 8], strides = [1, 1]} : vector<8x32xf32> to vector<8x8xf32>
    %609 = vector.extract_strided_slice %604 {offsets = [0, 0], sizes = [8, 8], strides = [1, 1]} : vector<8x32xf32> to vector<8x8xf32>
    %cst_280 = arith.constant dense<0.000000e+00> : vector<8x8xf32>
    %610 = tpu.matmul %607, %608, %cst_280 {dimension_numbers = #tpu.dot_dimension_numbers<[1], [1], [0], [0], [0, 0, 1, 0], [], []>} : vector<8x8xf32>, vector<8x8xf32>, vector<8x8xf32> -> vector<8x8xf32>
    %cst_281 = arith.constant dense<0xFF800000> : vector<8xf32>
    %611 = vector.multi_reduction <maximumf>, %610, %cst_281 [1] : vector<8x8xf32> to vector<8xf32>
    %612 = vector.shape_cast %611 : vector<8xf32> to vector<8x1xf32>
    %613 = vector.broadcast %612 : vector<8x1xf32> to vector<8x8xf32>
    %614 = arith.subf %610, %613 : vector<8x8xf32>
    %615 = math.exp %614 : vector<8x8xf32>
    %cst_282 = arith.constant dense<0.000000e+00> : vector<8xf32>
    %616 = vector.multi_reduction <add>, %615, %cst_282 [1] : vector<8x8xf32> to vector<8xf32>
    %617 = vector.shape_cast %616 : vector<8xf32> to vector<8x1xf32>
    %cst_283 = arith.constant dense<0.000000e+00> : vector<8x8xf32>
    %618 = tpu.matmul %615, %609, %cst_283 {dimension_numbers = #tpu.dot_dimension_numbers<[1], [0], [0], [1], [0, 0, 1, 1], [], []>} : vector<8x8xf32>, vector<8x8xf32>, vector<8x8xf32> -> vector<8x8xf32>
    %619 = tpu.reciprocal %617 {approx = true} : vector<8x1xf32> -> vector<8x1xf32>
    %620 = vector.broadcast %619 : vector<8x1xf32> to vector<8x8xf32>
    %621 = arith.mulf %618, %620 : vector<8x8xf32>
    %622 = vector.extract_strided_slice %602 {offsets = [0, 8], sizes = [8, 8], strides = [1, 1]} : vector<8x32xf32> to vector<8x8xf32>
    %cst_284 = arith.constant 0.353553385 : f32
    %623 = vector.broadcast %cst_284 : f32 to vector<8x8xf32>
    %624 = arith.mulf %622, %623 : vector<8x8xf32>
    %625 = vector.extract_strided_slice %603 {offsets = [0, 8], sizes = [8, 8], strides = [1, 1]} : vector<8x32xf32> to vector<8x8xf32>
    %626 = vector.extract_strided_slice %604 {offsets = [0, 8], sizes = [8, 8], strides = [1, 1]} : vector<8x32xf32> to vector<8x8xf32>
    %cst_285 = arith.constant dense<0.000000e+00> : vector<8x8xf32>
    %627 = tpu.matmul %624, %625, %cst_285 {dimension_numbers = #tpu.dot_dimension_numbers<[1], [1], [0], [0], [0, 0, 1, 0], [], []>} : vector<8x8xf32>, vector<8x8xf32>, vector<8x8xf32> -> vector<8x8xf32>
    %cst_286 = arith.constant dense<0xFF800000> : vector<8xf32>
    %628 = vector.multi_reduction <maximumf>, %627, %cst_286 [1] : vector<8x8xf32> to vector<8xf32>
    %629 = vector.shape_cast %628 : vector<8xf32> to vector<8x1xf32>
    %630 = vector.broadcast %629 : vector<8x1xf32> to vector<8x8xf32>
    %631 = arith.subf %627, %630 : vector<8x8xf32>
    %632 = math.exp %631 : vector<8x8xf32>
    %cst_287 = arith.constant dense<0.000000e+00> : vector<8xf32>
    %633 = vector.multi_reduction <add>, %632, %cst_287 [1] : vector<8x8xf32> to vector<8xf32>
    %634 = vector.shape_cast %633 : vector<8xf32> to vector<8x1xf32>
    %cst_288 = arith.constant dense<0.000000e+00> : vector<8x8xf32>
    %635 = tpu.matmul %632, %626, %cst_288 {dimension_numbers = #tpu.dot_dimension_numbers<[1], [0], [0], [1], [0, 0, 1, 1], [], []>} : vector<8x8xf32>, vector<8x8xf32>, vector<8x8xf32> -> vector<8x8xf32>
    %636 = tpu.reciprocal %634 {approx = true} : vector<8x1xf32> -> vector<8x1xf32>
    %637 = vector.broadcast %636 : vector<8x1xf32> to vector<8x8xf32>
    %638 = arith.mulf %635, %637 : vector<8x8xf32>
    %639 = vector.extract_strided_slice %602 {offsets = [0, 16], sizes = [8, 8], strides = [1, 1]} : vector<8x32xf32> to vector<8x8xf32>
    %cst_289 = arith.constant 0.353553385 : f32
    %640 = vector.broadcast %cst_289 : f32 to vector<8x8xf32>
    %641 = arith.mulf %639, %640 : vector<8x8xf32>
    %642 = vector.extract_strided_slice %603 {offsets = [0, 16], sizes = [8, 8], strides = [1, 1]} : vector<8x32xf32> to vector<8x8xf32>
    %643 = vector.extract_strided_slice %604 {offsets = [0, 16], sizes = [8, 8], strides = [1, 1]} : vector<8x32xf32> to vector<8x8xf32>
    %cst_290 = arith.constant dense<0.000000e+00> : vector<8x8xf32>
    %644 = tpu.matmul %641, %642, %cst_290 {dimension_numbers = #tpu.dot_dimension_numbers<[1], [1], [0], [0], [0, 0, 1, 0], [], []>} : vector<8x8xf32>, vector<8x8xf32>, vector<8x8xf32> -> vector<8x8xf32>
    %cst_291 = arith.constant dense<0xFF800000> : vector<8xf32>
    %645 = vector.multi_reduction <maximumf>, %644, %cst_291 [1] : vector<8x8xf32> to vector<8xf32>
    %646 = vector.shape_cast %645 : vector<8xf32> to vector<8x1xf32>
    %647 = vector.broadcast %646 : vector<8x1xf32> to vector<8x8xf32>
    %648 = arith.subf %644, %647 : vector<8x8xf32>
    %649 = math.exp %648 : vector<8x8xf32>
    %cst_292 = arith.constant dense<0.000000e+00> : vector<8xf32>
    %650 = vector.multi_reduction <add>, %649, %cst_292 [1] : vector<8x8xf32> to vector<8xf32>
    %651 = vector.shape_cast %650 : vector<8xf32> to vector<8x1xf32>
    %cst_293 = arith.constant dense<0.000000e+00> : vector<8x8xf32>
    %652 = tpu.matmul %649, %643, %cst_293 {dimension_numbers = #tpu.dot_dimension_numbers<[1], [0], [0], [1], [0, 0, 1, 1], [], []>} : vector<8x8xf32>, vector<8x8xf32>, vector<8x8xf32> -> vector<8x8xf32>
    %653 = tpu.reciprocal %651 {approx = true} : vector<8x1xf32> -> vector<8x1xf32>
    %654 = vector.broadcast %653 : vector<8x1xf32> to vector<8x8xf32>
    %655 = arith.mulf %652, %654 : vector<8x8xf32>
    %656 = vector.extract_strided_slice %602 {offsets = [0, 24], sizes = [8, 8], strides = [1, 1]} : vector<8x32xf32> to vector<8x8xf32>
    %cst_294 = arith.constant 0.353553385 : f32
    %657 = vector.broadcast %cst_294 : f32 to vector<8x8xf32>
    %658 = arith.mulf %656, %657 : vector<8x8xf32>
    %659 = vector.extract_strided_slice %603 {offsets = [0, 24], sizes = [8, 8], strides = [1, 1]} : vector<8x32xf32> to vector<8x8xf32>
    %660 = vector.extract_strided_slice %604 {offsets = [0, 24], sizes = [8, 8], strides = [1, 1]} : vector<8x32xf32> to vector<8x8xf32>
    %cst_295 = arith.constant dense<0.000000e+00> : vector<8x8xf32>
    %661 = tpu.matmul %658, %659, %cst_295 {dimension_numbers = #tpu.dot_dimension_numbers<[1], [1], [0], [0], [0, 0, 1, 0], [], []>} : vector<8x8xf32>, vector<8x8xf32>, vector<8x8xf32> -> vector<8x8xf32>
    %cst_296 = arith.constant dense<0xFF800000> : vector<8xf32>
    %662 = vector.multi_reduction <maximumf>, %661, %cst_296 [1] : vector<8x8xf32> to vector<8xf32>
    %663 = vector.shape_cast %662 : vector<8xf32> to vector<8x1xf32>
    %664 = vector.broadcast %663 : vector<8x1xf32> to vector<8x8xf32>
    %665 = arith.subf %661, %664 : vector<8x8xf32>
    %666 = math.exp %665 : vector<8x8xf32>
    %cst_297 = arith.constant dense<0.000000e+00> : vector<8xf32>
    %667 = vector.multi_reduction <add>, %666, %cst_297 [1] : vector<8x8xf32> to vector<8xf32>
    %668 = vector.shape_cast %667 : vector<8xf32> to vector<8x1xf32>
    %cst_298 = arith.constant dense<0.000000e+00> : vector<8x8xf32>
    %669 = tpu.matmul %666, %660, %cst_298 {dimension_numbers = #tpu.dot_dimension_numbers<[1], [0], [0], [1], [0, 0, 1, 1], [], []>} : vector<8x8xf32>, vector<8x8xf32>, vector<8x8xf32> -> vector<8x8xf32>
    %670 = tpu.reciprocal %668 {approx = true} : vector<8x1xf32> -> vector<8x1xf32>
    %671 = vector.broadcast %670 : vector<8x1xf32> to vector<8x8xf32>
    %672 = arith.mulf %669, %671 : vector<8x8xf32>
    %673 = tpu.concatenate %621, %638, %655, %672 in 1 : vector<8x8xf32>, vector<8x8xf32>, vector<8x8xf32>, vector<8x8xf32> -> vector<8x32xf32>
    %c1_299 = arith.constant 1 : index
    %c0_300 = arith.constant 0 : index
    %c0_301 = arith.constant 0 : index
    %674 = vector.load %arg19[%c1_299, %c0_300, %c0_301] : memref<2x32x32xf32, #tpu.memory_space<vmem>>, vector<1x32x32xf32>
    %675 = vector.shape_cast %674 : vector<1x32x32xf32> to vector<32x32xf32>
    %cst_302 = arith.constant dense<0.000000e+00> : vector<8x32xf32>
    %676 = tpu.matmul %673, %675, %cst_302 {dimension_numbers = #tpu.dot_dimension_numbers<[1], [0], [0], [1], [0, 0, 1, 1], [], []>} : vector<8x32xf32>, vector<32x32xf32>, vector<8x32xf32> -> vector<8x32xf32>
    %c1_303 = arith.constant 1 : index
    %c0_304 = arith.constant 0 : index
    %c0_305 = arith.constant 0 : index
    %677 = vector.load %arg20[%c1_303, %c0_304, %c0_305] : memref<2x1x32xf32, #tpu.memory_space<vmem>>, vector<1x1x32xf32>
    %678 = vector.shape_cast %677 : vector<1x1x32xf32> to vector<1x32xf32>
    %679 = vector.broadcast %678 : vector<1x32xf32> to vector<8x32xf32>
    %680 = arith.addf %676, %679 : vector<8x32xf32>
    %681 = arith.addf %594, %680 : vector<8x32xf32>
    %c1_306 = arith.constant 1 : index
    %c0_307 = arith.constant 0 : index
    %c0_308 = arith.constant 0 : index
    %682 = vector.load %arg21[%c1_306, %c0_307, %c0_308] : memref<2x1x32xf32, #tpu.memory_space<vmem>>, vector<1x1x32xf32>
    %683 = vector.shape_cast %682 : vector<1x1x32xf32> to vector<1x32xf32>
    %c1_309 = arith.constant 1 : index
    %c0_310 = arith.constant 0 : index
    %c0_311 = arith.constant 0 : index
    %684 = vector.load %arg22[%c1_309, %c0_310, %c0_311] : memref<2x1x32xf32, #tpu.memory_space<vmem>>, vector<1x1x32xf32>
    %685 = vector.shape_cast %684 : vector<1x1x32xf32> to vector<1x32xf32>
    %cst_312 = arith.constant dense<0.000000e+00> : vector<8xf32>
    %686 = vector.multi_reduction <add>, %681, %cst_312 [1] : vector<8x32xf32> to vector<8xf32>
    %687 = vector.shape_cast %686 : vector<8xf32> to vector<8x1xf32>
    %cst_313 = arith.constant 3.200000e+01 : f32
    %688 = vector.broadcast %cst_313 : f32 to vector<8x1xf32>
    %689 = arith.divf %687, %688 : vector<8x1xf32>
    %690 = vector.broadcast %689 : vector<8x1xf32> to vector<8x32xf32>
    %691 = arith.subf %681, %690 : vector<8x32xf32>
    %692 = arith.mulf %691, %691 : vector<8x32xf32>
    %cst_314 = arith.constant dense<0.000000e+00> : vector<8xf32>
    %693 = vector.multi_reduction <add>, %692, %cst_314 [1] : vector<8x32xf32> to vector<8xf32>
    %694 = vector.shape_cast %693 : vector<8xf32> to vector<8x1xf32>
    %cst_315 = arith.constant 3.200000e+01 : f32
    %695 = vector.broadcast %cst_315 : f32 to vector<8x1xf32>
    %696 = arith.divf %694, %695 : vector<8x1xf32>
    %697 = vector.broadcast %689 : vector<8x1xf32> to vector<8x32xf32>
    %698 = arith.subf %681, %697 : vector<8x32xf32>
    %cst_316 = arith.constant 9.99999974E-6 : f32
    %699 = vector.broadcast %cst_316 : f32 to vector<8x1xf32>
    %700 = arith.addf %696, %699 : vector<8x1xf32>
    %701 = math.rsqrt %700 : vector<8x1xf32>
    %702 = vector.broadcast %701 : vector<8x1xf32> to vector<8x32xf32>
    %703 = arith.mulf %698, %702 : vector<8x32xf32>
    %704 = vector.broadcast %683 : vector<1x32xf32> to vector<8x32xf32>
    %705 = arith.mulf %703, %704 : vector<8x32xf32>
    %706 = vector.broadcast %685 : vector<1x32xf32> to vector<8x32xf32>
    %707 = arith.addf %705, %706 : vector<8x32xf32>
    %c1_317 = arith.constant 1 : index
    %c0_318 = arith.constant 0 : index
    %c0_319 = arith.constant 0 : index
    %708 = vector.load %arg23[%c1_317, %c0_318, %c0_319] : memref<2x32x32xf32, #tpu.memory_space<vmem>>, vector<1x32x32xf32>
    %709 = vector.shape_cast %708 : vector<1x32x32xf32> to vector<32x32xf32>
    %cst_320 = arith.constant dense<0.000000e+00> : vector<8x32xf32>
    %710 = tpu.matmul %707, %709, %cst_320 {dimension_numbers = #tpu.dot_dimension_numbers<[1], [0], [0], [1], [0, 0, 1, 1], [], []>} : vector<8x32xf32>, vector<32x32xf32>, vector<8x32xf32> -> vector<8x32xf32>
    %c1_321 = arith.constant 1 : index
    %c0_322 = arith.constant 0 : index
    %c0_323 = arith.constant 0 : index
    %711 = vector.load %arg24[%c1_321, %c0_322, %c0_323] : memref<2x1x32xf32, #tpu.memory_space<vmem>>, vector<1x1x32xf32>
    %712 = vector.shape_cast %711 : vector<1x1x32xf32> to vector<1x32xf32>
    %713 = vector.broadcast %712 : vector<1x32xf32> to vector<8x32xf32>
    %714 = arith.addf %710, %713 : vector<8x32xf32>
    %c1_324 = arith.constant 1 : index
    %c0_325 = arith.constant 0 : index
    %c0_326 = arith.constant 0 : index
    %715 = vector.load %arg25[%c1_324, %c0_325, %c0_326] : memref<2x32x64xf32, #tpu.memory_space<vmem>>, vector<1x32x64xf32>
    %716 = vector.shape_cast %715 : vector<1x32x64xf32> to vector<32x64xf32>
    %cst_327 = arith.constant dense<0.000000e+00> : vector<8x64xf32>
    %717 = tpu.matmul %315, %716, %cst_327 {dimension_numbers = #tpu.dot_dimension_numbers<[1], [0], [0], [1], [0, 0, 1, 1], [], []>} : vector<8x32xf32>, vector<32x64xf32>, vector<8x64xf32> -> vector<8x64xf32>
    %c1_328 = arith.constant 1 : index
    %c0_329 = arith.constant 0 : index
    %c0_330 = arith.constant 0 : index
    %718 = vector.load %arg26[%c1_328, %c0_329, %c0_330] : memref<2x1x64xf32, #tpu.memory_space<vmem>>, vector<1x1x64xf32>
    %719 = vector.shape_cast %718 : vector<1x1x64xf32> to vector<1x64xf32>
    %720 = vector.broadcast %719 : vector<1x64xf32> to vector<8x64xf32>
    %721 = arith.addf %717, %720 : vector<8x64xf32>
    %722 = vector.extract_strided_slice %721 {offsets = [0, 0], sizes = [8, 32], strides = [1, 1]} : vector<8x64xf32> to vector<8x32xf32>
    %723 = vector.extract_strided_slice %721 {offsets = [0, 32], sizes = [8, 32], strides = [1, 1]} : vector<8x64xf32> to vector<8x32xf32>
    %724 = vector.extract_strided_slice %714 {offsets = [0, 0], sizes = [8, 8], strides = [1, 1]} : vector<8x32xf32> to vector<8x8xf32>
    %cst_331 = arith.constant 0.353553385 : f32
    %725 = vector.broadcast %cst_331 : f32 to vector<8x8xf32>
    %726 = arith.mulf %724, %725 : vector<8x8xf32>
    %727 = vector.extract_strided_slice %722 {offsets = [0, 0], sizes = [8, 8], strides = [1, 1]} : vector<8x32xf32> to vector<8x8xf32>
    %728 = vector.extract_strided_slice %723 {offsets = [0, 0], sizes = [8, 8], strides = [1, 1]} : vector<8x32xf32> to vector<8x8xf32>
    %cst_332 = arith.constant dense<0.000000e+00> : vector<8x8xf32>
    %729 = tpu.matmul %726, %727, %cst_332 {dimension_numbers = #tpu.dot_dimension_numbers<[1], [1], [0], [0], [0, 0, 1, 0], [], []>} : vector<8x8xf32>, vector<8x8xf32>, vector<8x8xf32> -> vector<8x8xf32>
    %cst_333 = arith.constant dense<0xFF800000> : vector<8xf32>
    %730 = vector.multi_reduction <maximumf>, %729, %cst_333 [1] : vector<8x8xf32> to vector<8xf32>
    %731 = vector.shape_cast %730 : vector<8xf32> to vector<8x1xf32>
    %732 = vector.broadcast %731 : vector<8x1xf32> to vector<8x8xf32>
    %733 = arith.subf %729, %732 : vector<8x8xf32>
    %734 = math.exp %733 : vector<8x8xf32>
    %cst_334 = arith.constant dense<0.000000e+00> : vector<8xf32>
    %735 = vector.multi_reduction <add>, %734, %cst_334 [1] : vector<8x8xf32> to vector<8xf32>
    %736 = vector.shape_cast %735 : vector<8xf32> to vector<8x1xf32>
    %cst_335 = arith.constant dense<0.000000e+00> : vector<8x8xf32>
    %737 = tpu.matmul %734, %728, %cst_335 {dimension_numbers = #tpu.dot_dimension_numbers<[1], [0], [0], [1], [0, 0, 1, 1], [], []>} : vector<8x8xf32>, vector<8x8xf32>, vector<8x8xf32> -> vector<8x8xf32>
    %738 = tpu.reciprocal %736 {approx = true} : vector<8x1xf32> -> vector<8x1xf32>
    %739 = vector.broadcast %738 : vector<8x1xf32> to vector<8x8xf32>
    %740 = arith.mulf %737, %739 : vector<8x8xf32>
    %741 = vector.extract_strided_slice %714 {offsets = [0, 8], sizes = [8, 8], strides = [1, 1]} : vector<8x32xf32> to vector<8x8xf32>
    %cst_336 = arith.constant 0.353553385 : f32
    %742 = vector.broadcast %cst_336 : f32 to vector<8x8xf32>
    %743 = arith.mulf %741, %742 : vector<8x8xf32>
    %744 = vector.extract_strided_slice %722 {offsets = [0, 8], sizes = [8, 8], strides = [1, 1]} : vector<8x32xf32> to vector<8x8xf32>
    %745 = vector.extract_strided_slice %723 {offsets = [0, 8], sizes = [8, 8], strides = [1, 1]} : vector<8x32xf32> to vector<8x8xf32>
    %cst_337 = arith.constant dense<0.000000e+00> : vector<8x8xf32>
    %746 = tpu.matmul %743, %744, %cst_337 {dimension_numbers = #tpu.dot_dimension_numbers<[1], [1], [0], [0], [0, 0, 1, 0], [], []>} : vector<8x8xf32>, vector<8x8xf32>, vector<8x8xf32> -> vector<8x8xf32>
    %cst_338 = arith.constant dense<0xFF800000> : vector<8xf32>
    %747 = vector.multi_reduction <maximumf>, %746, %cst_338 [1] : vector<8x8xf32> to vector<8xf32>
    %748 = vector.shape_cast %747 : vector<8xf32> to vector<8x1xf32>
    %749 = vector.broadcast %748 : vector<8x1xf32> to vector<8x8xf32>
    %750 = arith.subf %746, %749 : vector<8x8xf32>
    %751 = math.exp %750 : vector<8x8xf32>
    %cst_339 = arith.constant dense<0.000000e+00> : vector<8xf32>
    %752 = vector.multi_reduction <add>, %751, %cst_339 [1] : vector<8x8xf32> to vector<8xf32>
    %753 = vector.shape_cast %752 : vector<8xf32> to vector<8x1xf32>
    %cst_340 = arith.constant dense<0.000000e+00> : vector<8x8xf32>
    %754 = tpu.matmul %751, %745, %cst_340 {dimension_numbers = #tpu.dot_dimension_numbers<[1], [0], [0], [1], [0, 0, 1, 1], [], []>} : vector<8x8xf32>, vector<8x8xf32>, vector<8x8xf32> -> vector<8x8xf32>
    %755 = tpu.reciprocal %753 {approx = true} : vector<8x1xf32> -> vector<8x1xf32>
    %756 = vector.broadcast %755 : vector<8x1xf32> to vector<8x8xf32>
    %757 = arith.mulf %754, %756 : vector<8x8xf32>
    %758 = vector.extract_strided_slice %714 {offsets = [0, 16], sizes = [8, 8], strides = [1, 1]} : vector<8x32xf32> to vector<8x8xf32>
    %cst_341 = arith.constant 0.353553385 : f32
    %759 = vector.broadcast %cst_341 : f32 to vector<8x8xf32>
    %760 = arith.mulf %758, %759 : vector<8x8xf32>
    %761 = vector.extract_strided_slice %722 {offsets = [0, 16], sizes = [8, 8], strides = [1, 1]} : vector<8x32xf32> to vector<8x8xf32>
    %762 = vector.extract_strided_slice %723 {offsets = [0, 16], sizes = [8, 8], strides = [1, 1]} : vector<8x32xf32> to vector<8x8xf32>
    %cst_342 = arith.constant dense<0.000000e+00> : vector<8x8xf32>
    %763 = tpu.matmul %760, %761, %cst_342 {dimension_numbers = #tpu.dot_dimension_numbers<[1], [1], [0], [0], [0, 0, 1, 0], [], []>} : vector<8x8xf32>, vector<8x8xf32>, vector<8x8xf32> -> vector<8x8xf32>
    %cst_343 = arith.constant dense<0xFF800000> : vector<8xf32>
    %764 = vector.multi_reduction <maximumf>, %763, %cst_343 [1] : vector<8x8xf32> to vector<8xf32>
    %765 = vector.shape_cast %764 : vector<8xf32> to vector<8x1xf32>
    %766 = vector.broadcast %765 : vector<8x1xf32> to vector<8x8xf32>
    %767 = arith.subf %763, %766 : vector<8x8xf32>
    %768 = math.exp %767 : vector<8x8xf32>
    %cst_344 = arith.constant dense<0.000000e+00> : vector<8xf32>
    %769 = vector.multi_reduction <add>, %768, %cst_344 [1] : vector<8x8xf32> to vector<8xf32>
    %770 = vector.shape_cast %769 : vector<8xf32> to vector<8x1xf32>
    %cst_345 = arith.constant dense<0.000000e+00> : vector<8x8xf32>
    %771 = tpu.matmul %768, %762, %cst_345 {dimension_numbers = #tpu.dot_dimension_numbers<[1], [0], [0], [1], [0, 0, 1, 1], [], []>} : vector<8x8xf32>, vector<8x8xf32>, vector<8x8xf32> -> vector<8x8xf32>
    %772 = tpu.reciprocal %770 {approx = true} : vector<8x1xf32> -> vector<8x1xf32>
    %773 = vector.broadcast %772 : vector<8x1xf32> to vector<8x8xf32>
    %774 = arith.mulf %771, %773 : vector<8x8xf32>
    %775 = vector.extract_strided_slice %714 {offsets = [0, 24], sizes = [8, 8], strides = [1, 1]} : vector<8x32xf32> to vector<8x8xf32>
    %cst_346 = arith.constant 0.353553385 : f32
    %776 = vector.broadcast %cst_346 : f32 to vector<8x8xf32>
    %777 = arith.mulf %775, %776 : vector<8x8xf32>
    %778 = vector.extract_strided_slice %722 {offsets = [0, 24], sizes = [8, 8], strides = [1, 1]} : vector<8x32xf32> to vector<8x8xf32>
    %779 = vector.extract_strided_slice %723 {offsets = [0, 24], sizes = [8, 8], strides = [1, 1]} : vector<8x32xf32> to vector<8x8xf32>
    %cst_347 = arith.constant dense<0.000000e+00> : vector<8x8xf32>
    %780 = tpu.matmul %777, %778, %cst_347 {dimension_numbers = #tpu.dot_dimension_numbers<[1], [1], [0], [0], [0, 0, 1, 0], [], []>} : vector<8x8xf32>, vector<8x8xf32>, vector<8x8xf32> -> vector<8x8xf32>
    %cst_348 = arith.constant dense<0xFF800000> : vector<8xf32>
    %781 = vector.multi_reduction <maximumf>, %780, %cst_348 [1] : vector<8x8xf32> to vector<8xf32>
    %782 = vector.shape_cast %781 : vector<8xf32> to vector<8x1xf32>
    %783 = vector.broadcast %782 : vector<8x1xf32> to vector<8x8xf32>
    %784 = arith.subf %780, %783 : vector<8x8xf32>
    %785 = math.exp %784 : vector<8x8xf32>
    %cst_349 = arith.constant dense<0.000000e+00> : vector<8xf32>
    %786 = vector.multi_reduction <add>, %785, %cst_349 [1] : vector<8x8xf32> to vector<8xf32>
    %787 = vector.shape_cast %786 : vector<8xf32> to vector<8x1xf32>
    %cst_350 = arith.constant dense<0.000000e+00> : vector<8x8xf32>
    %788 = tpu.matmul %785, %779, %cst_350 {dimension_numbers = #tpu.dot_dimension_numbers<[1], [0], [0], [1], [0, 0, 1, 1], [], []>} : vector<8x8xf32>, vector<8x8xf32>, vector<8x8xf32> -> vector<8x8xf32>
    %789 = tpu.reciprocal %787 {approx = true} : vector<8x1xf32> -> vector<8x1xf32>
    %790 = vector.broadcast %789 : vector<8x1xf32> to vector<8x8xf32>
    %791 = arith.mulf %788, %790 : vector<8x8xf32>
    %792 = tpu.concatenate %740, %757, %774, %791 in 1 : vector<8x8xf32>, vector<8x8xf32>, vector<8x8xf32>, vector<8x8xf32> -> vector<8x32xf32>
    %c1_351 = arith.constant 1 : index
    %c0_352 = arith.constant 0 : index
    %c0_353 = arith.constant 0 : index
    %793 = vector.load %arg27[%c1_351, %c0_352, %c0_353] : memref<2x32x32xf32, #tpu.memory_space<vmem>>, vector<1x32x32xf32>
    %794 = vector.shape_cast %793 : vector<1x32x32xf32> to vector<32x32xf32>
    %cst_354 = arith.constant dense<0.000000e+00> : vector<8x32xf32>
    %795 = tpu.matmul %792, %794, %cst_354 {dimension_numbers = #tpu.dot_dimension_numbers<[1], [0], [0], [1], [0, 0, 1, 1], [], []>} : vector<8x32xf32>, vector<32x32xf32>, vector<8x32xf32> -> vector<8x32xf32>
    %c1_355 = arith.constant 1 : index
    %c0_356 = arith.constant 0 : index
    %c0_357 = arith.constant 0 : index
    %796 = vector.load %arg28[%c1_355, %c0_356, %c0_357] : memref<2x1x32xf32, #tpu.memory_space<vmem>>, vector<1x1x32xf32>
    %797 = vector.shape_cast %796 : vector<1x1x32xf32> to vector<1x32xf32>
    %798 = vector.broadcast %797 : vector<1x32xf32> to vector<8x32xf32>
    %799 = arith.addf %795, %798 : vector<8x32xf32>
    %800 = arith.addf %707, %799 : vector<8x32xf32>
    %c1_358 = arith.constant 1 : index
    %c0_359 = arith.constant 0 : index
    %c0_360 = arith.constant 0 : index
    %801 = vector.load %arg29[%c1_358, %c0_359, %c0_360] : memref<2x1x32xf32, #tpu.memory_space<vmem>>, vector<1x1x32xf32>
    %802 = vector.shape_cast %801 : vector<1x1x32xf32> to vector<1x32xf32>
    %c1_361 = arith.constant 1 : index
    %c0_362 = arith.constant 0 : index
    %c0_363 = arith.constant 0 : index
    %803 = vector.load %arg30[%c1_361, %c0_362, %c0_363] : memref<2x1x32xf32, #tpu.memory_space<vmem>>, vector<1x1x32xf32>
    %804 = vector.shape_cast %803 : vector<1x1x32xf32> to vector<1x32xf32>
    %cst_364 = arith.constant dense<0.000000e+00> : vector<8xf32>
    %805 = vector.multi_reduction <add>, %800, %cst_364 [1] : vector<8x32xf32> to vector<8xf32>
    %806 = vector.shape_cast %805 : vector<8xf32> to vector<8x1xf32>
    %cst_365 = arith.constant 3.200000e+01 : f32
    %807 = vector.broadcast %cst_365 : f32 to vector<8x1xf32>
    %808 = arith.divf %806, %807 : vector<8x1xf32>
    %809 = vector.broadcast %808 : vector<8x1xf32> to vector<8x32xf32>
    %810 = arith.subf %800, %809 : vector<8x32xf32>
    %811 = arith.mulf %810, %810 : vector<8x32xf32>
    %cst_366 = arith.constant dense<0.000000e+00> : vector<8xf32>
    %812 = vector.multi_reduction <add>, %811, %cst_366 [1] : vector<8x32xf32> to vector<8xf32>
    %813 = vector.shape_cast %812 : vector<8xf32> to vector<8x1xf32>
    %cst_367 = arith.constant 3.200000e+01 : f32
    %814 = vector.broadcast %cst_367 : f32 to vector<8x1xf32>
    %815 = arith.divf %813, %814 : vector<8x1xf32>
    %816 = vector.broadcast %808 : vector<8x1xf32> to vector<8x32xf32>
    %817 = arith.subf %800, %816 : vector<8x32xf32>
    %cst_368 = arith.constant 9.99999974E-6 : f32
    %818 = vector.broadcast %cst_368 : f32 to vector<8x1xf32>
    %819 = arith.addf %815, %818 : vector<8x1xf32>
    %820 = math.rsqrt %819 : vector<8x1xf32>
    %821 = vector.broadcast %820 : vector<8x1xf32> to vector<8x32xf32>
    %822 = arith.mulf %817, %821 : vector<8x32xf32>
    %823 = vector.broadcast %802 : vector<1x32xf32> to vector<8x32xf32>
    %824 = arith.mulf %822, %823 : vector<8x32xf32>
    %825 = vector.broadcast %804 : vector<1x32xf32> to vector<8x32xf32>
    %826 = arith.addf %824, %825 : vector<8x32xf32>
    %c1_369 = arith.constant 1 : index
    %c0_370 = arith.constant 0 : index
    %c0_371 = arith.constant 0 : index
    %827 = vector.load %arg31[%c1_369, %c0_370, %c0_371] : memref<2x32x64xf32, #tpu.memory_space<vmem>>, vector<1x32x64xf32>
    %828 = vector.shape_cast %827 : vector<1x32x64xf32> to vector<32x64xf32>
    %cst_372 = arith.constant dense<0.000000e+00> : vector<8x64xf32>
    %829 = tpu.matmul %826, %828, %cst_372 {dimension_numbers = #tpu.dot_dimension_numbers<[1], [0], [0], [1], [0, 0, 1, 1], [], []>} : vector<8x32xf32>, vector<32x64xf32>, vector<8x64xf32> -> vector<8x64xf32>
    %c1_373 = arith.constant 1 : index
    %c0_374 = arith.constant 0 : index
    %c0_375 = arith.constant 0 : index
    %830 = vector.load %arg32[%c1_373, %c0_374, %c0_375] : memref<2x1x64xf32, #tpu.memory_space<vmem>>, vector<1x1x64xf32>
    %831 = vector.shape_cast %830 : vector<1x1x64xf32> to vector<1x64xf32>
    %832 = vector.broadcast %831 : vector<1x64xf32> to vector<8x64xf32>
    %833 = arith.addf %829, %832 : vector<8x64xf32>
    %cst_376 = arith.constant 0.000000e+00 : f32
    %834 = vector.broadcast %cst_376 : f32 to vector<8x64xf32>
    %835 = arith.maximumf %833, %834 : vector<8x64xf32>
    %c1_377 = arith.constant 1 : index
    %c0_378 = arith.constant 0 : index
    %c0_379 = arith.constant 0 : index
    %836 = vector.load %arg33[%c1_377, %c0_378, %c0_379] : memref<2x64x32xf32, #tpu.memory_space<vmem>>, vector<1x64x32xf32>
    %837 = vector.shape_cast %836 : vector<1x64x32xf32> to vector<64x32xf32>
    %cst_380 = arith.constant dense<0.000000e+00> : vector<8x32xf32>
    %838 = tpu.matmul %835, %837, %cst_380 {dimension_numbers = #tpu.dot_dimension_numbers<[1], [0], [0], [1], [0, 0, 1, 1], [], []>} : vector<8x64xf32>, vector<64x32xf32>, vector<8x32xf32> -> vector<8x32xf32>
    %c1_381 = arith.constant 1 : index
    %c0_382 = arith.constant 0 : index
    %c0_383 = arith.constant 0 : index
    %839 = vector.load %arg34[%c1_381, %c0_382, %c0_383] : memref<2x1x32xf32, #tpu.memory_space<vmem>>, vector<1x1x32xf32>
    %840 = vector.shape_cast %839 : vector<1x1x32xf32> to vector<1x32xf32>
    %841 = vector.broadcast %840 : vector<1x32xf32> to vector<8x32xf32>
    %842 = arith.addf %838, %841 : vector<8x32xf32>
    %843 = arith.addf %826, %842 : vector<8x32xf32>
    %c1_384 = arith.constant 1 : index
    %c0_385 = arith.constant 0 : index
    %c0_386 = arith.constant 0 : index
    %844 = vector.load %arg35[%c1_384, %c0_385, %c0_386] : memref<2x1x32xf32, #tpu.memory_space<vmem>>, vector<1x1x32xf32>
    %845 = vector.shape_cast %844 : vector<1x1x32xf32> to vector<1x32xf32>
    %c1_387 = arith.constant 1 : index
    %c0_388 = arith.constant 0 : index
    %c0_389 = arith.constant 0 : index
    %846 = vector.load %arg36[%c1_387, %c0_388, %c0_389] : memref<2x1x32xf32, #tpu.memory_space<vmem>>, vector<1x1x32xf32>
    %847 = vector.shape_cast %846 : vector<1x1x32xf32> to vector<1x32xf32>
    %cst_390 = arith.constant dense<0.000000e+00> : vector<8xf32>
    %848 = vector.multi_reduction <add>, %843, %cst_390 [1] : vector<8x32xf32> to vector<8xf32>
    %849 = vector.shape_cast %848 : vector<8xf32> to vector<8x1xf32>
    %cst_391 = arith.constant 3.200000e+01 : f32
    %850 = vector.broadcast %cst_391 : f32 to vector<8x1xf32>
    %851 = arith.divf %849, %850 : vector<8x1xf32>
    %852 = vector.broadcast %851 : vector<8x1xf32> to vector<8x32xf32>
    %853 = arith.subf %843, %852 : vector<8x32xf32>
    %854 = arith.mulf %853, %853 : vector<8x32xf32>
    %cst_392 = arith.constant dense<0.000000e+00> : vector<8xf32>
    %855 = vector.multi_reduction <add>, %854, %cst_392 [1] : vector<8x32xf32> to vector<8xf32>
    %856 = vector.shape_cast %855 : vector<8xf32> to vector<8x1xf32>
    %cst_393 = arith.constant 3.200000e+01 : f32
    %857 = vector.broadcast %cst_393 : f32 to vector<8x1xf32>
    %858 = arith.divf %856, %857 : vector<8x1xf32>
    %859 = vector.broadcast %851 : vector<8x1xf32> to vector<8x32xf32>
    %860 = arith.subf %843, %859 : vector<8x32xf32>
    %cst_394 = arith.constant 9.99999974E-6 : f32
    %861 = vector.broadcast %cst_394 : f32 to vector<8x1xf32>
    %862 = arith.addf %858, %861 : vector<8x1xf32>
    %863 = math.rsqrt %862 : vector<8x1xf32>
    %864 = vector.broadcast %863 : vector<8x1xf32> to vector<8x32xf32>
    %865 = arith.mulf %860, %864 : vector<8x32xf32>
    %866 = vector.broadcast %845 : vector<1x32xf32> to vector<8x32xf32>
    %867 = arith.mulf %865, %866 : vector<8x32xf32>
    %868 = vector.broadcast %847 : vector<1x32xf32> to vector<8x32xf32>
    %869 = arith.addf %867, %868 : vector<8x32xf32>
    %c0_395 = arith.constant 0 : index
    %c0_396 = arith.constant 0 : index
    %870 = vector.load %arg37[%c0_395, %c0_396] : memref<32x13xf32, #tpu.memory_space<vmem>>, vector<32x13xf32>
    %cst_397 = arith.constant dense<0.000000e+00> : vector<8x13xf32>
    %871 = tpu.matmul %869, %870, %cst_397 {dimension_numbers = #tpu.dot_dimension_numbers<[1], [0], [0], [1], [0, 0, 1, 1], [], []>} : vector<8x32xf32>, vector<32x13xf32>, vector<8x13xf32> -> vector<8x13xf32>
    %c0_398 = arith.constant 0 : index
    %c0_399 = arith.constant 0 : index
    %872 = vector.load %arg38[%c0_398, %c0_399] : memref<1x13xf32, #tpu.memory_space<vmem>>, vector<1x13xf32>
    %873 = vector.broadcast %872 : vector<1x13xf32> to vector<8x13xf32>
    %874 = arith.addf %871, %873 : vector<8x13xf32>
    %c0_400 = arith.constant 0 : index
    %c0_401 = arith.constant 0 : index
    %c0_402 = arith.constant 0 : index
    %875 = vector.load %arg39[%c0_400, %c0_401, %c0_402] : memref<1x8x13xf32, #tpu.memory_space<vmem>>, vector<1x8x13xf32>
    %876 = vector.shape_cast %875 : vector<1x8x13xf32> to vector<8x13xf32>
    %877 = vector.shape_cast %874 : vector<8x13xf32> to vector<1x8x13xf32>
    tpu.vector_store %arg39[%c0_400, %c0_401, %c0_402], %877 {strides = array<i32>} : memref<1x8x13xf32, #tpu.memory_space<vmem>>, vector<1x8x13xf32>,
    return
  }
  func.func @transform_0(%arg0: i32) -> (i32, i32, i32) {
    %c0_i32 = arith.constant 0 : i32
    %c0_i32_0 = arith.constant 0 : i32
    %c0_i32_1 = arith.constant 0 : i32
    return %arg0, %c0_i32, %c0_i32_0 : i32, i32, i32
  }
  func.func @transform_1(%arg0: i32) -> (i32, i32, i32) {
    %c0_i32 = arith.constant 0 : i32
    %c0_i32_0 = arith.constant 0 : i32
    %c0_i32_1 = arith.constant 0 : i32
    return %arg0, %c0_i32, %c0_i32_0 : i32, i32, i32
  }
  func.func @transform_2(%arg0: i32) -> (i32, i32) {
    %c0_i32 = arith.constant 0 : i32
    %c0_i32_0 = arith.constant 0 : i32
    %c0_i32_1 = arith.constant 0 : i32
    return %c0_i32, %c0_i32_0 : i32, i32
  }
  func.func @transform_3(%arg0: i32) -> (i32, i32) {
    %c0_i32 = arith.constant 0 : i32
    %c0_i32_0 = arith.constant 0 : i32
    %c0_i32_1 = arith.constant 0 : i32
    return %c0_i32, %c0_i32_0 : i32, i32
  }
  func.func @transform_4(%arg0: i32) -> (i32, i32, i32) {
    %c0_i32 = arith.constant 0 : i32
    %c0_i32_0 = arith.constant 0 : i32
    %c0_i32_1 = arith.constant 0 : i32
    %c0_i32_2 = arith.constant 0 : i32
    return %c0_i32, %c0_i32_0, %c0_i32_1 : i32, i32, i32
  }
  func.func @transform_5(%arg0: i32) -> (i32, i32, i32) {
    %c0_i32 = arith.constant 0 : i32
    %c0_i32_0 = arith.constant 0 : i32
    %c0_i32_1 = arith.constant 0 : i32
    %c0_i32_2 = arith.constant 0 : i32
    return %c0_i32, %c0_i32_0, %c0_i32_1 : i32, i32, i32
  }
  func.func @transform_6(%arg0: i32) -> (i32, i32, i32) {
    %c0_i32 = arith.constant 0 : i32
    %c0_i32_0 = arith.constant 0 : i32
    %c0_i32_1 = arith.constant 0 : i32
    %c0_i32_2 = arith.constant 0 : i32
    return %c0_i32, %c0_i32_0, %c0_i32_1 : i32, i32, i32
  }
  func.func @transform_7(%arg0: i32) -> (i32, i32, i32) {
    %c0_i32 = arith.constant 0 : i32
    %c0_i32_0 = arith.constant 0 : i32
    %c0_i32_1 = arith.constant 0 : i32
    %c0_i32_2 = arith.constant 0 : i32
    return %c0_i32, %c0_i32_0, %c0_i32_1 : i32, i32, i32
  }
  func.func @transform_8(%arg0: i32) -> (i32, i32, i32) {
    %c0_i32 = arith.constant 0 : i32
    %c0_i32_0 = arith.constant 0 : i32
    %c0_i32_1 = arith.constant 0 : i32
    %c0_i32_2 = arith.constant 0 : i32
    return %c0_i32, %c0_i32_0, %c0_i32_1 : i32, i32, i32
  }
  func.func @transform_9(%arg0: i32) -> (i32, i32, i32) {
    %c0_i32 = arith.constant 0 : i32
    %c0_i32_0 = arith.constant 0 : i32
    %c0_i32_1 = arith.constant 0 : i32
    %c0_i32_2 = arith.constant 0 : i32
    return %c0_i32, %c0_i32_0, %c0_i32_1 : i32, i32, i32
  }
  func.func @transform_10(%arg0: i32) -> (i32, i32, i32) {
    %c0_i32 = arith.constant 0 : i32
    %c0_i32_0 = arith.constant 0 : i32
    %c0_i32_1 = arith.constant 0 : i32
    %c0_i32_2 = arith.constant 0 : i32
    return %c0_i32, %c0_i32_0, %c0_i32_1 : i32, i32, i32
  }
  func.func @transform_11(%arg0: i32) -> (i32, i32, i32) {
    %c0_i32 = arith.constant 0 : i32
    %c0_i32_0 = arith.constant 0 : i32
    %c0_i32_1 = arith.constant 0 : i32
    %c0_i32_2 = arith.constant 0 : i32
    return %c0_i32, %c0_i32_0, %c0_i32_1 : i32, i32, i32
  }
  func.func @transform_12(%arg0: i32) -> (i32, i32, i32) {
    %c0_i32 = arith.constant 0 : i32
    %c0_i32_0 = arith.constant 0 : i32
    %c0_i32_1 = arith.constant 0 : i32
    %c0_i32_2 = arith.constant 0 : i32
    return %c0_i32, %c0_i32_0, %c0_i32_1 : i32, i32, i32
  }
  func.func @transform_13(%arg0: i32) -> (i32, i32, i32) {
    %c0_i32 = arith.constant 0 : i32
    %c0_i32_0 = arith.constant 0 : i32
    %c0_i32_1 = arith.constant 0 : i32
    %c0_i32_2 = arith.constant 0 : i32
    return %c0_i32, %c0_i32_0, %c0_i32_1 : i32, i32, i32
  }
  func.func @transform_14(%arg0: i32) -> (i32, i32, i32) {
    %c0_i32 = arith.constant 0 : i32
    %c0_i32_0 = arith.constant 0 : i32
    %c0_i32_1 = arith.constant 0 : i32
    %c0_i32_2 = arith.constant 0 : i32
    return %c0_i32, %c0_i32_0, %c0_i32_1 : i32, i32, i32
  }
  func.func @transform_15(%arg0: i32) -> (i32, i32, i32) {
    %c0_i32 = arith.constant 0 : i32
    %c0_i32_0 = arith.constant 0 : i32
    %c0_i32_1 = arith.constant 0 : i32
    %c0_i32_2 = arith.constant 0 : i32
    return %c0_i32, %c0_i32_0, %c0_i32_1 : i32, i32, i32
  }
  func.func @transform_16(%arg0: i32) -> (i32, i32, i32) {
    %c0_i32 = arith.constant 0 : i32
    %c0_i32_0 = arith.constant 0 : i32
    %c0_i32_1 = arith.constant 0 : i32
    %c0_i32_2 = arith.constant 0 : i32
    return %c0_i32, %c0_i32_0, %c0_i32_1 : i32, i32, i32
  }
  func.func @transform_17(%arg0: i32) -> (i32, i32, i32) {
    %c0_i32 = arith.constant 0 : i32
    %c0_i32_0 = arith.constant 0 : i32
    %c0_i32_1 = arith.constant 0 : i32
    %c0_i32_2 = arith.constant 0 : i32
    return %c0_i32, %c0_i32_0, %c0_i32_1 : i32, i32, i32
  }
  func.func @transform_18(%arg0: i32) -> (i32, i32, i32) {
    %c0_i32 = arith.constant 0 : i32
    %c0_i32_0 = arith.constant 0 : i32
    %c0_i32_1 = arith.constant 0 : i32
    %c0_i32_2 = arith.constant 0 : i32
    return %c0_i32, %c0_i32_0, %c0_i32_1 : i32, i32, i32
  }
  func.func @transform_19(%arg0: i32) -> (i32, i32, i32) {
    %c0_i32 = arith.constant 0 : i32
    %c0_i32_0 = arith.constant 0 : i32
    %c0_i32_1 = arith.constant 0 : i32
    %c0_i32_2 = arith.constant 0 : i32
    return %c0_i32, %c0_i32_0, %c0_i32_1 : i32, i32, i32
  }
  func.func @transform_20(%arg0: i32) -> (i32, i32, i32) {
    %c0_i32 = arith.constant 0 : i32
    %c0_i32_0 = arith.constant 0 : i32
    %c0_i32_1 = arith.constant 0 : i32
    %c0_i32_2 = arith.constant 0 : i32
    return %c0_i32, %c0_i32_0, %c0_i32_1 : i32, i32, i32
  }
  func.func @transform_21(%arg0: i32) -> (i32, i32, i32) {
    %c0_i32 = arith.constant 0 : i32
    %c0_i32_0 = arith.constant 0 : i32
    %c0_i32_1 = arith.constant 0 : i32
    %c0_i32_2 = arith.constant 0 : i32
    return %c0_i32, %c0_i32_0, %c0_i32_1 : i32, i32, i32
  }
  func.func @transform_22(%arg0: i32) -> (i32, i32, i32) {
    %c0_i32 = arith.constant 0 : i32
    %c0_i32_0 = arith.constant 0 : i32
    %c0_i32_1 = arith.constant 0 : i32
    %c0_i32_2 = arith.constant 0 : i32
    return %c0_i32, %c0_i32_0, %c0_i32_1 : i32, i32, i32
  }
  func.func @transform_23(%arg0: i32) -> (i32, i32, i32) {
    %c0_i32 = arith.constant 0 : i32
    %c0_i32_0 = arith.constant 0 : i32
    %c0_i32_1 = arith.constant 0 : i32
    %c0_i32_2 = arith.constant 0 : i32
    return %c0_i32, %c0_i32_0, %c0_i32_1 : i32, i32, i32
  }
  func.func @transform_24(%arg0: i32) -> (i32, i32, i32) {
    %c0_i32 = arith.constant 0 : i32
    %c0_i32_0 = arith.constant 0 : i32
    %c0_i32_1 = arith.constant 0 : i32
    %c0_i32_2 = arith.constant 0 : i32
    return %c0_i32, %c0_i32_0, %c0_i32_1 : i32, i32, i32
  }
  func.func @transform_25(%arg0: i32) -> (i32, i32, i32) {
    %c0_i32 = arith.constant 0 : i32
    %c0_i32_0 = arith.constant 0 : i32
    %c0_i32_1 = arith.constant 0 : i32
    %c0_i32_2 = arith.constant 0 : i32
    return %c0_i32, %c0_i32_0, %c0_i32_1 : i32, i32, i32
  }
  func.func @transform_26(%arg0: i32) -> (i32, i32, i32) {
    %c0_i32 = arith.constant 0 : i32
    %c0_i32_0 = arith.constant 0 : i32
    %c0_i32_1 = arith.constant 0 : i32
    %c0_i32_2 = arith.constant 0 : i32
    return %c0_i32, %c0_i32_0, %c0_i32_1 : i32, i32, i32
  }
  func.func @transform_27(%arg0: i32) -> (i32, i32, i32) {
    %c0_i32 = arith.constant 0 : i32
    %c0_i32_0 = arith.constant 0 : i32
    %c0_i32_1 = arith.constant 0 : i32
    %c0_i32_2 = arith.constant 0 : i32
    return %c0_i32, %c0_i32_0, %c0_i32_1 : i32, i32, i32
  }
  func.func @transform_28(%arg0: i32) -> (i32, i32, i32) {
    %c0_i32 = arith.constant 0 : i32
    %c0_i32_0 = arith.constant 0 : i32
    %c0_i32_1 = arith.constant 0 : i32
    %c0_i32_2 = arith.constant 0 : i32
    return %c0_i32, %c0_i32_0, %c0_i32_1 : i32, i32, i32
  }
  func.func @transform_29(%arg0: i32) -> (i32, i32, i32) {
    %c0_i32 = arith.constant 0 : i32
    %c0_i32_0 = arith.constant 0 : i32
    %c0_i32_1 = arith.constant 0 : i32
    %c0_i32_2 = arith.constant 0 : i32
    return %c0_i32, %c0_i32_0, %c0_i32_1 : i32, i32, i32
  }
  func.func @transform_30(%arg0: i32) -> (i32, i32, i32) {
    %c0_i32 = arith.constant 0 : i32
    %c0_i32_0 = arith.constant 0 : i32
    %c0_i32_1 = arith.constant 0 : i32
    %c0_i32_2 = arith.constant 0 : i32
    return %c0_i32, %c0_i32_0, %c0_i32_1 : i32, i32, i32
  }
  func.func @transform_31(%arg0: i32) -> (i32, i32, i32) {
    %c0_i32 = arith.constant 0 : i32
    %c0_i32_0 = arith.constant 0 : i32
    %c0_i32_1 = arith.constant 0 : i32
    %c0_i32_2 = arith.constant 0 : i32
    return %c0_i32, %c0_i32_0, %c0_i32_1 : i32, i32, i32
  }
  func.func @transform_32(%arg0: i32) -> (i32, i32, i32) {
    %c0_i32 = arith.constant 0 : i32
    %c0_i32_0 = arith.constant 0 : i32
    %c0_i32_1 = arith.constant 0 : i32
    %c0_i32_2 = arith.constant 0 : i32
    return %c0_i32, %c0_i32_0, %c0_i32_1 : i32, i32, i32
  }
  func.func @transform_33(%arg0: i32) -> (i32, i32, i32) {
    %c0_i32 = arith.constant 0 : i32
    %c0_i32_0 = arith.constant 0 : i32
    %c0_i32_1 = arith.constant 0 : i32
    %c0_i32_2 = arith.constant 0 : i32
    return %c0_i32, %c0_i32_0, %c0_i32_1 : i32, i32, i32
  }
  func.func @transform_34(%arg0: i32) -> (i32, i32, i32) {
    %c0_i32 = arith.constant 0 : i32
    %c0_i32_0 = arith.constant 0 : i32
    %c0_i32_1 = arith.constant 0 : i32
    %c0_i32_2 = arith.constant 0 : i32
    return %c0_i32, %c0_i32_0, %c0_i32_1 : i32, i32, i32
  }
  func.func @transform_35(%arg0: i32) -> (i32, i32, i32) {
    %c0_i32 = arith.constant 0 : i32
    %c0_i32_0 = arith.constant 0 : i32
    %c0_i32_1 = arith.constant 0 : i32
    %c0_i32_2 = arith.constant 0 : i32
    return %c0_i32, %c0_i32_0, %c0_i32_1 : i32, i32, i32
  }
  func.func @transform_36(%arg0: i32) -> (i32, i32) {
    %c0_i32 = arith.constant 0 : i32
    %c0_i32_0 = arith.constant 0 : i32
    %c0_i32_1 = arith.constant 0 : i32
    return %c0_i32, %c0_i32_0 : i32, i32
  }
  func.func @transform_37(%arg0: i32) -> (i32, i32) {
    %c0_i32 = arith.constant 0 : i32
    %c0_i32_0 = arith.constant 0 : i32
    %c0_i32_1 = arith.constant 0 : i32
    return %c0_i32, %c0_i32_0 : i32, i32
  }
  func.func @transform_38(%arg0: i32) -> (i32, i32, i32) {
    %c0_i32 = arith.constant 0 : i32
    %c0_i32_0 = arith.constant 0 : i32
    %c0_i32_1 = arith.constant 0 : i32
    return %arg0, %c0_i32, %c0_i32_0 : i32, i32, i32
  }
}

</mosaic_0001>

<bundles_post_ra>
// kernel: transformer_forward.1
= control target key start
LH: loop header
LB: loop body
LE: loop exit
PB: predicated region body
PF: predicated region fallthrough
CT: control target
= control target key end

     0   :  { %s4442_s6 = smov 1   ;;  %s4443_s10 = smov 2   ;;  %s5233_s0 = inlined_call_operand.smem [shape: u32[39], index: -1, kind: input, shape index: {}] }
   0x1   :  { %s4503_s5 = sld [smem:[%s5233_s0]]   ;;  %s4444_s14 = smov 3  }
   0x2   :  { %s4508_s9 = sld [smem:[%s5233_s0 + %s4442_s6]]   ;;  %s4445_s18 = smov 4  }
   0x3   :  { %s4513_s13 = sld [smem:[%s5233_s0 + %s4443_s10]]   ;;  %s4446_s22 = smov 5  }
   0x4   :  { %s4518_s17 = sld [smem:[%s5233_s0 + %s4444_s14]]   ;;  %s4447_s26 = smov 6  }
   0x5   :  { %s4523_s21 = sld [smem:[%s5233_s0 + %s4445_s18]]   ;;  %s4448_s30 = smov 7  }
   0x6   :  { %s4528_s25 = sld [smem:[%s5233_s0 + %s4446_s22]]   ;;  %s4449_s4 = smov 8  }
   0x7   :  { %5297 = sst [smem:[#allocation2_spill]] %s4503_s5  ;;  %s4450_s10 = smov 9  }
   0x8   :  { %5298 = sst [smem:[#allocation3_spill]] %s4508_s9  ;;  %s4451_s15 = smov 10  }
   0x9   :  { %5299 = sst [smem:[#allocation4_spill]] %s4513_s13  ;;  %s4452_s20 = smov 11  }
   0xa   :  { %5300 = sst [smem:[#allocation5_spill]] %s4518_s17  ;;  %s4454_s1 = smov 13  }
   0xb   :  { %5301 = sst [smem:[#allocation6_spill]] %s4523_s21  ;;  %s4455_s7 = smov 14  }
   0xc   :  { %5302 = sst [smem:[#allocation7_spill]] %s4528_s25  ;;  %s4457_s22 = smov 16  }
   0xd   :  { %s4533_s29 = sld [smem:[%s5233_s0 + %s4447_s26]]   ;;  %s4453_s26 = smov 12  }
   0xe   :  { %s4538_s3 = sld [smem:[%s5233_s0 + %s4448_s30]]   ;;  %s4458_s28 = smov 17  }
   0xf   :  { %s4543_s8 = sld [smem:[%s5233_s0 + %s4449_s4]]  }
  0x10   :  { %s4548_s14 = sld [smem:[%s5233_s0 + %s4450_s10]]  }
  0x11   :  { %s4553_s19 = sld [smem:[%s5233_s0 + %s4451_s15]]   ;;  %s4456_s15 = smov 15  }
  0x12   :  { %s4558_s24 = sld [smem:[%s5233_s0 + %s4452_s20]]  }
  0x13   :  { %5303 = sst [smem:[#allocation8_spill]] %s4533_s29 }
  0x14   :  { %5304 = sst [smem:[#allocation9_spill]] %s4538_s3 }
  0x15   :  { %5305 = sst [smem:[#allocation10_spill]] %s4543_s8 }
  0x16   :  { %5306 = sst [smem:[#allocation11_spill]] %s4548_s14 }
  0x17   :  { %5307 = sst [smem:[#allocation12_spill]] %s4553_s19 }
  0x18   :  { %5308 = sst [smem:[#allocation13_spill]] %s4558_s24 }
  0x19   :  { %s4563_s30 = sld [smem:[%s5233_s0 + %s4453_s26]]  }
  0x1a   :  { %s4568_s6 = sld [smem:[%s5233_s0 + %s4454_s1]]  }
  0x1b   :  { %s4573_s12 = sld [smem:[%s5233_s0 + %s4455_s7]]   ;;  %s4459_s7 = smov 18  }
  0x1c   :  { %s4578_s20 = sld [smem:[%s5233_s0 + %s4456_s15]]   ;;  %s4460_s15 = smov 19  }
  0x1d   :  { %s4583_s27 = sld [smem:[%s5233_s0 + %s4457_s22]]   ;;  %s4461_s22 = smov 20  }
  0x1e   :  { %s4588_s4 = sld [smem:[%s5233_s0 + %s4458_s28]]   ;;  %s4462_s28 = smov 21  }
  0x1f   :  { %5309 = sst [smem:[#allocation14_spill]] %s4563_s30 }
  0x20   :  { %5310 = sst [smem:[#allocation15_spill]] %s4568_s6 }
  0x21   :  { %5311 = sst [smem:[#allocation16_spill]] %s4573_s12 }
  0x22   :  { %5312 = sst [smem:[#allocation17_spill]] %s4578_s20 }
  0x23   :  { %5313 = sst [smem:[#allocation18_spill]] %s4583_s27 }
  0x24   :  { %5314 = sst [smem:[#allocation19_spill]] %s4588_s4 }
  0x25   :  { %s4593_s17 = sld [smem:[%s5233_s0 + %s4459_s7]]   ;;  %s4463_s7 = smov 22  }
  0x26   :  { %s4598_s9 = sld [smem:[%s5233_s0 + %s4460_s15]]   ;;  %s4464_s15 = smov 23  }
  0x27   :  { %s4603_s27 = sld [smem:[%s5233_s0 + %s4461_s22]]   ;;  %s4465_s22 = smov 24  }
  0x28   :  { %s4608_s4 = sld [smem:[%s5233_s0 + %s4462_s28]]   ;;  %s4466_s28 = smov 25  }
  0x2b   :  { %5315 = sst [smem:[#allocation20_spill]] %s4593_s17 }
  0x2c   :  { %5316 = sst [smem:[#allocation21_spill]] %s4598_s9 }
  0x2d   :  { %5317 = sst [smem:[#allocation22_spill]] %s4603_s27 }
  0x2e   :  { %5318 = sst [smem:[#allocation23_spill]] %s4608_s4 }
  0x2f   :  { %s4613_s17 = sld [smem:[%s5233_s0 + %s4463_s7]]   ;;  %s4467_s7 = smov 26  }
  0x30   :  { %s4618_s9 = sld [smem:[%s5233_s0 + %s4464_s15]]   ;;  %s4468_s15 = smov 27  }
  0x31   :  { %s4623_s27 = sld [smem:[%s5233_s0 + %s4465_s22]]   ;;  %s4469_s22 = smov 28  }
  0x32   :  { %s4628_s4 = sld [smem:[%s5233_s0 + %s4466_s28]]   ;;  %s4470_s28 = smov 29  }
  0x35   :  { %5319 = sst [smem:[#allocation24_spill]] %s4613_s17 }
  0x36   :  { %5320 = sst [smem:[#allocation25_spill]] %s4618_s9 }
  0x37   :  { %5321 = sst [smem:[#allocation26_spill]] %s4623_s27 }
  0x38   :  { %5322 = sst [smem:[#allocation27_spill]] %s4628_s4 }
  0x39   :  { %s4633_s17 = sld [smem:[%s5233_s0 + %s4467_s7]]   ;;  %s4471_s7 = smov 30  }
  0x3a   :  { %s4638_s9 = sld [smem:[%s5233_s0 + %s4468_s15]]   ;;  %s4472_s15 = smov 31  }
  0x3b   :  { %s4643_s27 = sld [smem:[%s5233_s0 + %s4469_s22]]   ;;  %s4473_s22 = smov 32  }
  0x3c   :  { %s4648_s4 = sld [smem:[%s5233_s0 + %s4470_s28]]   ;;  %s4474_s28 = smov 33  }
  0x3f   :  { %5323 = sst [smem:[#allocation28_spill]] %s4633_s17 }
  0x40   :  { %5324 = sst [smem:[#allocation29_spill]] %s4638_s9 }
  0x41   :  { %5325 = sst [smem:[#allocation30_spill]] %s4643_s27 }
  0x42   :  { %5326 = sst [smem:[#allocation31_spill]] %s4648_s4 }
  0x43   :  { %s4653_s17 = sld [smem:[%s5233_s0 + %s4471_s7]]   ;;  %s4475_s7 = smov 34  }
  0x44   :  { %s4658_s9 = sld [smem:[%s5233_s0 + %s4472_s15]]   ;;  %s4476_s15 = smov 35  }
  0x45   :  { %s4663_s27 = sld [smem:[%s5233_s0 + %s4473_s22]]   ;;  %s4477_s22 = smov 36  }
  0x46   :  { %s4668_s4 = sld [smem:[%s5233_s0 + %s4474_s28]]   ;;  %s4478_s28 = smov 37  }
  0x49   :  { %5327 = sst [smem:[#allocation32_spill]] %s4653_s17 }
  0x4a   :  { %5328 = sst [smem:[#allocation33_spill]] %s4658_s9 }
  0x4b   :  { %5329 = sst [smem:[#allocation34_spill]] %s4663_s27 }
  0x4c   :  { %5330 = sst [smem:[#allocation35_spill]] %s4668_s4 }
  0x4d   :  { %s4673_s17 = sld [smem:[%s5233_s0 + %s4475_s7]]   ;;  %s4479_s7 = smov 38  }
  0x4e   :  { %s4678_s9 = sld [smem:[%s5233_s0 + %s4476_s15]]   ;;  %s4695_s15 = smov 0  }
  0x4f   :  { %s4683_s27 = sld [smem:[%s5233_s0 + %s4477_s22]]  }
  0x50   :  { %s4688_s4 = sld [smem:[%s5233_s0 + %s4478_s28]]  }
  0x53   :  { %5331 = sst [smem:[#allocation36_spill]] %s4673_s17 }
  0x54   :  { %s4693_s17 = sld [smem:[%s5233_s0 + %s4479_s7]]  }
  0x55   :  { %5332 = sst [smem:[#allocation37_spill]] %s4683_s27 }
  0x56   :  { %5333 = sst [smem:[#allocation38_spill]] %s4688_s4 }
  0x5a   :  { %5334 = sst [smem:[#allocation39_spill]] %s4693_s17 }
  0x5b LB: > { %s5335_s30 = sld [smem:[#allocation14_spill]]  ;;  %s4034_s16 = sadd.s32 4294967295, %s4440_s15   ;;  %s4440_s15 = sphi %s4695_s15, %s87_s15  }
  0x5c   : > { %s5336_s29 = sld [smem:[#allocation8_spill]]  ;;  %p4038_p0 = scmp.ge.s32.totalorder %s4440_s15, 1 }
  0x5d   : > { %s5337_s25 = sld [smem:[#allocation7_spill]]  ;;  %p1059_p1 = scmp.lt.s32.totalorder %s4440_s15, 3 }
  0x5e   : > { %s5338_s20 = sld [smem:[#allocation17_spill]] }
  0x5f   : > { %s5339_s12 = sld [smem:[#allocation16_spill]]  ;;  %p1060_p2 = pnand %p4038_p0, %p1059_p1 }
  0x60   : > { %s5340_s24 = sld [smem:[#allocation13_spill]] }
  0x61   : > { %s5341_s21 = sld [smem:[#allocation6_spill]] }
  0x62   : > { %s5342_s6 = sld [smem:[#allocation15_spill]] }
  0x63   : > { %s5343_s19 = sld [smem:[#allocation12_spill]]  ;;  %1063 = sbr.rel (%p1060_p2) target bundleno = 9389 (0x24ad), region = 172 }
  0x64   : > { %s5344_s14 = sld [smem:[#allocation11_spill]] }
  0x65   : > { %s5345_s8 = sld [smem:[#allocation10_spill]] }
  0x66   : > { %s5346_s3 = sld [smem:[#allocation9_spill]] }
  0x67   : > { %5347 = sst [smem:[#allocation40_spill]] %s4440_s15 }
  0x68   : > { %s5348_s13 = sld [smem:[#allocation4_spill]]  ;;  %v1173_v0 = vld [vmem:[%s5341_s21 + $0x18] sm:$0xff]  ;;  %v1172_v1 = vld [vmem:[%s5341_s21 + $0x10] sm:$0xff]  ;;  %p1155_p3 = scmp.lt.s32.totalorder %s4034_s16, 1  ;;  %v1171_v2 = vld [vmem:[%s5341_s21 + $0x8] sm:$0xff]  ;;  %vm1178_vm0 = vcmask 261120  }
  0x69   : > { %s5349_s5 = sld [smem:[#allocation2_spill]]  ;;  %1194 = vmatpush.msra.mxu0 %v1173_v0  ;;  %v1170_v3 = vld [vmem:[%s5341_s21] sm:$0xff]  ;;  %s5271_s22 = smov 64   ;;  %vm1206_vm1 = vcmask 64512   ;;  %v1484_v63 = vld [vmem:[%s5336_s29 + $0x18] sm:$0xff]  ;;  %v1483_v0 = vld [vmem:[%s5336_s29 + $0x10] sm:$0xff] }
  0x6a   : > { %s5397_s16 = smov (!%p1155_p3, %s4034_s16), 1  ;;  %v4273_v7 = vld [vmem:[%s5337_s25] ss:$0 sm:$0xff]  ;;  %s5273_s23 = smov 96   ;;  %vm1477_vm2 = vcmask 130048   ;;  %vm1479_vm3 = vcmask 195584  }
  0x6b   : > { %1195 = vmatpush.msra.mxu0 %v1172_v1  ;;  %s4707_s0 = sshll.u32 %s5397_s16, 3  ;;  %s5269_s26 = smov 120   ;;  %v1482_v1 = vld [vmem:[%s5336_s29 + $0x8] sm:$0xff]  ;;  %vm1596_vm8 = vcmask 523264  }
  0x6c   : > { %5350 = sst [smem:[#allocation41_spill]] %s4707_s0  ;;  %s5267_s28 = smov 88  }
  0x6d   : > { %1196 = vmatpush.msra.mxu0 %v1171_v2  ;;  %s5259_s1 = smov 80   ;;  %s5263_s2 = smov 72   ;;  %v1481_v2 = vld [vmem:[%s5336_s29] sm:$0xff] }
  0x6e   : > { %v1168_v4 = vld [vmem:[%s5348_s13] sm:$0xff]  ;;  %s5265_s7 = smov 112   ;;  %s5261_s10 = smov 104  }
  0x6f   : > { %s1158_s18 = scalar_lea.vmem %s5349_s5, %s4707_s0  ;;  %1197 = vmatpush.msra.mxu0 %v1170_v3  ;;  %s5255_s11 = smov 40  }
  0x70   : > { %v1167_v5 = vld [vmem:[%s1158_s18] sm:$0xff]  ;;  %s5257_s16 = smov 56   ;;  %s5253_s18 = smov 48  }
  0x71   : > { %v4712_v6 = vadd.f32 %v1168_v4, %v1167_v5  ;;  %s5365_s5 = smov 8   ;;  %s5367_s13 = smov 24  }
  0x72   : > { %s5378_s15 = sld [smem:[#allocation29_spill]] }
  0x73   : > { %4042 = vmatmul.msk.f32.vlgmr.msra.gmra.mxu0 %vm1178_vm0, %v4712_v6  ;;  %s5380_s4 = sld [smem:[#allocation34_spill]] }
  0x74   : > { %s5382_s17 = sld [smem:[#allocation31_spill]] }
  0x75   : > { %s5384_s27 = sld [smem:[#allocation35_spill]] }
  0xf0   : > { %v1199_v8 = vpop.f32.mrf.mxu0 }
  0xf1   : > { %v4717_v9 = vadd.f32 %v4273_v7, %v1199_v8 }
  0xf3   : > { %1241 = vrot.lane.b32.xlu1 %v4717_v9, %s5271_s22  ;;  %1204 = vrot.lane.b32.xlu0 %v4717_v9, %s5273_s23  ;;  %v1202_v10 = vmul.f32 0.35355338, %v4717_v9 }
  0xf5   : > { %1269 = vrot.lane.b32.xlu2 %v1202_v10, %s5269_s26 }
  0xfb   : > { %1271 = vrot.lane.b32.xlu1 %v4717_v9, %s5267_s28 }
  0xfd   : > { %1336 = vrot.lane.b32.xlu2 %v4717_v9, %s5259_s1 }
 0x103   : > { %1401 = vrot.lane.b32.xlu1 %v4717_v9, %s5263_s2 }
 0x105   : > { %1334 = vrot.lane.b32.xlu2 %v1202_v10, %s5265_s7 }
 0x10b   : > { %1399 = vrot.lane.b32.xlu1 %v1202_v10, %s5261_s10 }
 0x14f   : > { %v1270_v11 = vpop.permute.xlu2 %1269 }
 0x157   : > { %v1337_v14 = vpop.permute.xlu2 %1336 }
 0x15f   : > { %v1335_v16 = vpop.permute.xlu2 %1334 }
 0x165   : > { %v1242_v12 = vpop.permute.xlu1 %1241  ;;  %v1205_v13 = vpop.permute.xlu0 %1204 }
 0x166   : > { %4043 = vmatpush.xpose.msk.msra.mxu1 %vm1206_vm1, %v1205_v13  ;;  %1262 = vmatpush.msra.mxu3 %v1242_v12  ;;  %v4274_v13 = vld [vmem:[%s5346_s3] ss:$0 sm:$0xff] }
 0x169   : > { %4044 = vmatmul.msk.f32.vlgmr.msra.gmra.mxu1 %vm1206_vm1, %v1202_v10 }
 0x16a   : > { %4049 = vmatpush.xpose.msk.msrb.mxu1 %vm1206_vm1, %v1337_v14 }
 0x16d   : > { %v1272_v15 = vpop.permute.xlu1 %1271 }
 0x16e   : > { %4046 = vmatpush.xpose.msk.msrb.mxu3 %vm1206_vm1, %v1272_v15  ;;  %1504 = vmatpush.msra.mxu1 %v1484_v63 }
 0x170   : > { %1505 = vmatpush.msra.mxu1 %v1483_v0 }
 0x171   : > { %4050 = vmatmul.msk.f32.vlgmr.msrb.gmra.mxu1 %vm1206_vm1, %v1335_v16 }
 0x172   : > { %1506 = vmatpush.msra.mxu1 %v1482_v1 }
 0x174   : > { %1507 = vmatpush.msra.mxu1 %v1481_v2 }
 0x175   : > { %v1402_v17 = vpop.permute.xlu1 %1401 }
 0x176   : > { %4052 = vmatpush.xpose.msk.msrb.mxu0 %vm1206_vm1, %v1402_v17 }
 0x17d   : > { %v1400_v18 = vpop.permute.xlu1 %1399 }
 0x17e   : > { %4053 = vmatmul.msk.f32.vlgmr.msrb.gmra.mxu0 %vm1206_vm1, %v1400_v18  ;;  %v4494_v18 = vmov 32.0  }
 0x1e6   : > { %v1229_v19 = vpop.f32.mrf.mxu1 }
 0x1e7   : > { %v1232_v20 = vsel %vm1206_vm1, %v1229_v19, -inf }
 0x1e8   : > { %1233 = vmax.xlane.f32.xlu0 %v1232_v20 }
 0x1ee   : > { %v1359_v21 = vpop.f32.mrf.mxu1 }
 0x1ef   : > { %v1362_v22 = vsel %vm1206_vm1, %v1359_v21, -inf }
 0x1f0   : > { %1363 = vmax.xlane.f32.xlu1 %v1362_v22 }
 0x1fb   : > { %v1424_v23 = vpop.f32.mrf.mxu0 }
 0x1fc   : > { %v1427_v24 = vsel %vm1206_vm1, %v1424_v23, -inf }
 0x1fd   : > { %1428 = vmax.xlane.f32.xlu0 %v1427_v24 }
 0x209   : > { %1436 = vrot.lane.b32.xlu1 %v4717_v9, %s5255_s11  ;;  %s5279_s11 = smov 8  }
 0x211   : > { %1306 = vrot.lane.b32.xlu0 %v4717_v9, %s5257_s16  ;;  %s5277_s16 = smov 24  }
 0x25b   : > { %v1234_v25 = vpop.xlane.xlu0 %1233 }
 0x25c   : > { %v1235_v26 = vsub.f32 %v1229_v19, %v1234_v25 }
 0x25e   : > { %v1236_v27 = vmul.f32 1.442695, %v1235_v26 }
 0x260   : > { %4316 = vpow2.f32 %v1236_v27 }
 0x263   : > { %v1364_v33 = vpop.xlane.xlu1 %1363 }
 0x264   : > { %v1365_v40 = vsub.f32 %v1359_v21, %v1364_v33  ;;  %v1591_v33 = vld [vmem:[%s5335_s30 + $0x38] sm:$0xff] }
 0x265   : > { %1608 = vmatpush.msra.mxu0 %v1591_v33 }
 0x266   : > { %v4317_v28 = vpop.eup %4316  ;;  %v1366_v41 = vmul.f32 1.442695, %v1365_v40  ;;  %v1587_v40 = vld [vmem:[%s5335_s30 + $0x18] sm:$0xff] }
 0x267   : > { %4045 = vmatmul.msk.f32.vlgmr.msra.gmra.mxu3 %vm1206_vm1, %v4317_v28  ;;  %v1238_v50 = vsel %vm1206_vm1, %v4317_v28, 0.0 }
 0x26f   : > { %4047 = vmatmul.msk.f32.vlgmr.msrb.gmra.mxu3 %vm1206_vm1, %v1270_v11 }
 0x270   : > { %v1429_v29 = vpop.xlane.xlu0 %1428 }
 0x271   : > { %v1430_v30 = vsub.f32 %v1424_v23, %v1429_v29  ;;  %v1555_v29 = vld [vmem:[%s5343_s19 + $0x18] sm:$0xff] }
 0x273   : > { %v1431_v31 = vmul.f32 1.442695, %v1430_v30  ;;  %v1554_v30 = vld [vmem:[%s5343_s19 + $0x10] sm:$0xff] }
 0x275   : > { %4318 = vpow2.f32 %v1431_v31  ;;  %v1553_v31 = vld [vmem:[%s5343_s19 + $0x8] sm:$0xff] }
 0x276   : > { %4320 = vpow2.f32 %v1366_v41 }
 0x27b   : > { %v4319_v32 = vpop.eup %4318  ;;  %v1437_v36 = vpop.permute.xlu1 %1436 }
 0x27c   : > { %v1433_v34 = vsel %vm1206_vm1, %v4319_v32, 0.0  ;;  %v4321_v42 = vpop.eup %4320 }
 0x27d   : > { %1434 = vadd.xlane.f32.xlu1 %v1433_v34  ;;  %v1368_v43 = vsel %vm1206_vm1, %v4321_v42, 0.0  ;;  %v1590_v34 = vld [vmem:[%s5335_s30 + $0x30] sm:$0xff] }
 0x27e   : > { %1609 = vmatpush.msra.mxu0 %v1590_v34 }
 0x283   : > { %v1307_v35 = vpop.permute.xlu0 %1306 }
 0x284   : > { %1327 = vmatpush.msra.mxu2 %v1307_v35  ;;  %v1589_v35 = vld [vmem:[%s5335_s30 + $0x28] sm:$0xff] }
 0x285   : > { %1610 = vmatpush.msra.mxu0 %v1589_v35 }
 0x286   : > { %1457 = vmatpush.msrb.mxu2 %v1437_v36 }
 0x2ea   : > { %v1264_v37 = vpop.f32.mrf.mxu3 }
 0x2f0   : > { %v1435_v55 = vpop.xlane.xlu1 %1434 }
 0x2f2   : > { %v1294_v38 = vpop.f32.mrf.mxu3 }
 0x2f3   : > { %v1297_v39 = vsel %vm1206_vm1, %v1294_v38, -inf }
 0x2f4   : > { %1298 = vmax.xlane.f32.xlu2 %v1297_v39 }
 0x30c   : > { %1371 = vrot.lane.b32.xlu2 %v4717_v9, %s5253_s18  ;;  %s5275_s18 = smov 16  }
 0x335   : > { %1369 = vadd.xlane.f32.xlu2 %v1368_v43 }
 0x367   : > { %v1299_v44 = vpop.xlane.xlu2 %1298 }
 0x368   : > { %v1300_v45 = vsub.f32 %v1294_v38, %v1299_v44  ;;  %v1588_v38 = vld [vmem:[%s5335_s30 + $0x20] sm:$0xff] }
 0x369   : > { %1611 = vmatpush.msra.mxu0 %v1588_v38 }
 0x36a   : > { %v1301_v46 = vmul.f32 1.442695, %v1300_v45 }
 0x36b   : > { %1612 = vmatpush.msra.mxu0 %v1587_v40 }
 0x36c   : > { %4322 = vpow2.f32 %v1301_v46 }
 0x36f   : > { %v1372_v47 = vpop.permute.xlu2 %1371 }
 0x370   : > { %1392 = vmatpush.msra.mxu3 %v1372_v47  ;;  %v4275_v47 = vld [vmem:[%s5345_s8] ss:$0 sm:$0xff] }
 0x371   : > { %4051 = vmatmul.msk.f32.vlgmr.msra.gmra.mxu3 %vm1206_vm1, %v4321_v42 }
 0x372   : > { %v4323_v48 = vpop.eup %4322  ;;  %1575 = vmatpush.msrb.mxu3 %v1555_v29 }
 0x373   : > { %4048 = vmatmul.msk.f32.vlgmr.msra.gmra.mxu2 %vm1206_vm1, %v4323_v48  ;;  %v1303_v49 = vsel %vm1206_vm1, %v4323_v48, 0.0 }
 0x374   : > { %1304 = vadd.xlane.f32.xlu0 %v1303_v49  ;;  %1576 = vmatpush.msrb.mxu3 %v1554_v30 }
 0x376   : > { %1577 = vmatpush.msrb.mxu3 %v1553_v31 }
 0x37b   : > { %4054 = vmatmul.msk.f32.vlgmr.msrb.gmra.mxu2 %vm1206_vm1, %v4319_v32  ;;  %v1552_v32 = vld [vmem:[%s5343_s19] sm:$0xff] }
 0x37c   : > { %1239 = vadd.xlane.f32.xlu0 %v1238_v50  ;;  %1578 = vmatpush.msrb.mxu3 %v1552_v32  ;;  %v4276_v50 = vld [vmem:[%s5344_s14] ss:$0 sm:$0xff] }
 0x3a8   : > { %v1370_v51 = vpop.xlane.xlu2 %1369 }
 0x3a9   : > { %4324 = vrcp.f32 %v1370_v51 }
 0x3af   : > { %v4325_v53 = vpop.eup %4324 }
 0x3e7   : > { %v1305_v52 = vpop.xlane.xlu0 %1304 }
 0x3e8   : > { %4326 = vrcp.f32 %v1305_v52 }
 0x3e9   : > { %4328 = vrcp.f32 %v1435_v55  ;;  %v1584_v55 = vld [vmem:[%s5335_s30] sm:$0xff] }
 0x3ee   : > { %v4327_v57 = vpop.eup %4326 }
 0x3ef   : > { %v4329_v60 = vpop.eup %4328  ;;  %v1240_v3 = vpop.xlane.xlu0 %1239 }
 0x3f0   : > { %4330 = vrcp.f32 %v1240_v3 }
 0x3f1   : > { %4332 = vrcp.f32 %v4494_v18 }
 0x3f4   : > { %v1394_v54 = vpop.f32.mrf.mxu3 }
 0x3f5   : > { %v1398_v56 = vmul.f32 %v4325_v53, %v1394_v54  ;;  %v1586_v53 = vld [vmem:[%s5335_s30 + $0x10] sm:$0xff]  ;;  %v1585_v54 = vld [vmem:[%s5335_s30 + $0x8] sm:$0xff] }
 0x3f6   : > { %v1329_v58 = vpop.f32.mrf.mxu2  ;;  %v4331_v4 = vpop.eup %4330  ;;  %1613 = vmatpush.msra.mxu0 %v1586_v53 }
 0x3f7   : > { %v1333_v59 = vmul.f32 %v4327_v57, %v1329_v58  ;;  %1469 = vrot.lane.b32.xlu2 %v1398_v56, %s5275_s18  ;;  %v1268_v7 = vmul.f32 %v4331_v4, %v1264_v37  ;;  %v4333_v19 = vpop.eup %4332  ;;  %v4277_v56 = vld [vmem:[%s5340_s24] ss:$0 sm:$0xff] }
 0x3f8   : > { %v1519_v20 = vmul.f32 32.0, %v4333_v19  ;;  %vm1523_vm4 = vweird.f32 %v4333_v19  ;;  %1614 = vmatpush.msra.mxu0 %v1585_v54 }
 0x3f9   : > { %1465 = vrot.lane.b32.xlu0 %v1333_v59, %s5279_s11 }
 0x3fa   : > { %v1520_v21 = vsub.f32 1.0, %v1519_v20  ;;  %1615 = vmatpush.msra.mxu0 %v1584_v55  ;;  %v4279_v20 = vld [vmem:[%s5339_s12] ss:$0 sm:$0xff] }
 0x3fc   : > { %v1521_v22 = vmul.f32 %v4333_v19, %v1520_v21 }
 0x3fe   : > { %v1459_v61 = vpop.f32.mrf.mxu2  ;;  %v1522_v23 = vadd.f32 %v4333_v19, %v1521_v22 }
 0x3ff   : > { %v1463_v62 = vmul.f32 %v4329_v60, %v1459_v61  ;;  %v4278_v60 = vld [vmem:[%s5342_s6] ss:$0 sm:$0xff] }
 0x400   : > { %v4773_v24 = vsel %vm1523_vm4, %v4333_v19, %v1522_v23  ;;  %v4280_v23 = vld [vmem:[%s5338_s20] ss:$0 sm:$0xff] }
 0x401   : > { %1473 = vrot.lane.b32.xlu1 %v1463_v62, %s5277_s16 }
 0x451   : > { %v1470_v9 = vpop.permute.xlu2 %1469 }
 0x46b   : > { %v1466_v5 = vpop.permute.xlu0 %1465 }
 0x46c   : > { %v1476_v8 = vsel %vm1206_vm1, %v1268_v7, %v1466_v5  ;;  %v4061_v7 = vld [vmem:[%s5341_s21 + $0x38] sm:$0xff] }
 0x46d   : > { %v1478_v11 = vsel %vm1477_vm2, %v1476_v8, %v1470_v9  ;;  %1678 = vmatpush.msra.mxu2 %v4061_v7  ;;  %v4060_v8 = vld [vmem:[%s5341_s21 + $0x30] sm:$0xff]  ;;  %v4059_v9 = vld [vmem:[%s5341_s21 + $0x28] sm:$0xff] }
 0x46f   : > { %1679 = vmatpush.msra.mxu2 %v4060_v8 }
 0x471   : > { %1680 = vmatpush.msra.mxu2 %v4059_v9 }
 0x473   : > { %v1474_v10 = vpop.permute.xlu1 %1473 }
 0x474   : > { %v1480_v12 = vsel %vm1479_vm3, %v1478_v11, %v1474_v10  ;;  %v4058_v10 = vld [vmem:[%s5341_s21 + $0x20] sm:$0xff]  ;;  %s5371_s21 = sld [smem:[#allocation24_spill]] }
 0x475   : > { %4055 = vmatmul.msk.f32.vlgmr.msra.gmra.mxu1 %vm1178_vm0, %v1480_v12  ;;  %1681 = vmatpush.msra.mxu2 %v4058_v10 }
 0x4f2   : > { %v1509_v14 = vpop.f32.mrf.mxu1 }
 0x4f3   : > { %v1510_v15 = vadd.f32 %v4274_v13, %v1509_v14 }
 0x4f5   : > { %v1512_v16 = vadd.f32 %v1510_v15, %v4712_v6 }
 0x4f7   : > { %v1515_v17 = vsel %vm1178_vm0, %v1512_v16, 0.0 }
 0x4f8   : > { %1516 = vadd.xlane.f32.xlu0 %v1515_v17 }
 0x56b   : > { %v1517_v6 = vpop.xlane.xlu0 %1516 }
 0x56c   : > { %v1525_v25 = vmul.f32 %v4773_v24, %v1517_v6 }
 0x56e   : > { %v1526_v26 = vsub.f32 %v1512_v16, %v1525_v25 }
 0x570   : > { %v1527_v27 = vmul.f32 %v1526_v26, %v1526_v26 }
 0x572   : > { %v1528_v28 = vsel %vm1178_vm0, %v1527_v27, 0.0 }
 0x573   : > { %1529 = vadd.xlane.f32.xlu2 %v1528_v28 }
 0x5e6   : > { %v1530_v36 = vpop.xlane.xlu2 %1529 }
 0x5e7   : > { %v1531_v37 = vmul.f32 %v1530_v36, %v4773_v24 }
 0x5e9   : > { %v1532_v39 = vadd.f32 1e-05, %v1531_v37 }
 0x5eb   : > { %4334 = vrsqrt.f32 %v1532_v39  ;;  %vm1539_vm6 = vweird.f32 %v1532_v39 }
 0x5f1   : > { %v4335_v41 = vpop.eup %4334 }
 0x5f2   : > { %v1534_v42 = vmul.f32 %v4335_v41, %v1532_v39  ;;  %vm1540_vm5 = vweird.f32 %v4335_v41 }
 0x5f3   : > { %vm1541_vm7 = vmor %vm1539_vm6, %vm1540_vm5 }
 0x5f4   : > { %v1535_v43 = vmul.f32 %v4335_v41, %v1534_v42 }
 0x5f6   : > { %v1536_v44 = vmul.f32 0.5, %v1535_v43 }
 0x5f8   : > { %v1537_v45 = vsub.f32 1.5, %v1536_v44 }
 0x5fa   : > { %v1538_v46 = vmul.f32 %v4335_v41, %v1537_v45 }
 0x5fc   : > { %v1542_v48 = vsel %vm1541_vm7, %v4335_v41, %v1538_v46 }
 0x5fd   : > { %v1543_v49 = vmul.f32 %v1542_v48, %v1526_v26  ;;  %v4281_v26 = vld [vmem:[%s5337_s25 + $0x1] ss:$0 sm:$0xff]  ;;  %s5375_s25 = sld [smem:[#allocation25_spill]] }
 0x5ff   : > { %v1547_v51 = vmul.f32 %v4275_v47, %v1543_v49 }
 0x601   : > { %v1551_v52 = vadd.f32 %v4276_v50, %v1547_v51 }
 0x603   : > { %4056 = vmatmul.msk.f32.vlgmr.msrb.gmra.mxu3 %vm1178_vm0, %v1551_v52 }
 0x686   : > { %v1580_v57 = vpop.f32.mrf.mxu3 }
 0x687   : > { %v1581_v58 = vadd.f32 %v4277_v56, %v1580_v57 }
 0x689   : > { %v1583_v59 = vmax.f32 %v1581_v58, 0.0 }
 0x68b   : > { %4057 = vmatmul.msk.f32.vlgmr.msra.gmra.mxu0 %vm1596_vm8, %v1583_v59 }
 0x708   : > { %v1617_v61 = vpop.f32.mrf.mxu0 }
 0x709   : > { %v1618_v62 = vadd.f32 %v4278_v60, %v1617_v61 }
 0x70b   : > { %v1620_v63 = vadd.f32 %v1618_v62, %v1551_v52 }
 0x70d   : > { %v1623_v0 = vsel %vm1178_vm0, %v1620_v63, 0.0 }
 0x70e   : > { %1624 = vadd.xlane.f32.xlu1 %v1623_v0 }
 0x781   : > { %v1625_v1 = vpop.xlane.xlu1 %1624 }
 0x782   : > { %v1626_v2 = vmul.f32 %v1625_v1, %v4773_v24 }
 0x784   : > { %v1627_v3 = vsub.f32 %v1620_v63, %v1626_v2 }
 0x786   : > { %v1628_v4 = vmul.f32 %v1627_v3, %v1627_v3 }
 0x788   : > { %v1629_v5 = vsel %vm1178_vm0, %v1628_v4, 0.0 }
 0x789   : > { %1630 = vadd.xlane.f32.xlu0 %v1629_v5 }
 0x7fc   : > { %v1631_v11 = vpop.xlane.xlu0 %1630 }
 0x7fd   : > { %v1632_v12 = vmul.f32 %v1631_v11, %v4773_v24 }
 0x7ff   : > { %v1633_v13 = vadd.f32 1e-05, %v1632_v12 }
 0x801   : > { %4336 = vrsqrt.f32 %v1633_v13  ;;  %vm1640_vm10 = vweird.f32 %v1633_v13 }
 0x807   : > { %v4337_v14 = vpop.eup %4336 }
 0x808   : > { %v1635_v15 = vmul.f32 %v4337_v14, %v1633_v13  ;;  %vm1641_vm9 = vweird.f32 %v4337_v14 }
 0x809   : > { %vm1642_vm11 = vmor %vm1640_vm10, %vm1641_vm9 }
 0x80a   : > { %v1636_v16 = vmul.f32 %v4337_v14, %v1635_v15 }
 0x80c   : > { %v1637_v17 = vmul.f32 0.5, %v1636_v16 }
 0x80e   : > { %v1638_v18 = vsub.f32 1.5, %v1637_v17 }
 0x810   : > { %v1639_v19 = vmul.f32 %v4337_v14, %v1638_v18 }
 0x812   : > { %v1643_v21 = vsel %vm1642_vm11, %v4337_v14, %v1639_v19 }
 0x813   : > { %v1644_v22 = vmul.f32 %v1643_v21, %v1627_v3 }
 0x815   : > { %v1648_v6 = vmul.f32 %v4279_v20, %v1644_v22 }
 0x817   : > { %v4806_v25 = vadd.f32 %v4280_v23, %v1648_v6 }
 0x819   : > { %4063 = vmatmul.msk.f32.vlgmr.msra.gmra.mxu2 %vm1178_vm0, %v4806_v25 }
 0x89c   : > { %v1683_v27 = vpop.f32.mrf.mxu2 }
 0x89d   : > { %v1684_v28 = vadd.f32 %v4281_v26, %v1683_v27 }
 0x89f   : > { %1724 = vrot.lane.b32.xlu1 %v1684_v28, %s5271_s22  ;;  %1754 = vrot.lane.b32.xlu0 %v1684_v28, %s5267_s28  ;;  %v1686_v29 = vmul.f32 0.35355338, %v1684_v28  ;;  %s5355_s28 = sld [smem:[#allocation18_spill]] }
 0x8a0   : > { %1688 = vrot.lane.b32.xlu2 %v1684_v28, %s5273_s23 }
 0x8a5   : > { %v2142_v5 = vld [vmem:[%s5355_s28 + $0x18] sm:$0xff]  ;;  %v2141_v8 = vld [vmem:[%s5355_s28 + $0x10] sm:$0xff]  ;;  %v2140_v11 = vld [vmem:[%s5355_s28 + $0x8] sm:$0xff] }
 0x8a6   : > { %v2139_v14 = vld [vmem:[%s5355_s28] sm:$0xff] }
 0x8a7   : > { %1819 = vrot.lane.b32.xlu0 %v1684_v28, %s5259_s1  ;;  %1817 = vrot.lane.b32.xlu1 %v1686_v29, %s5265_s7  ;;  %s5351_s1 = smov 56   ;;  %s5354_s7 = sld [smem:[#allocation3_spill]] }
 0x8a8   : > { %1752 = vrot.lane.b32.xlu2 %v1686_v29, %s5269_s26  ;;  %s5356_s26 = sld [smem:[#allocation5_spill]] }
 0x8ad   : > { %s1162_s22 = scalar_lea.vmem %s5354_s7, %s4707_s0  ;;  %s5357_s7 = sld [smem:[#allocation19_spill]] }
 0x8ae   : > { %v2136_v9 = vld [vmem:[%s1162_s22] sm:$0xff]  ;;  %s5358_s22 = smov 64   ;;  %s5379_s0 = sld [smem:[#allocation32_spill]] }
 0x8af   : > { %v2137_v10 = vld [vmem:[%s5356_s26] sm:$0xff]  ;;  %s5359_s26 = smov 120  }
 0x8b0   : > { %1884 = vrot.lane.b32.xlu2 %v1684_v28, %s5263_s2  ;;  %s5353_s2 = smov 48   ;;  %v4849_v13 = vadd.f32 %v2137_v10, %v2136_v9 }
 0x8b3   : > { %v4282_v26 = vld [vmem:[%s5357_s7] ss:$0 sm:$0xff] }
 0x8fa   : > { %v1689_v30 = vpop.permute.xlu2 %1688 }
 0x8fb   : > { %4064 = vmatpush.xpose.msk.msrb.mxu1 %vm1206_vm1, %v1689_v30  ;;  %v4079_v30 = vld [vmem:[%s5336_s29 + $0x38] sm:$0xff] }
 0x8fe   : > { %4065 = vmatmul.msk.f32.vlgmr.msrb.gmra.mxu1 %vm1206_vm1, %v1686_v29 }
 0x902   : > { %v1753_v31 = vpop.permute.xlu2 %1752 }
 0x90a   : > { %v1885_v34 = vpop.permute.xlu2 %1884 }
 0x911   : > { %v1725_v32 = vpop.permute.xlu1 %1724  ;;  %v1755_v33 = vpop.permute.xlu0 %1754 }
 0x912   : > { %1745 = vmatpush.msra.mxu3 %v1725_v32  ;;  %4067 = vmatpush.xpose.msk.msrb.mxu2 %vm1206_vm1, %v1755_v33  ;;  %v4077_v32 = vld [vmem:[%s5336_s29 + $0x28] sm:$0xff]  ;;  %v4076_v33 = vld [vmem:[%s5336_s29 + $0x20] sm:$0xff] }
 0x915   : > { %4068 = vmatmul.msk.f32.vlgmr.msrb.gmra.mxu2 %vm1206_vm1, %v1753_v31  ;;  %v4078_v31 = vld [vmem:[%s5336_s29 + $0x30] sm:$0xff]  ;;  %s5376_s29 = smov 96  }
 0x916   : > { %4073 = vmatpush.xpose.msk.msra.mxu2 %vm1206_vm1, %v1885_v34 }
 0x919   : > { %v1820_v35 = vpop.permute.xlu0 %1819  ;;  %v1818_v44 = vpop.permute.xlu1 %1817 }
 0x91a   : > { %4070 = vmatpush.xpose.msk.msrb.mxu3 %vm1206_vm1, %v1820_v35 }
 0x97b   : > { %v1712_v36 = vpop.f32.mrf.mxu1 }
 0x97c   : > { %v1715_v37 = vsel %vm1206_vm1, %v1712_v36, -inf }
 0x97d   : > { %1716 = vmax.xlane.f32.xlu0 %v1715_v37 }
 0x991   : > { %1882 = vrot.lane.b32.xlu0 %v1686_v29, %s5261_s10  ;;  %s5352_s10 = smov 40  }
 0x998   : > { %v1777_v38 = vpop.f32.mrf.mxu2 }
 0x999   : > { %v1780_v39 = vsel %vm1206_vm1, %v1777_v38, -inf }
 0x99a   : > { %1781 = vmax.xlane.f32.xlu2 %v1780_v39 }
 0x9b2   : > { %1789 = vrot.lane.b32.xlu2 %v1684_v28, %s5351_s1 }
 0x9f0   : > { %v1717_v40 = vpop.xlane.xlu0 %1716 }
 0x9f1   : > { %v1718_v41 = vsub.f32 %v1712_v36, %v1717_v40 }
 0x9f3   : > { %v1719_v42 = vmul.f32 1.442695, %v1718_v41 }
 0x9f5   : > { %4338 = vpow2.f32 %v1719_v42 }
 0x9fb   : > { %v4339_v43 = vpop.eup %4338 }
 0x9fc   : > { %4066 = vmatmul.msk.f32.vlgmr.msra.gmra.mxu3 %vm1206_vm1, %v4339_v43  ;;  %v1721_v52 = vsel %vm1206_vm1, %v4339_v43, 0.0 }
 0x9fd   : > { %1987 = vmatpush.msra.mxu3 %v4079_v30  ;;  %v4095_v30 = vld [vmem:[%s5335_s30 + $0x68] sm:$0xff] }
 0x9ff   : > { %1988 = vmatpush.msra.mxu3 %v4078_v31  ;;  %v4094_v31 = vld [vmem:[%s5335_s30 + $0x60] sm:$0xff] }
 0xa01   : > { %1989 = vmatpush.msra.mxu3 %v4077_v32  ;;  %v4093_v32 = vld [vmem:[%s5335_s30 + $0x58] sm:$0xff] }
 0xa03   : > { %v1883_v45 = vpop.permute.xlu0 %1882  ;;  %1990 = vmatpush.msra.mxu3 %v4076_v33  ;;  %v4092_v33 = vld [vmem:[%s5335_s30 + $0x50] sm:$0xff] }
 0xa04   : > { %4071 = vmatmul.msk.f32.vlgmr.msrb.gmra.mxu3 %vm1206_vm1, %v1818_v44  ;;  %4074 = vmatmul.msk.f32.vlgmr.msra.gmra.mxu2 %vm1206_vm1, %v1883_v45  ;;  %v4087_v45 = vld [vmem:[%s5343_s19 + $0x38] sm:$0xff] }
 0xa0d   : > { %v1782_v46 = vpop.xlane.xlu2 %1781 }
 0xa0e   : > { %v1783_v47 = vsub.f32 %v1777_v38, %v1782_v46  ;;  %v4086_v46 = vld [vmem:[%s5343_s19 + $0x30] sm:$0xff] }
 0xa10   : > { %v1784_v48 = vmul.f32 1.442695, %v1783_v47  ;;  %v4085_v47 = vld [vmem:[%s5343_s19 + $0x28] sm:$0xff] }
 0xa12   : > { %4340 = vpow2.f32 %v1784_v48  ;;  %v4084_v48 = vld [vmem:[%s5343_s19 + $0x20] sm:$0xff]  ;;  %s5369_s19 = sld [smem:[#allocation21_spill]] }
 0xa15   : > { %v1790_v49 = vpop.permute.xlu2 %1789 }
 0xa16   : > { %1810 = vmatpush.msra.mxu1 %v1790_v49 }
 0xa18   : > { %v4341_v50 = vpop.eup %4340 }
 0xa19   : > { %4069 = vmatmul.msk.f32.vlgmr.msra.gmra.mxu1 %vm1206_vm1, %v4341_v50  ;;  %v1786_v51 = vsel %vm1206_vm1, %v4341_v50, 0.0  ;;  %v4283_v50 = vld [vmem:[%s5346_s3 + $0x1] ss:$0 sm:$0xff]  ;;  %s5364_s3 = smov 104  }
 0xa1a   : > { %1787 = vadd.xlane.f32.xlu2 %v1786_v51 }
 0xa22   : > { %1722 = vadd.xlane.f32.xlu2 %v1721_v52 }
 0xa7f   : > { %v4834_v53 = vpop.f32.mrf.mxu3 }
 0xa87   : > { %v1842_v54 = vpop.f32.mrf.mxu3  ;;  %v1907_v55 = vpop.f32.mrf.mxu2 }
 0xa88   : > { %v1845_v56 = vsel %vm1206_vm1, %v1842_v54, -inf  ;;  %v1910_v57 = vsel %vm1206_vm1, %v1907_v55, -inf }
 0xa89   : > { %1846 = vmax.xlane.f32.xlu1 %v1845_v56  ;;  %1911 = vmax.xlane.f32.xlu0 %v1910_v57 }
 0xa8d   : > { %v1788_v7 = vpop.xlane.xlu2 %1787 }
 0xa95   : > { %v1723_v35 = vpop.xlane.xlu2 %1722 }
 0xa96   : > { %v1812_v15 = vpop.f32.mrf.mxu1 }
 0xa9d   : > { %1919 = vrot.lane.b32.xlu0 %v1684_v28, %s5352_s10 }
 0xaa2   : > { %1854 = vrot.lane.b32.xlu1 %v1684_v28, %s5353_s2 }
 0xafc   : > { %v1847_v58 = vpop.xlane.xlu1 %1846  ;;  %v1912_v59 = vpop.xlane.xlu0 %1911 }
 0xafd   : > { %v1848_v60 = vsub.f32 %v1842_v54, %v1847_v58  ;;  %v1913_v61 = vsub.f32 %v1907_v55, %v1912_v59 }
 0xaff   : > { %v1849_v62 = vmul.f32 1.442695, %v1848_v60  ;;  %v1914_v63 = vmul.f32 1.442695, %v1913_v61 }
 0xb01   : > { %4342 = vpow2.f32 %v1849_v62 }
 0xb02   : > { %4344 = vpow2.f32 %v1914_v63 }
 0xb03   : > { %4346 = vrcp.f32 %v1788_v7 }
 0xb07   : > { %v4343_v0 = vpop.eup %4342 }
 0xb08   : > { %v4345_v1 = vpop.eup %4344  ;;  %v1851_v2 = vsel %vm1206_vm1, %v4343_v0, 0.0 }
 0xb09   : > { %1852 = vadd.xlane.f32.xlu0 %v1851_v2  ;;  %v1916_v3 = vsel %vm1206_vm1, %v4345_v1, 0.0  ;;  %v4347_v16 = vpop.eup %4346 }
 0xb0a   : > { %1917 = vadd.xlane.f32.xlu1 %v1916_v3  ;;  %v1816_v17 = vmul.f32 %v4347_v16, %v1812_v15  ;;  %v4284_v15 = vld [vmem:[%s5345_s8 + $0x1] ss:$0 sm:$0xff]  ;;  %s5366_s8 = sld [smem:[#allocation20_spill]] }
 0xb0f   : > { %v1920_v4 = vpop.permute.xlu0 %1919 }
 0xb10   : > { %1940 = vmatpush.msrb.mxu1 %v1920_v4 }
 0xb11   : > { %4075 = vmatmul.msk.f32.vlgmr.msrb.gmra.mxu1 %vm1206_vm1, %v4345_v1 }
 0xb12   : > { %2162 = vmatpush.msra.mxu1 %v2142_v5 }
 0xb14   : > { %v1855_v12 = vpop.permute.xlu1 %1854  ;;  %2163 = vmatpush.msra.mxu1 %v2141_v8 }
 0xb15   : > { %1875 = vmatpush.msrb.mxu0 %v1855_v12 }
 0xb16   : > { %4072 = vmatmul.msk.f32.vlgmr.msrb.gmra.mxu0 %vm1206_vm1, %v4343_v0  ;;  %2164 = vmatpush.msra.mxu1 %v2140_v11 }
 0xb17   : > { %2055 = vmatpush.msra.mxu0 %v4087_v45 }
 0xb18   : > { %2165 = vmatpush.msra.mxu1 %v2139_v14 }
 0xb19   : > { %4102 = vmatmul.msk.f32.vlgmr.msra.gmra.mxu1 %vm1178_vm0, %v4849_v13  ;;  %2056 = vmatpush.msra.mxu0 %v4086_v46 }
 0xb1b   : > { %2057 = vmatpush.msra.mxu0 %v4085_v47 }
 0xb1d   : > { %1948 = vrot.lane.b32.xlu0 %v1816_v17, %s5279_s11  ;;  %2058 = vmatpush.msra.mxu0 %v4084_v48  ;;  %s5363_s11 = smov 80  }
 0xb7c   : > { %v1853_v19 = vpop.xlane.xlu0 %1852 }
 0xb7d   : > { %v1918_v18 = vpop.xlane.xlu1 %1917 }
 0xb7e   : > { %4348 = vrcp.f32 %v1918_v18 }
 0xb7f   : > { %4350 = vrcp.f32 %v1853_v19  ;;  %v4285_v19 = vld [vmem:[%s5344_s14 + $0x1] ss:$0 sm:$0xff]  ;;  %s5368_s14 = smov 16  }
 0xb80   : > { %4352 = vrcp.f32 %v1723_v35  ;;  %v4090_v35 = vld [vmem:[%s5335_s30 + $0x40] sm:$0xff] }
 0xb84   : > { %v4349_v20 = vpop.eup %4348 }
 0xb85   : > { %v4351_v23 = vpop.eup %4350 }
 0xb86   : > { %v4353_v36 = vpop.eup %4352 }
 0xb87   : > { %v1751_v38 = vmul.f32 %v4353_v36, %v4834_v53 }
 0xb8e   : > { %v1942_v21 = vpop.f32.mrf.mxu1 }
 0xb8f   : > { %v1946_v22 = vmul.f32 %v4349_v20, %v1942_v21  ;;  %v1949_v37 = vpop.permute.xlu0 %1948 }
 0xb90   : > { %v1959_v40 = vsel %vm1206_vm1, %v1751_v38, %v1949_v37 }
 0xb91   : > { %1956 = vrot.lane.b32.xlu1 %v1946_v22, %s5277_s16  ;;  %s5362_s16 = smov 72  }
 0xb93   : > { %v1877_v6 = vpop.f32.mrf.mxu0 }
 0xb94   : > { %v1881_v27 = vmul.f32 %v4351_v23, %v1877_v6 }
 0xb96   : > { %v2167_v28 = vpop.f32.mrf.mxu1  ;;  %1952 = vrot.lane.b32.xlu2 %v1881_v27, %s5275_s18  ;;  %s5361_s18 = smov 112   ;;  %v4097_v27 = vld [vmem:[%s5335_s30 + $0x78] sm:$0xff] }
 0xb97   : > { %v4859_v29 = vadd.f32 %v4282_v26, %v2167_v28  ;;  %2089 = vmatpush.msrb.mxu2 %v4097_v27  ;;  %v4096_v28 = vld [vmem:[%s5335_s30 + $0x70] sm:$0xff] }
 0xb99   : > { %2172 = vrot.lane.b32.xlu0 %v4859_v29, %s5273_s23  ;;  %v2170_v34 = vmul.f32 0.35355338, %v4859_v29  ;;  %s5360_s23 = smov 88   ;;  %2090 = vmatpush.msrb.mxu2 %v4096_v28 }
 0xb9b   : > { %2236 = vrot.lane.b32.xlu1 %v2170_v34, %s5359_s26  ;;  %2091 = vmatpush.msrb.mxu2 %v4095_v30 }
 0xb9d   : > { %2092 = vmatpush.msrb.mxu2 %v4094_v31 }
 0xb9f   : > { %2093 = vmatpush.msrb.mxu2 %v4093_v32  ;;  %v4288_v32 = vld [vmem:[%s5369_s19] ss:$0 sm:$0xff] }
 0xba1   : > { %2208 = vrot.lane.b32.xlu0 %v4859_v29, %s5358_s22  ;;  %2094 = vmatpush.msrb.mxu2 %v4092_v33 }
 0xbf0   : > { %v1953_v39 = vpop.permute.xlu2 %1952 }
 0xbf1   : > { %v1960_v41 = vsel %vm1477_vm2, %v1959_v40, %v1953_v39 }
 0xc03   : > { %v1957_v42 = vpop.permute.xlu1 %1956 }
 0xc04   : > { %v1961_v43 = vsel %vm1479_vm3, %v1960_v41, %v1957_v42 }
 0xc05   : > { %4081 = vmatmul.msk.f32.vlgmr.msra.gmra.mxu3 %vm1178_vm0, %v1961_v43  ;;  %v4286_v43 = vld [vmem:[%s5340_s24 + $0x1] ss:$0 sm:$0xff]  ;;  %s5372_s24 = sld [smem:[#allocation22_spill]] }
 0xc0b   : > { %v2173_v44 = vpop.permute.xlu0 %2172 }
 0xc0c   : > { %4103 = vmatpush.xpose.msk.msrb.mxu3 %vm1206_vm1, %v2173_v44 }
 0xc0d   : > { %v2237_v62 = vpop.permute.xlu1 %2236 }
 0xc0f   : > { %4104 = vmatmul.msk.f32.vlgmr.msrb.gmra.mxu3 %vm1206_vm1, %v2170_v34 }
 0xc13   : > { %v2209_v49 = vpop.permute.xlu0 %2208 }
 0xc14   : > { %2229 = vmatpush.msrb.mxu0 %v2209_v49 }
 0xc88   : > { %v1992_v51 = vpop.f32.mrf.mxu3 }
 0xc89   : > { %v1993_v52 = vadd.f32 %v4283_v50, %v1992_v51 }
 0xc8b   : > { %v1995_v53 = vadd.f32 %v1993_v52, %v4806_v25 }
 0xc8d   : > { %v2000_v54 = vsel %vm1178_vm0, %v1995_v53, 0.0 }
 0xc8e   : > { %2001 = vadd.xlane.f32.xlu2 %v2000_v54 }
 0xc92   : > { %v2196_v55 = vpop.f32.mrf.mxu3 }
 0xc93   : > { %v2199_v56 = vsel %vm1206_vm1, %v2196_v55, -inf }
 0xc94   : > { %2200 = vmax.xlane.f32.xlu1 %v2199_v56 }
 0xca6   : > { %2238 = vrot.lane.b32.xlu2 %v4859_v29, %s5360_s23 }
 0xcad   : > { %2301 = vrot.lane.b32.xlu1 %v2170_v34, %s5361_s18 }
 0xcae   : > { %2368 = vrot.lane.b32.xlu2 %v4859_v29, %s5362_s16 }
 0xd01   : > { %v2002_v57 = vpop.xlane.xlu2 %2001 }
 0xd02   : > { %v2003_v58 = vmul.f32 %v2002_v57, %v4773_v24 }
 0xd04   : > { %v2004_v59 = vsub.f32 %v1995_v53, %v2003_v58 }
 0xd06   : > { %v2005_v25 = vmul.f32 %v2004_v59, %v2004_v59 }
 0xd07   : > { %v2201_v11 = vpop.xlane.xlu1 %2200 }
 0xd08   : > { %v2006_v60 = vsel %vm1178_vm0, %v2005_v25, 0.0  ;;  %v2202_v16 = vsub.f32 %v2196_v55, %v2201_v11 }
 0xd09   : > { %2007 = vadd.xlane.f32.xlu0 %v2006_v60  ;;  %v2239_v61 = vpop.permute.xlu2 %2238 }
 0xd0a   : > { %4106 = vmatpush.xpose.msk.msrb.mxu1 %vm1206_vm1, %v2239_v61  ;;  %v2203_v21 = vmul.f32 1.442695, %v2202_v16  ;;  %v2448_v16 = vld [vmem:[%s5366_s8 + $0x10] sm:$0xff] }
 0xd0d   : > { %4107 = vmatmul.msk.f32.vlgmr.msrb.gmra.mxu1 %vm1206_vm1, %v2237_v62 }
 0xd11   : > { %v2369_v63 = vpop.permute.xlu2 %2368 }
 0xd12   : > { %4112 = vmatpush.xpose.msk.msra.mxu1 %vm1206_vm1, %v2369_v63 }
 0xd1d   : > { %2303 = vrot.lane.b32.xlu0 %v4859_v29, %s5363_s11 }
 0xd1f   : > { %v2302_v26 = vpop.permute.xlu1 %2301 }
 0xd25   : > { %2366 = vrot.lane.b32.xlu0 %v2170_v34, %s5364_s3  ;;  %v4091_v34 = vld [vmem:[%s5335_s30 + $0x48] sm:$0xff]  ;;  %s5377_s30 = sld [smem:[#allocation28_spill]] }
 0xd26   : > { %2095 = vmatpush.msrb.mxu2 %v4091_v34 }
 0xd28   : > { %2096 = vmatpush.msrb.mxu2 %v4090_v35 }
 0xd7c   : > { %v2008_v0 = vpop.xlane.xlu0 %2007 }
 0xd7d   : > { %v2009_v1 = vmul.f32 %v2008_v0, %v4773_v24 }
 0xd7f   : > { %v2010_v2 = vadd.f32 1e-05, %v2009_v1 }
 0xd81   : > { %4354 = vrsqrt.f32 %v2010_v2  ;;  %vm2017_vm13 = vweird.f32 %v2010_v2 }
 0xd82   : > { %4356 = vpow2.f32 %v2203_v21 }
 0xd87   : > { %v4355_v3 = vpop.eup %4354 }
 0xd88   : > { %v2012_v4 = vmul.f32 %v4355_v3, %v2010_v2  ;;  %vm2018_vm12 = vweird.f32 %v4355_v3  ;;  %v4357_v6 = vpop.eup %4356 }
 0xd89   : > { %vm2019_vm14 = vmor %vm2017_vm13, %vm2018_vm12  ;;  %v2205_v42 = vsel %vm1206_vm1, %v4357_v6, 0.0 }
 0xd8a   : > { %v2013_v5 = vmul.f32 %v4355_v3, %v2012_v4  ;;  %v2261_v7 = vpop.f32.mrf.mxu1 }
 0xd8b   : > { %v2264_v8 = vsel %vm1206_vm1, %v2261_v7, -inf }
 0xd8c   : > { %v2014_v9 = vmul.f32 0.5, %v2013_v5  ;;  %2265 = vmax.xlane.f32.xlu2 %v2264_v8 }
 0xd8e   : > { %v2015_v10 = vsub.f32 1.5, %v2014_v9 }
 0xd8f   : > { %v2304_v12 = vpop.permute.xlu0 %2303 }
 0xd90   : > { %v2016_v14 = vmul.f32 %v4355_v3, %v2015_v10 }
 0xd92   : > { %v2020_v17 = vsel %vm2019_vm14, %v4355_v3, %v2016_v14 }
 0xd93   : > { %v2021_v18 = vmul.f32 %v2020_v17, %v2004_v59 }
 0xd95   : > { %v2025_v20 = vmul.f32 %v4284_v15, %v2021_v18  ;;  %v2449_v15 = vld [vmem:[%s5366_s8 + $0x18] sm:$0xff]  ;;  %v2447_v18 = vld [vmem:[%s5366_s8 + $0x8] sm:$0xff] }
 0xd97   : > { %v2367_v22 = vpop.permute.xlu0 %2366  ;;  %v4903_v23 = vadd.f32 %v4285_v19, %v2025_v20  ;;  %v2446_v20 = vld [vmem:[%s5366_s8] sm:$0xff] }
 0xd98   : > { %4113 = vmatmul.msk.f32.vlgmr.msra.gmra.mxu1 %vm1206_vm1, %v2367_v22 }
 0xd99   : > { %4089 = vmatmul.msk.f32.vlgmr.msra.gmra.mxu0 %vm1178_vm0, %v4903_v23 }
 0xd9a   : > { %4109 = vmatpush.xpose.msk.msra.mxu0 %vm1206_vm1, %v2304_v12  ;;  %v4287_v12 = vld [vmem:[%s5342_s6 + $0x1] ss:$0 sm:$0xff]  ;;  %s5370_s6 = sld [smem:[#allocation26_spill]] }
 0xda1   : > { %4105 = vmatmul.msk.f32.vlgmr.msrb.gmra.mxu0 %vm1206_vm1, %v4357_v6 }
 0xda2   : > { %2469 = vmatpush.msrb.mxu0 %v2449_v15 }
 0xda4   : > { %2273 = vrot.lane.b32.xlu2 %v4859_v29, %s5351_s1  ;;  %2470 = vmatpush.msrb.mxu0 %v2448_v16 }
 0xda6   : > { %2471 = vmatpush.msrb.mxu0 %v2447_v18 }
 0xda8   : > { %2472 = vmatpush.msrb.mxu0 %v2446_v20 }
 0xda9   : > { %4110 = vmatmul.msk.f32.vlgmr.msra.gmra.mxu0 %vm1206_vm1, %v2302_v26 }
 0xdff   : > { %v2266_v36 = vpop.xlane.xlu2 %2265 }
 0xe00   : > { %v2267_v37 = vsub.f32 %v2261_v7, %v2266_v36 }
 0xe02   : > { %v2268_v38 = vmul.f32 1.442695, %v2267_v37 }
 0xe04   : > { %4358 = vpow2.f32 %v2268_v38 }
 0xe07   : > { %v2274_v39 = vpop.permute.xlu2 %2273 }
 0xe08   : > { %2294 = vmatpush.msra.mxu3 %v2274_v39 }
 0xe0a   : > { %v4359_v40 = vpop.eup %4358 }
 0xe0b   : > { %4108 = vmatmul.msk.f32.vlgmr.msra.gmra.mxu3 %vm1206_vm1, %v4359_v40  ;;  %v2270_v41 = vsel %vm1206_vm1, %v4359_v40, 0.0 }
 0xe0c   : > { %2271 = vadd.xlane.f32.xlu2 %v2270_v41 }
 0xe14   : > { %2206 = vadd.xlane.f32.xlu2 %v2205_v42  ;;  %v2544_v42 = vld [vmem:[%s5370_s6 + $0x18] sm:$0xff] }
 0xe15   : > { %v2391_v44 = vpop.f32.mrf.mxu1  ;;  %2564 = vmatpush.msrb.mxu1 %v2544_v42 }
 0xe16   : > { %v2060_v45 = vpop.f32.mrf.mxu0  ;;  %v2394_v46 = vsel %vm1206_vm1, %v2391_v44, -inf }
 0xe17   : > { %v2061_v47 = vadd.f32 %v4286_v43, %v2060_v45  ;;  %2395 = vmax.xlane.f32.xlu0 %v2394_v46  ;;  %v2542_v46 = vld [vmem:[%s5370_s6 + $0x8] sm:$0xff] }
 0xe19   : > { %v2063_v48 = vmax.f32 %v2061_v47, 0.0  ;;  %v2541_v47 = vld [vmem:[%s5370_s6] sm:$0xff] }
 0xe1b   : > { %4099 = vmatmul.msk.f32.vlgmr.msrb.gmra.mxu2 %vm1596_vm8, %v2063_v48 }
 0xe1e   : > { %v2231_v49 = vpop.f32.mrf.mxu0 }
 0xe26   : > { %v2326_v50 = vpop.f32.mrf.mxu0 }
 0xe27   : > { %v2329_v51 = vsel %vm1206_vm1, %v2326_v50, -inf }
 0xe28   : > { %2330 = vmax.xlane.f32.xlu1 %v2329_v51 }
 0xe2b   : > { %2403 = vrot.lane.b32.xlu0 %v4859_v29, %s5352_s10 }
 0xe41   : > { %2338 = vrot.lane.b32.xlu1 %v4859_v29, %s5353_s2 }
 0xe7f   : > { %v2272_v29 = vpop.xlane.xlu2 %2271 }
 0xe87   : > { %v2207_v21 = vpop.xlane.xlu2 %2206 }
 0xe8a   : > { %v2396_v52 = vpop.xlane.xlu0 %2395 }
 0xe8b   : > { %v2397_v53 = vsub.f32 %v2391_v44, %v2396_v52  ;;  %v2543_v44 = vld [vmem:[%s5370_s6 + $0x10] sm:$0xff] }
 0xe8c   : > { %2565 = vmatpush.msrb.mxu1 %v2543_v44 }
 0xe8d   : > { %v2398_v54 = vmul.f32 1.442695, %v2397_v53 }
 0xe8e   : > { %v2296_v63 = vpop.f32.mrf.mxu3  ;;  %2566 = vmatpush.msrb.mxu1 %v2542_v46 }
 0xe8f   : > { %4360 = vpow2.f32 %v2398_v54 }
 0xe90   : > { %2567 = vmatpush.msrb.mxu1 %v2541_v47 }
 0xe95   : > { %v4361_v55 = vpop.eup %4360 }
 0xe96   : > { %v2400_v56 = vsel %vm1206_vm1, %v4361_v55, 0.0 }
 0xe97   : > { %2401 = vadd.xlane.f32.xlu1 %v2400_v56 }
 0xe9b   : > { %v2331_v57 = vpop.xlane.xlu1 %2330 }
 0xe9c   : > { %v2332_v58 = vsub.f32 %v2326_v50, %v2331_v57 }
 0xe9d   : > { %v2404_v59 = vpop.permute.xlu0 %2403 }
 0xe9e   : > { %v2333_v25 = vmul.f32 1.442695, %v2332_v58  ;;  %2424 = vmatpush.msrb.mxu3 %v2404_v59  ;;  %v2098_v8 = vpop.f32.mrf.mxu2  ;;  %v4289_v59 = vld [vmem:[%s5339_s12 + $0x1] ss:$0 sm:$0xff]  ;;  %s5373_s12 = sld [smem:[#allocation23_spill]] }
 0xe9f   : > { %4114 = vmatmul.msk.f32.vlgmr.msrb.gmra.mxu3 %vm1206_vm1, %v4361_v55  ;;  %v2099_v14 = vadd.f32 %v4287_v12, %v2098_v8 }
 0xea0   : > { %4362 = vpow2.f32 %v2333_v25 }
 0xea1   : > { %4364 = vrcp.f32 %v2272_v29  ;;  %v2101_v17 = vadd.f32 %v2099_v14, %v4903_v23  ;;  %v4291_v14 = vld [vmem:[%s5372_s24] ss:$0 sm:$0xff] }
 0xea3   : > { %v2106_v19 = vsel %vm1178_vm0, %v2101_v17, 0.0 }
 0xea6   : > { %v4363_v60 = vpop.eup %4362 }
 0xea7   : > { %v2335_v61 = vsel %vm1206_vm1, %v4363_v60, 0.0  ;;  %v4365_v0 = vpop.eup %4364 }
 0xea8   : > { %2336 = vadd.xlane.f32.xlu0 %v2335_v61  ;;  %v2300_v1 = vmul.f32 %v4365_v0, %v2296_v63  ;;  %v4290_v61 = vld [vmem:[%s5338_s20 + $0x1] ss:$0 sm:$0xff]  ;;  %v2513_v63 = vld [vmem:[%s5371_s21 + $0x18] sm:$0xff]  ;;  %v2512_v0 = vld [vmem:[%s5371_s21 + $0x10] sm:$0xff]  ;;  %s5374_s20 = sld [smem:[#allocation27_spill]] }
 0xeae   : > { %v4293_v20 = vld [vmem:[%s5374_s20] ss:$0 sm:$0xff] }
 0xeb3   : > { %v2339_v62 = vpop.permute.xlu1 %2338 }
 0xeb4   : > { %2359 = vmatpush.msra.mxu2 %v2339_v62 }
 0xeb5   : > { %4111 = vmatmul.msk.f32.vlgmr.msra.gmra.mxu2 %vm1206_vm1, %v4363_v60 }
 0xeb6   : > { %2533 = vmatpush.msrb.mxu2 %v2513_v63 }
 0xeb8   : > { %2534 = vmatpush.msrb.mxu2 %v2512_v0 }
 0xebc   : > { %2432 = vrot.lane.b32.xlu0 %v2300_v1, %s5365_s5  ;;  %v2511_v1 = vld [vmem:[%s5371_s21 + $0x8] sm:$0xff] }
 0xebd   : > { %2535 = vmatpush.msrb.mxu2 %v2511_v1 }
 0xf0a   : > { %v2402_v2 = vpop.xlane.xlu1 %2401 }
 0xf0b   : > { %4366 = vrcp.f32 %v2402_v2  ;;  %v2510_v2 = vld [vmem:[%s5371_s21] sm:$0xff] }
 0xf0c   : > { %2536 = vmatpush.msrb.mxu2 %v2510_v2 }
 0xf11   : > { %v4367_v3 = vpop.eup %4366 }
 0xf1b   : > { %v2337_v7 = vpop.xlane.xlu0 %2336 }
 0xf1c   : > { %4368 = vrcp.f32 %v2337_v7 }
 0xf1d   : > { %4370 = vrcp.f32 %v2207_v21 }
 0xf22   : > { %v2426_v4 = vpop.f32.mrf.mxu3  ;;  %v4369_v9 = vpop.eup %4368 }
 0xf23   : > { %v2430_v5 = vmul.f32 %v4367_v3, %v2426_v4  ;;  %v4371_v22 = vpop.eup %4370 }
 0xf24   : > { %v2235_v26 = vmul.f32 %v4371_v22, %v2231_v49 }
 0xf25   : > { %2440 = vrot.lane.b32.xlu2 %v2430_v5, %s5367_s13 }
 0xf2e   : > { %v2433_v6 = vpop.permute.xlu0 %2432 }
 0xf2f   : > { %v2443_v27 = vsel %vm1206_vm1, %v2235_v26, %v2433_v6 }
 0xf38   : > { %v2361_v10 = vpop.f32.mrf.mxu2 }
 0xf39   : > { %v2365_v11 = vmul.f32 %v4369_v9, %v2361_v10 }
 0xf3b   : > { %2436 = vrot.lane.b32.xlu1 %v2365_v11, %s5368_s14 }
 0xf65   : > { %2107 = vadd.xlane.f32.xlu1 %v2106_v19 }
 0xf7f   : > { %v2441_v30 = vpop.permute.xlu2 %2440 }
 0xfad   : > { %v2437_v28 = vpop.permute.xlu1 %2436 }
 0xfae   : > { %v2444_v23 = vsel %vm1477_vm2, %v2443_v27, %v2437_v28  ;;  %v4294_v27 = vld [vmem:[%s5375_s25] ss:$0 sm:$0xff] }
 0xfaf   : > { %v2445_v31 = vsel %vm1479_vm3, %v2444_v23, %v2441_v30 }
 0xfb0   : > { %4115 = vmatmul.msk.f32.vlgmr.msrb.gmra.mxu0 %vm1178_vm0, %v2445_v31 }
 0xfd8   : > { %v2108_v33 = vpop.xlane.xlu1 %2107 }
 0xfd9   : > { %v2109_v35 = vmul.f32 %v2108_v33, %v4773_v24 }
 0xfdb   : > { %v2110_v38 = vsub.f32 %v2101_v17, %v2109_v35  ;;  %v4292_v17 = vld [vmem:[%s5373_s12] ss:$0 sm:$0xff] }
 0xfdd   : > { %v2111_v40 = vmul.f32 %v2110_v38, %v2110_v38 }
 0xfdf   : > { %v2112_v41 = vsel %vm1178_vm0, %v2111_v40, 0.0 }
0x102d   : > { %v2474_v34 = vpop.f32.mrf.mxu0 }
0x102e   : > { %v2475_v36 = vadd.f32 %v4288_v32, %v2474_v34 }
0x1030   : > { %v2477_v37 = vadd.f32 %v2475_v36, %v4849_v13 }
0x1032   : > { %v2480_v39 = vsel %vm1178_vm0, %v2477_v37, 0.0 }
0x1033   : > { %2481 = vadd.xlane.f32.xlu0 %v2480_v39 }
0x103b   : > { %2113 = vadd.xlane.f32.xlu0 %v2112_v41 }
0x10a6   : > { %v2482_v43 = vpop.xlane.xlu0 %2481 }
0x10a7   : > { %v2483_v45 = vmul.f32 %v2482_v43, %v4773_v24 }
0x10a9   : > { %v2484_v48 = vsub.f32 %v2477_v37, %v2483_v45 }
0x10ab   : > { %v2485_v13 = vmul.f32 %v2484_v48, %v2484_v48 }
0x10ad   : > { %v2486_v49 = vsel %vm1178_vm0, %v2485_v13, 0.0 }
0x10ae   : > { %2487 = vadd.xlane.f32.xlu2 %v2486_v49  ;;  %v2114_v50 = vpop.xlane.xlu0 %2113 }
0x10af   : > { %v2115_v51 = vmul.f32 %v2114_v50, %v4773_v24 }
0x10b1   : > { %v2116_v52 = vadd.f32 1e-05, %v2115_v51 }
0x10b3   : > { %4372 = vrsqrt.f32 %v2116_v52  ;;  %vm2123_vm4 = vweird.f32 %v2116_v52 }
0x10b9   : > { %v4373_v53 = vpop.eup %4372 }
0x10ba   : > { %v2118_v54 = vmul.f32 %v4373_v53, %v2116_v52  ;;  %vm2124_vm15 = vweird.f32 %v4373_v53 }
0x10bb   : > { %vm2125_vm5 = vmor %vm2123_vm4, %vm2124_vm15 }
0x10bc   : > { %v2119_v55 = vmul.f32 %v4373_v53, %v2118_v54 }
0x10be   : > { %v2120_v56 = vmul.f32 0.5, %v2119_v55 }
0x10c0   : > { %v2121_v57 = vsub.f32 1.5, %v2120_v56 }
0x10c2   : > { %v2122_v58 = vmul.f32 %v4373_v53, %v2121_v57 }
0x10c4   : > { %v2126_v25 = vsel %vm2125_vm5, %v4373_v53, %v2122_v58 }
0x10c5   : > { %v2127_v60 = vmul.f32 %v2126_v25, %v2110_v38 }
0x10c7   : > { %v2131_v29 = vmul.f32 %v4289_v59, %v2127_v60 }
0x10c9   : > { %v4964_v62 = vadd.f32 %v4290_v61, %v2131_v29 }
0x10cb   : > { %4117 = vmatmul.msk.f32.vlgmr.msrb.gmra.mxu1 %vm1178_vm0, %v4964_v62 }
0x1121   : > { %v2488_v3 = vpop.xlane.xlu2 %2487 }
0x1122   : > { %v2489_v4 = vmul.f32 %v2488_v3, %v4773_v24 }
0x1124   : > { %v2490_v5 = vadd.f32 1e-05, %v2489_v4 }
0x1126   : > { %4374 = vrsqrt.f32 %v2490_v5  ;;  %vm2497_vm7 = vweird.f32 %v2490_v5 }
0x112c   : > { %v4375_v7 = vpop.eup %4374 }
0x112d   : > { %v2492_v8 = vmul.f32 %v4375_v7, %v2490_v5  ;;  %vm2498_vm6 = vweird.f32 %v4375_v7 }
0x112e   : > { %vm2499_vm9 = vmor %vm2497_vm7, %vm2498_vm6 }
0x112f   : > { %v2493_v9 = vmul.f32 %v4375_v7, %v2492_v8 }
0x1131   : > { %v2494_v10 = vmul.f32 0.5, %v2493_v9 }
0x1133   : > { %v2495_v11 = vsub.f32 1.5, %v2494_v10 }
0x1135   : > { %v2496_v12 = vmul.f32 %v4375_v7, %v2495_v11 }
0x1137   : > { %v2500_v15 = vsel %vm2499_vm9, %v4375_v7, %v2496_v12 }
0x1138   : > { %v2501_v16 = vmul.f32 %v2500_v15, %v2484_v48 }
0x113a   : > { %v2505_v18 = vmul.f32 %v4291_v14, %v2501_v16  ;;  %v2849_v16 = vld [vmem:[%s5377_s30 + $0x18] sm:$0xff] }
0x113c   : > { %v4975_v19 = vadd.f32 %v4292_v17, %v2505_v18  ;;  %v2848_v17 = vld [vmem:[%s5377_s30 + $0x10] sm:$0xff]  ;;  %v2847_v18 = vld [vmem:[%s5377_s30 + $0x8] sm:$0xff] }
0x113e   : > { %4116 = vmatmul.msk.f32.vlgmr.msrb.gmra.mxu2 %vm1178_vm0, %v4975_v19 }
0x1148   : > { %v2569_v21 = vpop.f32.mrf.mxu1 }
0x1149   : > { %v2570_v22 = vadd.f32 %v4293_v20, %v2569_v21  ;;  %v2846_v20 = vld [vmem:[%s5377_s30] sm:$0xff] }
0x114b   : > { %2703 = vrot.lane.b32.xlu1 %v2570_v22, %s5361_s18  ;;  %2638 = vrot.lane.b32.xlu2 %v2570_v22, %s5359_s26 }
0x114c   : > { %4118 = vmatpush.xpose.msk.msra.mxu3 %vm1206_vm1, %v2570_v22 }
0x11a5   : > { %v2639_v6 = vpop.permute.xlu2 %2638 }
0x11a6   : > { %4121 = vmatpush.xpose.msk.msra.mxu2 %vm1206_vm1, %v2639_v6 }
0x11bd   : > { %v2704_v26 = vpop.permute.xlu1 %2703 }
0x11be   : > { %4124 = vmatpush.xpose.msk.msrb.mxu3 %vm1206_vm1, %v2704_v26 }
0x11c1   : > { %v2538_v28 = vpop.f32.mrf.mxu2 }
0x11c2   : > { %v2539_v30 = vadd.f32 %v4294_v27, %v2538_v28 }
0x11c4   : > { %v2572_v23 = vmul.f32 0.35355338, %v2539_v30 }
0x11c6   : > { %2636 = vrot.lane.b32.xlu0 %v2572_v23, %s5359_s26  ;;  %2766 = vrot.lane.b32.xlu1 %v2572_v23, %s5364_s3 }
0x11c7   : > { %2701 = vrot.lane.b32.xlu2 %v2572_v23, %s5361_s18  ;;  %4119 = vmatmul.msk.f32.vlgmr.msra.gmra.mxu3 %vm1206_vm1, %v2572_v23 }
0x11c8   : > { %2869 = vmatpush.msra.mxu3 %v2849_v16 }
0x11ca   : > { %2870 = vmatpush.msra.mxu3 %v2848_v17 }
0x11cc   : > { %2871 = vmatpush.msra.mxu3 %v2847_v18  ;;  %v4136_v18 = vld [vmem:[%s5355_s28 + $0x38] sm:$0xff] }
0x11ce   : > { %2768 = vrot.lane.b32.xlu0 %v2570_v22, %s5364_s3  ;;  %2872 = vmatpush.msra.mxu3 %v2846_v20  ;;  %v4135_v20 = vld [vmem:[%s5355_s28 + $0x30] sm:$0xff] }
0x11cf   : > { %2608 = vrot.lane.b32.xlu2 %v2570_v22, %s5376_s29 }
0x1221   : > { %v2702_v31 = vpop.permute.xlu2 %2701 }
0x1222   : > { %4125 = vmatmul.msk.f32.vlgmr.msrb.gmra.mxu3 %vm1206_vm1, %v2702_v31 }
0x1229   : > { %v2609_v32 = vpop.permute.xlu2 %2608 }
0x122a   : > { %2629 = vmatpush.msra.mxu0 %v2609_v32  ;;  %v4295_v32 = vld [vmem:[%s5378_s15] ss:$0 sm:$0xff]  ;;  %s5381_s15 = sld [smem:[#allocation30_spill]] }
0x1238   : > { %v2637_v33 = vpop.permute.xlu0 %2636  ;;  %v2767_v35 = vpop.permute.xlu1 %2766 }
0x1239   : > { %4122 = vmatmul.msk.f32.vlgmr.msra.gmra.mxu2 %vm1206_vm1, %v2637_v33 }
0x1240   : > { %v2769_v34 = vpop.permute.xlu0 %2768 }
0x1241   : > { %4127 = vmatpush.xpose.msk.msrb.mxu2 %vm1206_vm1, %v2769_v34 }
0x1244   : > { %4128 = vmatmul.msk.f32.vlgmr.msrb.gmra.mxu2 %vm1206_vm1, %v2767_v35 }
0x124a   : > { %v2596_v36 = vpop.f32.mrf.mxu3 }
0x124b   : > { %v2599_v37 = vsel %vm1206_vm1, %v2596_v36, -inf }
0x124c   : > { %2600 = vmax.xlane.f32.xlu0 %v2599_v37 }
0x12a5   : > { %v2726_v38 = vpop.f32.mrf.mxu3 }
0x12a6   : > { %v2729_v39 = vsel %vm1206_vm1, %v2726_v38, -inf }
0x12a7   : > { %2730 = vmax.xlane.f32.xlu1 %v2729_v39 }
0x12bc   : > { %v2661_v40 = vpop.f32.mrf.mxu2 }
0x12bd   : > { %v2664_v41 = vsel %vm1206_vm1, %v2661_v40, -inf }
0x12be   : > { %2665 = vmax.xlane.f32.xlu2 %v2664_v41 }
0x12bf   : > { %v2601_v42 = vpop.xlane.xlu0 %2600 }
0x12c0   : > { %v2602_v43 = vsub.f32 %v2596_v36, %v2601_v42  ;;  %2673 = vrot.lane.b32.xlu1 %v2570_v22, %s5360_s23  ;;  %v2913_v42 = vld [vmem:[%s5379_s0 + $0x18] sm:$0xff] }
0x12c2   : > { %v2603_v44 = vmul.f32 1.442695, %v2602_v43  ;;  %v2912_v43 = vld [vmem:[%s5379_s0 + $0x10] sm:$0xff] }
0x12c4   : > { %4376 = vpow2.f32 %v2603_v44  ;;  %v2910_v44 = vld [vmem:[%s5379_s0] sm:$0xff] }
0x12c7   : > { %v2791_v45 = vpop.f32.mrf.mxu2 }
0x12c8   : > { %v2794_v46 = vsel %vm1206_vm1, %v2791_v45, -inf }
0x12c9   : > { %2795 = vmax.xlane.f32.xlu0 %v2794_v46  ;;  %v2948_v46 = vld [vmem:[%s5380_s4 + $0x30] sm:$0xff] }
0x12ca   : > { %v4377_v47 = vpop.eup %4376 }
0x12cb   : > { %4120 = vmatmul.msk.f32.vlgmr.msra.gmra.mxu0 %vm1206_vm1, %v4377_v47  ;;  %v2605_v61 = vsel %vm1206_vm1, %v4377_v47, 0.0  ;;  %v2947_v47 = vld [vmem:[%s5380_s4 + $0x28] sm:$0xff] }
0x12d6   : > { %2803 = vrot.lane.b32.xlu2 %v2570_v22, %s5362_s16 }
0x12dd   : > { %2738 = vrot.lane.b32.xlu0 %v2570_v22, %s5363_s11 }
0x131a   : > { %v2731_v48 = vpop.xlane.xlu1 %2730 }
0x131b   : > { %v2732_v13 = vsub.f32 %v2726_v38, %v2731_v48 }
0x131d   : > { %v2733_v49 = vmul.f32 1.442695, %v2732_v13 }
0x131f   : > { %4378 = vpow2.f32 %v2733_v49  ;;  %v2946_v49 = vld [vmem:[%s5380_s4 + $0x20] sm:$0xff] }
0x1325   : > { %v4379_v50 = vpop.eup %4378 }
0x1326   : > { %v2735_v51 = vsel %vm1206_vm1, %v4379_v50, 0.0 }
0x1327   : > { %2736 = vadd.xlane.f32.xlu1 %v2735_v51  ;;  %v2945_v51 = vld [vmem:[%s5380_s4 + $0x18] sm:$0xff] }
0x1331   : > { %v2666_v52 = vpop.xlane.xlu2 %2665 }
0x1332   : > { %v2674_v53 = vpop.permute.xlu1 %2673  ;;  %v2667_v54 = vsub.f32 %v2661_v40, %v2666_v52 }
0x1333   : > { %2694 = vmatpush.msra.mxu1 %v2674_v53 }
0x1334   : > { %v2668_v55 = vmul.f32 1.442695, %v2667_v54 }
0x1336   : > { %4380 = vpow2.f32 %v2668_v55 }
0x1339   : > { %v2804_v56 = vpop.permute.xlu2 %2803 }
0x133a   : > { %2824 = vmatpush.msrb.mxu1 %v2804_v56 }
0x133c   : > { %v4381_v57 = vpop.eup %4380  ;;  %v2796_v58 = vpop.xlane.xlu0 %2795 }
0x133d   : > { %v2797_v59 = vsub.f32 %v2791_v45, %v2796_v58  ;;  %4123 = vmatmul.msk.f32.vlgmr.msra.gmra.mxu1 %vm1206_vm1, %v4381_v57  ;;  %v2670_v25 = vsel %vm1206_vm1, %v4381_v57, 0.0  ;;  %v2949_v45 = vld [vmem:[%s5380_s4 + $0x38] sm:$0xff]  ;;  %v4296_v58 = vld [vmem:[%s5381_s15] ss:$0 sm:$0xff]  ;;  %s5385_s15 = sld [smem:[#allocation36_spill]] }
0x133e   : > { %2671 = vadd.xlane.f32.xlu0 %v2670_v25  ;;  %2965 = vmatpush.msra.mxu2 %v2949_v45 }
0x133f   : > { %v2798_v60 = vmul.f32 1.442695, %v2797_v59  ;;  %3035 = vmatpush.msra.mxu1 %v4136_v18  ;;  %v4303_v18 = vld [vmem:[%s5374_s20 + $0x1] ss:$0 sm:$0xff] }
0x1340   : > { %2966 = vmatpush.msra.mxu2 %v2948_v46 }
0x1341   : > { %4382 = vpow2.f32 %v2798_v60  ;;  %v4297_v60 = vld [vmem:[%s5382_s17] ss:$0 sm:$0xff]  ;;  %3036 = vmatpush.msra.mxu1 %v4135_v20 }
0x1342   : > { %2967 = vmatpush.msra.mxu2 %v2947_v47 }
0x1344   : > { %2968 = vmatpush.msra.mxu2 %v2946_v49  ;;  %v4167_v49 = vld [vmem:[%s5370_s6 + $0x30] sm:$0xff] }
0x1346   : > { %2606 = vadd.xlane.f32.xlu0 %v2605_v61  ;;  %2969 = vmatpush.msra.mxu2 %v2945_v51  ;;  %v4165_v51 = vld [vmem:[%s5370_s6 + $0x20] sm:$0xff] }
0x1347   : > { %v4383_v29 = vpop.eup %4382 }
0x1348   : > { %4129 = vmatmul.msk.f32.vlgmr.msrb.gmra.mxu1 %vm1206_vm1, %v4383_v29  ;;  %v2800_v63 = vsel %vm1206_vm1, %v4383_v29, 0.0  ;;  %v2631_v10 = vpop.f32.mrf.mxu0 }
0x1349   : > { %2801 = vadd.xlane.f32.xlu2 %v2800_v63  ;;  %v2944_v63 = vld [vmem:[%s5380_s4 + $0x10] sm:$0xff] }
0x134a   : > { %2970 = vmatpush.msra.mxu2 %v2944_v63 }
0x134f   : > { %v2739_v0 = vpop.permute.xlu0 %2738 }
0x1350   : > { %2759 = vmatpush.msrb.mxu0 %v2739_v0  ;;  %v2943_v0 = vld [vmem:[%s5380_s4 + $0x8] sm:$0xff] }
0x1351   : > { %4126 = vmatmul.msk.f32.vlgmr.msrb.gmra.mxu0 %vm1206_vm1, %v4379_v50  ;;  %2971 = vmatpush.msra.mxu2 %v2943_v0 }
0x1352   : > { %2933 = vmatpush.msra.mxu0 %v2913_v42 }
0x1354   : > { %2934 = vmatpush.msra.mxu0 %v2912_v43 }
0x139a   : > { %v2737_v8 = vpop.xlane.xlu1 %2736 }
0x13b1   : > { %v2672_v1 = vpop.xlane.xlu0 %2671 }
0x13b2   : > { %4384 = vrcp.f32 %v2672_v1  ;;  %v2942_v1 = vld [vmem:[%s5380_s4] sm:$0xff] }
0x13b3   : > { %2972 = vmatpush.msra.mxu2 %v2942_v1 }
0x13b8   : > { %v4385_v2 = vpop.eup %4384 }
0x13b9   : > { %v2607_v21 = vpop.xlane.xlu0 %2606 }
0x13ba   : > { %v2696_v3 = vpop.f32.mrf.mxu1 }
0x13bb   : > { %v2700_v4 = vmul.f32 %v4385_v2, %v2696_v3 }
0x13bc   : > { %v2802_v5 = vpop.xlane.xlu2 %2801 }
0x13bd   : > { %2832 = vrot.lane.b32.xlu1 %v2700_v4, %s5365_s5  ;;  %4386 = vrcp.f32 %v2802_v5 }
0x13be   : > { %4388 = vrcp.f32 %v2737_v8 }
0x13bf   : > { %4390 = vrcp.f32 %v2607_v21  ;;  %v4134_v21 = vld [vmem:[%s5355_s28 + $0x28] sm:$0xff] }
0x13c0   : > { %3037 = vmatpush.msra.mxu1 %v4134_v21 }
0x13c3   : > { %v4387_v7 = vpop.eup %4386 }
0x13c4   : > { %v4389_v12 = vpop.eup %4388 }
0x13c5   : > { %v2826_v9 = vpop.f32.mrf.mxu1  ;;  %v4391_v22 = vpop.eup %4390 }
0x13c6   : > { %v2830_v11 = vmul.f32 %v4387_v7, %v2826_v9  ;;  %v2635_v26 = vmul.f32 %v4391_v22, %v2631_v10  ;;  %v4299_v7 = vld [vmem:[%s5384_s27] ss:$0 sm:$0xff]  ;;  %s5386_s27 = smov %s5385_s15 }
0x13c7   : > { %v4133_v22 = vld [vmem:[%s5355_s28 + $0x20] sm:$0xff] }
0x13c8   : > { %2840 = vrot.lane.b32.xlu0 %v2830_v11, %s5367_s13  ;;  %3038 = vmatpush.msra.mxu1 %v4133_v22 }
0x13ce   : > { %v2761_v14 = vpop.f32.mrf.mxu0 }
0x13cf   : > { %v2765_v15 = vmul.f32 %v4389_v12, %v2761_v14 }
0x13d1   : > { %2836 = vrot.lane.b32.xlu2 %v2765_v15, %s5368_s14 }
0x142b   : > { %v2837_v28 = vpop.permute.xlu2 %2836 }
0x142f   : > { %v2833_v6 = vpop.permute.xlu1 %2832 }
0x1430   : > { %v2843_v27 = vsel %vm1206_vm1, %v2635_v26, %v2833_v6 }
0x1431   : > { %v2844_v30 = vsel %vm1477_vm2, %v2843_v27, %v2837_v28 }
0x143a   : > { %v2841_v23 = vpop.permute.xlu0 %2840 }
0x143b   : > { %v2845_v31 = vsel %vm1479_vm3, %v2844_v30, %v2841_v23 }
0x143c   : > { %4130 = vmatmul.msk.f32.vlgmr.msra.gmra.mxu3 %vm1178_vm0, %v2845_v31 }
0x14bf   : > { %v2874_v33 = vpop.f32.mrf.mxu3 }
0x14c0   : > { %v2875_v34 = vadd.f32 %v4295_v32, %v2874_v33 }
0x14c2   : > { %v2877_v35 = vadd.f32 %v2875_v34, %v4975_v19  ;;  %v2911_v19 = vld [vmem:[%s5379_s0 + $0x8] sm:$0xff]  ;;  %s5383_s0 = sld [smem:[#allocation33_spill]]  ;;  %v4300_v34 = vld [vmem:[%s5385_s15] ss:$0 sm:$0xff] }
0x14c3   : > { %2935 = vmatpush.msra.mxu0 %v2911_v19 }
0x14c4   : > { %v2880_v36 = vsel %vm1178_vm0, %v2877_v35, 0.0 }
0x14c5   : > { %2881 = vadd.xlane.f32.xlu1 %v2880_v36  ;;  %2936 = vmatpush.msra.mxu0 %v2910_v44 }
0x14c8   : > { %v4298_v2 = vld [vmem:[%s5383_s0] ss:$0 sm:$0xff] }
0x1538   : > { %v2882_v37 = vpop.xlane.xlu1 %2881 }
0x1539   : > { %v2883_v38 = vmul.f32 %v2882_v37, %v4773_v24  ;;  %v4301_v37 = vld [vmem:[%s4678_s9] ss:$0 sm:$0xff] }
0x153b   : > { %v2884_v39 = vsub.f32 %v2877_v35, %v2883_v38 }
0x153d   : > { %v2885_v40 = vmul.f32 %v2884_v39, %v2884_v39 }
0x153f   : > { %v2886_v41 = vsel %vm1178_vm0, %v2885_v40, 0.0  ;;  %v4302_v40 = vld [vmem:[%s5357_s7 + $0x1] ss:$0 sm:$0xff] }
0x1540   : > { %2887 = vadd.xlane.f32.xlu0 %v2886_v41 }
0x15b3   : > { %v2888_v48 = vpop.xlane.xlu0 %2887 }
0x15b4   : > { %v2889_v13 = vmul.f32 %v2888_v48, %v4773_v24  ;;  %v4168_v48 = vld [vmem:[%s5370_s6 + $0x38] sm:$0xff] }
0x15b6   : > { %v2890_v50 = vadd.f32 1e-05, %v2889_v13 }
0x15b8   : > { %4392 = vrsqrt.f32 %v2890_v50  ;;  %vm2897_vm11 = vweird.f32 %v2890_v50 }
0x15be   : > { %v4393_v52 = vpop.eup %4392 }
0x15bf   : > { %v2892_v53 = vmul.f32 %v4393_v52, %v2890_v50  ;;  %vm2898_vm10 = vweird.f32 %v4393_v52  ;;  %v4166_v50 = vld [vmem:[%s5370_s6 + $0x28] sm:$0xff] }
0x15c0   : > { %vm2899_vm12 = vmor %vm2897_vm11, %vm2898_vm10  ;;  %vm3929_vm10 = vcmask 105472  }
0x15c1   : > { %v2893_v54 = vmul.f32 %v4393_v52, %v2892_v53 }
0x15c3   : > { %v2894_v55 = vmul.f32 0.5, %v2893_v54 }
0x15c5   : > { %v2895_v56 = vsub.f32 1.5, %v2894_v55 }
0x15c7   : > { %v2896_v57 = vmul.f32 %v4393_v52, %v2895_v56 }
0x15c9   : > { %v2900_v59 = vsel %vm2899_vm12, %v4393_v52, %v2896_v57 }
0x15ca   : > { %v2901_v25 = vmul.f32 %v2900_v59, %v2884_v39 }
0x15cc   : > { %v2905_v61 = vmul.f32 %v4296_v58, %v2901_v25 }
0x15ce   : > { %v2909_v29 = vadd.f32 %v4297_v60, %v2905_v61 }
0x15d0   : > { %4131 = vmatmul.msk.f32.vlgmr.msra.gmra.mxu0 %vm1178_vm0, %v2909_v29 }
0x164d   : > { %v2938_v3 = vpop.f32.mrf.mxu0 }
0x164e   : > { %v2939_v4 = vadd.f32 %v4298_v2, %v2938_v3 }
0x1650   : > { %v2941_v5 = vmax.f32 %v2939_v4, 0.0 }
0x1652   : > { %4132 = vmatmul.msk.f32.vlgmr.msra.gmra.mxu2 %vm1596_vm8, %v2941_v5 }
0x16d5   : > { %v2974_v8 = vpop.f32.mrf.mxu2 }
0x16d6   : > { %v2975_v9 = vadd.f32 %v4299_v7, %v2974_v8 }
0x16d8   : > { %v2977_v10 = vadd.f32 %v2975_v9, %v2909_v29 }
0x16da   : > { %v2980_v11 = vsel %vm1178_vm0, %v2977_v10, 0.0 }
0x16db   : > { %2981 = vadd.xlane.f32.xlu2 %v2980_v11 }
0x174e   : > { %v2982_v12 = vpop.xlane.xlu2 %2981 }
0x174f   : > { %v2983_v14 = vmul.f32 %v2982_v12, %v4773_v24 }
0x1751   : > { %v2984_v15 = vsub.f32 %v2977_v10, %v2983_v14 }
0x1753   : > { %v2985_v16 = vmul.f32 %v2984_v15, %v2984_v15 }
0x1755   : > { %v2986_v17 = vsel %vm1178_vm0, %v2985_v16, 0.0 }
0x1756   : > { %2987 = vadd.xlane.f32.xlu1 %v2986_v17 }
0x17c9   : > { %v2988_v6 = vpop.xlane.xlu1 %2987 }
0x17ca   : > { %v2989_v26 = vmul.f32 %v2988_v6, %v4773_v24 }
0x17cc   : > { %v2990_v27 = vadd.f32 1e-05, %v2989_v26 }
0x17ce   : > { %4394 = vrsqrt.f32 %v2990_v27  ;;  %vm2997_vm14 = vweird.f32 %v2990_v27 }
0x17d4   : > { %v4395_v28 = vpop.eup %4394 }
0x17d5   : > { %v2992_v30 = vmul.f32 %v4395_v28, %v2990_v27  ;;  %vm2998_vm13 = vweird.f32 %v4395_v28 }
0x17d6   : > { %vm2999_vm15 = vmor %vm2997_vm14, %vm2998_vm13 }
0x17d7   : > { %v2993_v23 = vmul.f32 %v4395_v28, %v2992_v30 }
0x17d9   : > { %v2994_v31 = vmul.f32 0.5, %v2993_v23 }
0x17db   : > { %v2995_v32 = vsub.f32 1.5, %v2994_v31 }
0x17dd   : > { %v2996_v33 = vmul.f32 %v4395_v28, %v2995_v32 }
0x17df   : > { %v3000_v35 = vsel %vm2999_vm15, %v4395_v28, %v2996_v33 }
0x17e0   : > { %v3001_v36 = vmul.f32 %v3000_v35, %v2984_v15 }
0x17e2   : > { %v3005_v38 = vmul.f32 %v4300_v34, %v3001_v36 }
0x17e4   : > { %v5056_v39 = vadd.f32 %v4301_v37, %v3005_v38 }
0x17e6   : > { %4138 = vmatmul.msk.f32.vlgmr.msra.gmra.mxu1 %vm1178_vm0, %v5056_v39 }
0x1863   : > { %v3040_v41 = vpop.f32.mrf.mxu1 }
0x1864   : > { %v5061_v42 = vadd.f32 %v4302_v40, %v3040_v41  ;;  %v4162_v41 = vld [vmem:[%s5371_s21 + $0x38] sm:$0xff] }
0x1866   : > { %3081 = vrot.lane.b32.xlu2 %v5061_v42, %s5358_s22  ;;  %3111 = vrot.lane.b32.xlu1 %v5061_v42, %s5360_s23  ;;  %v3043_v43 = vmul.f32 0.35355338, %v5061_v42 }
0x1867   : > { %3045 = vrot.lane.b32.xlu0 %v5061_v42, %s5376_s29 }
0x186e   : > { %3241 = vrot.lane.b32.xlu1 %v5061_v42, %s5362_s16 }
0x186f   : > { %3176 = vrot.lane.b32.xlu0 %v5061_v42, %s5363_s11 }
0x1877   : > { %3109 = vrot.lane.b32.xlu0 %v3043_v43, %s5359_s26 }
0x187f   : > { %3239 = vrot.lane.b32.xlu0 %v3043_v43, %s5364_s3 }
0x18c0   : > { %v3082_v19 = vpop.permute.xlu2 %3081 }
0x18c1   : > { %3102 = vmatpush.msrb.mxu0 %v3082_v19  ;;  %v4159_v19 = vld [vmem:[%s5371_s21 + $0x20] sm:$0xff] }
0x18d8   : > { %v3112_v44 = vpop.permute.xlu1 %3111 }
0x18d9   : > { %v3046_v45 = vpop.permute.xlu0 %3045  ;;  %4142 = vmatpush.xpose.msk.msrb.mxu1 %vm1206_vm1, %v3112_v44  ;;  %v4154_v44 = vld [vmem:[%s5366_s8 + $0x38] sm:$0xff] }
0x18da   : > { %4139 = vmatpush.xpose.msk.msrb.mxu3 %vm1206_vm1, %v3046_v45  ;;  %v4153_v45 = vld [vmem:[%s5366_s8 + $0x30] sm:$0xff] }
0x18dd   : > { %4140 = vmatmul.msk.f32.vlgmr.msrb.gmra.mxu3 %vm1206_vm1, %v3043_v43 }
0x18e0   : > { %v3242_v46 = vpop.permute.xlu1 %3241 }
0x18e1   : > { %v3177_v47 = vpop.permute.xlu0 %3176  ;;  %4148 = vmatpush.xpose.msk.msra.mxu1 %vm1206_vm1, %v3242_v46  ;;  %v4152_v46 = vld [vmem:[%s5366_s8 + $0x28] sm:$0xff] }
0x18e2   : > { %4145 = vmatpush.xpose.msk.msra.mxu0 %vm1206_vm1, %v3177_v47  ;;  %v4151_v47 = vld [vmem:[%s5366_s8 + $0x20] sm:$0xff] }
0x18e9   : > { %v3110_v13 = vpop.permute.xlu0 %3109 }
0x18ea   : > { %4143 = vmatmul.msk.f32.vlgmr.msrb.gmra.mxu1 %vm1206_vm1, %v3110_v13 }
0x18eb   : > { %3442 = vmatpush.msrb.mxu1 %v4168_v48 }
0x18ed   : > { %3443 = vmatpush.msrb.mxu1 %v4167_v49 }
0x18ef   : > { %3444 = vmatpush.msrb.mxu1 %v4166_v50 }
0x18f1   : > { %v3240_v52 = vpop.permute.xlu0 %3239  ;;  %3445 = vmatpush.msrb.mxu1 %v4165_v51 }
0x18f2   : > { %4149 = vmatmul.msk.f32.vlgmr.msra.gmra.mxu1 %vm1206_vm1, %v3240_v52 }
0x18fa   : > { %4170 = vmatmul.msk.f32.vlgmr.msrb.gmra.mxu1 %vm1178_vm0, %v4964_v62 }
0x1960   : > { %v3069_v53 = vpop.f32.mrf.mxu3 }
0x1961   : > { %v3072_v54 = vsel %vm1206_vm1, %v3069_v53, -inf }
0x1962   : > { %3073 = vmax.xlane.f32.xlu2 %v3072_v54 }
0x1967   : > { %v3134_v55 = vpop.f32.mrf.mxu1 }
0x1968   : > { %v3137_v56 = vsel %vm1206_vm1, %v3134_v55, -inf }
0x1969   : > { %3138 = vmax.xlane.f32.xlu1 %v3137_v56 }
0x196f   : > { %v3264_v57 = vpop.f32.mrf.mxu1 }
0x1970   : > { %v3267_v58 = vsel %vm1206_vm1, %v3264_v57, -inf }
0x1971   : > { %3268 = vmax.xlane.f32.xlu0 %v3267_v58  ;;  %v4304_v58 = vld [vmem:[%s5369_s19 + $0x1] ss:$0 sm:$0xff] }
0x1977   : > { %v3447_v20 = vpop.f32.mrf.mxu1 }
0x1978   : > { %v5108_v22 = vadd.f32 %v4303_v18, %v3447_v20  ;;  %v4307_v20 = vld [vmem:[%s5375_s25 + $0x1] ss:$0 sm:$0xff] }
0x197a   : > { %3174 = vrot.lane.b32.xlu2 %v3043_v43, %s5361_s18  ;;  %v4160_v43 = vld [vmem:[%s5371_s21 + $0x28] sm:$0xff] }
0x1982   : > { %3211 = vrot.lane.b32.xlu1 %v5061_v42, %s5353_s2  ;;  %s5394_s2 = sld [smem:[#allocation39_spill]] }
0x1985   : > { %3276 = vrot.lane.b32.xlu0 %v5061_v42, %s5352_s10 }
0x19d5   : > { %v3074_v62 = vpop.xlane.xlu2 %3073 }
0x19d6   : > { %v3075_v59 = vsub.f32 %v3069_v53, %v3074_v62 }
0x19d8   : > { %v3076_v25 = vmul.f32 1.442695, %v3075_v59 }
0x19da   : > { %4396 = vpow2.f32 %v3076_v25 }
0x19dc   : > { %v3139_v1 = vpop.xlane.xlu1 %3138 }
0x19dd   : > { %v3175_v0 = vpop.permute.xlu2 %3174  ;;  %v3140_v9 = vsub.f32 %v3134_v55, %v3139_v1 }
0x19df   : > { %v3141_v10 = vmul.f32 1.442695, %v3140_v9 }
0x19e0   : > { %v4397_v60 = vpop.eup %4396 }
0x19e1   : > { %4141 = vmatmul.msk.f32.vlgmr.msrb.gmra.mxu0 %vm1206_vm1, %v4397_v60  ;;  %v3078_v14 = vsel %vm1206_vm1, %v4397_v60, 0.0 }
0x19e2   : > { %3344 = vmatpush.msrb.mxu0 %v4154_v44 }
0x19e4   : > { %v3269_v61 = vpop.xlane.xlu0 %3268  ;;  %3345 = vmatpush.msrb.mxu0 %v4153_v45 }
0x19e5   : > { %v3270_v29 = vsub.f32 %v3264_v57, %v3269_v61 }
0x19e6   : > { %3346 = vmatpush.msrb.mxu0 %v4152_v46 }
0x19e7   : > { %v3271_v63 = vmul.f32 1.442695, %v3270_v29 }
0x19e8   : > { %3347 = vmatpush.msrb.mxu0 %v4151_v47 }
0x19e9   : > { %4398 = vpow2.f32 %v3271_v63  ;;  %4146 = vmatmul.msk.f32.vlgmr.msra.gmra.mxu0 %vm1206_vm1, %v3175_v0 }
0x19ea   : > { %4400 = vpow2.f32 %v3141_v10 }
0x19ef   : > { %v4399_v2 = vpop.eup %4398 }
0x19f0   : > { %v3273_v3 = vsel %vm1206_vm1, %v4399_v2, 0.0  ;;  %v4401_v11 = vpop.eup %4400 }
0x19f1   : > { %3274 = vadd.xlane.f32.xlu1 %v3273_v3  ;;  %v3143_v12 = vsel %vm1206_vm1, %v4401_v11, 0.0 }
0x19f4   : > { %v3212_v4 = vpop.permute.xlu1 %3211 }
0x19f5   : > { %3232 = vmatpush.msrb.mxu2 %v3212_v4 }
0x19f7   : > { %v3277_v6 = vpop.permute.xlu0 %3276  ;;  %3412 = vmatpush.msra.mxu2 %v4162_v41 }
0x1a5e   : > { %v5100_v5 = vpop.f32.mrf.mxu0 }
0x1a64   : > { %v3275_v23 = vpop.xlane.xlu1 %3274 }
0x1a66   : > { %v3199_v7 = vpop.f32.mrf.mxu0 }
0x1a67   : > { %v3202_v8 = vsel %vm1206_vm1, %v3199_v7, -inf }
0x1a68   : > { %3203 = vmax.xlane.f32.xlu2 %v3202_v8 }
0x1a80   : > { %3146 = vrot.lane.b32.xlu2 %v5061_v42, %s5351_s1  ;;  %v4161_v42 = vld [vmem:[%s5371_s21 + $0x30] sm:$0xff]  ;;  %s5393_s1 = sld [smem:[#allocation41_spill]] }
0x1a81   : > { %3413 = vmatpush.msra.mxu2 %v4161_v42 }
0x1a83   : > { %3414 = vmatpush.msra.mxu2 %v4160_v43 }
0x1a85   : > { %3415 = vmatpush.msra.mxu2 %v4159_v19 }
0x1a86   : > { %s1166_s10 = scalar_lea.vmem %s5394_s2, %s5393_s1 }
0x1aa9   : > { %3144 = vadd.xlane.f32.xlu2 %v3143_v12 }
0x1ab1   : > { %3079 = vadd.xlane.f32.xlu2 %v3078_v14 }
0x1adb   : > { %v3204_v15 = vpop.xlane.xlu2 %3203 }
0x1adc   : > { %v3205_v16 = vsub.f32 %v3199_v7, %v3204_v15  ;;  %v4306_v15 = vld [vmem:[%s5373_s12 + $0x1] ss:$0 sm:$0xff] }
0x1ade   : > { %v3206_v17 = vmul.f32 1.442695, %v3205_v16 }
0x1ae0   : > { %4402 = vpow2.f32 %v3206_v17 }
0x1ae3   : > { %v3147_v21 = vpop.permute.xlu2 %3146 }
0x1ae4   : > { %3167 = vmatpush.msra.mxu3 %v3147_v21 }
0x1ae5   : > { %4144 = vmatmul.msk.f32.vlgmr.msra.gmra.mxu3 %vm1206_vm1, %v4401_v11  ;;  %v4305_v11 = vld [vmem:[%s5372_s24 + $0x1] ss:$0 sm:$0xff] }
0x1ae6   : > { %v4403_v26 = vpop.eup %4402  ;;  %3297 = vmatpush.msrb.mxu3 %v3277_v6 }
0x1ae7   : > { %4147 = vmatmul.msk.f32.vlgmr.msrb.gmra.mxu2 %vm1206_vm1, %v4403_v26  ;;  %v3208_v27 = vsel %vm1206_vm1, %v4403_v26, 0.0 }
0x1ae8   : > { %4171 = vmatpush.xpose.msk.msra.mxu3 %vm1206_vm1, %v5108_v22  ;;  %3209 = vadd.xlane.f32.xlu0 %v3208_v27 }
0x1aed   : > { %4150 = vmatmul.msk.f32.vlgmr.msrb.gmra.mxu3 %vm1206_vm1, %v4399_v2 }
0x1b1c   : > { %v3145_v28 = vpop.xlane.xlu2 %3144 }
0x1b1d   : > { %4404 = vrcp.f32 %v3145_v28 }
0x1b23   : > { %v4405_v31 = vpop.eup %4404 }
0x1b24   : > { %v3080_v48 = vpop.xlane.xlu2 %3079 }
0x1b5b   : > { %v3210_v30 = vpop.xlane.xlu0 %3209 }
0x1b5c   : > { %4406 = vrcp.f32 %v3210_v30 }
0x1b5d   : > { %4408 = vrcp.f32 %v3275_v23 }
0x1b5e   : > { %4410 = vrcp.f32 %v3080_v48 }
0x1b62   : > { %v4407_v34 = vpop.eup %4406 }
0x1b63   : > { %v4409_v37 = vpop.eup %4408 }
0x1b64   : > { %v4411_v50 = vpop.eup %4410 }
0x1b65   : > { %v3108_v51 = vmul.f32 %v4411_v50, %v5100_v5 }
0x1b68   : > { %v3169_v32 = vpop.f32.mrf.mxu3 }
0x1b69   : > { %v3173_v33 = vmul.f32 %v4405_v31, %v3169_v32 }
0x1b6a   : > { %v3234_v35 = vpop.f32.mrf.mxu2 }
0x1b6b   : > { %v3238_v36 = vmul.f32 %v4407_v34, %v3234_v35  ;;  %3305 = vrot.lane.b32.xlu0 %v3173_v33, %s5365_s5 }
0x1b6d   : > { %3309 = vrot.lane.b32.xlu1 %v3238_v36, %s5368_s14 }
0x1b70   : > { %v3299_v38 = vpop.f32.mrf.mxu3 }
0x1b71   : > { %v3303_v40 = vmul.f32 %v4409_v37, %v3299_v38 }
0x1b73   : > { %3313 = vrot.lane.b32.xlu2 %v3303_v40, %s5367_s13 }
0x1b7b   : > { %3516 = vrot.lane.b32.xlu2 %v5108_v22, %s5359_s26 }
0x1b83   : > { %3581 = vrot.lane.b32.xlu2 %v5108_v22, %s5361_s18 }
0x1b8b   : > { %3646 = vrot.lane.b32.xlu2 %v5108_v22, %s5364_s3 }
0x1bcd   : > { %v3314_v13 = vpop.permute.xlu2 %3313 }
0x1bd5   : > { %v3517_v49 = vpop.permute.xlu2 %3516 }
0x1bd6   : > { %4174 = vmatpush.xpose.msk.msrb.mxu2 %vm1206_vm1, %v3517_v49 }
0x1bdd   : > { %v3306_v52 = vpop.permute.xlu0 %3305  ;;  %v3582_v53 = vpop.permute.xlu2 %3581 }
0x1bde   : > { %v3316_v54 = vsel %vm1206_vm1, %v3108_v51, %v3306_v52  ;;  %4177 = vmatpush.xpose.msk.msrb.mxu3 %vm1206_vm1, %v3582_v53 }
0x1bdf   : > { %v3310_v55 = vpop.permute.xlu1 %3309 }
0x1be0   : > { %v3317_v56 = vsel %vm1477_vm2, %v3316_v54, %v3310_v55 }
0x1be1   : > { %v3318_v57 = vsel %vm1479_vm3, %v3317_v56, %v3314_v13 }
0x1be2   : > { %4156 = vmatmul.msk.f32.vlgmr.msrb.gmra.mxu0 %vm1178_vm0, %v3318_v57 }
0x1be5   : > { %v3647_v18 = vpop.permute.xlu2 %3646 }
0x1c5f   : > { %v3349_v62 = vpop.f32.mrf.mxu0 }
0x1c60   : > { %v3350_v59 = vadd.f32 %v4304_v58, %v3349_v62 }
0x1c62   : > { %v3352_v25 = vadd.f32 %v3350_v59, %v5056_v39 }
0x1c64   : > { %v3357_v60 = vsel %vm1178_vm0, %v3352_v25, 0.0 }
0x1c65   : > { %3358 = vadd.xlane.f32.xlu0 %v3357_v60 }
0x1cd8   : > { %v3359_v61 = vpop.xlane.xlu0 %3358 }
0x1cd9   : > { %v3360_v29 = vmul.f32 %v3359_v61, %v4773_v24 }
0x1cdb   : > { %v3361_v63 = vsub.f32 %v3352_v25, %v3360_v29 }
0x1cdd   : > { %v3362_v0 = vmul.f32 %v3361_v63, %v3361_v63 }
0x1cdf   : > { %v3363_v1 = vsel %vm1178_vm0, %v3362_v0, 0.0 }
0x1ce0   : > { %3364 = vadd.xlane.f32.xlu1 %v3363_v1 }
0x1d53   : > { %v3365_v2 = vpop.xlane.xlu1 %3364 }
0x1d54   : > { %v3366_v3 = vmul.f32 %v3365_v2, %v4773_v24 }
0x1d56   : > { %v3367_v4 = vadd.f32 1e-05, %v3366_v3 }
0x1d58   : > { %4412 = vrsqrt.f32 %v3367_v4  ;;  %vm3374_vm5 = vweird.f32 %v3367_v4 }
0x1d5e   : > { %v4413_v5 = vpop.eup %4412 }
0x1d5f   : > { %v3369_v39 = vmul.f32 %v4413_v5, %v3367_v4  ;;  %vm3375_vm4 = vweird.f32 %v4413_v5 }
0x1d60   : > { %vm3376_vm6 = vmor %vm3374_vm5, %vm3375_vm4 }
0x1d61   : > { %v3370_v7 = vmul.f32 %v4413_v5, %v3369_v39 }
0x1d63   : > { %v3371_v8 = vmul.f32 0.5, %v3370_v7  ;;  %v4186_v7 = vld [vmem:[%s5377_s30 + $0x38] sm:$0xff] }
0x1d65   : > { %v3372_v9 = vsub.f32 1.5, %v3371_v8  ;;  %v4185_v8 = vld [vmem:[%s5377_s30 + $0x30] sm:$0xff] }
0x1d67   : > { %v3373_v10 = vmul.f32 %v4413_v5, %v3372_v9  ;;  %v4184_v9 = vld [vmem:[%s5377_s30 + $0x28] sm:$0xff] }
0x1d69   : > { %v3377_v12 = vsel %vm3376_vm6, %v4413_v5, %v3373_v10  ;;  %v4183_v10 = vld [vmem:[%s5377_s30 + $0x20] sm:$0xff] }
0x1d6a   : > { %v3378_v14 = vmul.f32 %v3377_v12, %v3361_v63 }
0x1d6c   : > { %v3382_v16 = vmul.f32 %v4305_v11, %v3378_v14 }
0x1d6e   : > { %v5148_v17 = vadd.f32 %v4306_v15, %v3382_v16 }
0x1d70   : > { %4164 = vmatmul.msk.f32.vlgmr.msra.gmra.mxu2 %vm1178_vm0, %v5148_v17 }
0x1d71   : > { %4180 = vmatpush.xpose.msk.msra.mxu2 %vm1206_vm1, %v3647_v18 }
0x1df3   : > { %v3417_v21 = vpop.f32.mrf.mxu2 }
0x1df4   : > { %v3418_v6 = vadd.f32 %v4307_v20, %v3417_v21 }
0x1df6   : > { %v3450_v26 = vmul.f32 0.35355338, %v3418_v6 }
0x1df8   : > { %3579 = vrot.lane.b32.xlu0 %v3450_v26, %s5361_s18  ;;  %3514 = vrot.lane.b32.xlu2 %v3450_v26, %s5359_s26 }
0x1df9   : > { %4172 = vmatmul.msk.f32.vlgmr.msra.gmra.mxu3 %vm1206_vm1, %v3450_v26 }
0x1dfa   : > { %3749 = vmatpush.msra.mxu3 %v4186_v7 }
0x1dfc   : > { %3750 = vmatpush.msra.mxu3 %v4185_v8 }
0x1dfe   : > { %3751 = vmatpush.msra.mxu3 %v4184_v9 }
0x1e00   : > { %3644 = vrot.lane.b32.xlu2 %v3450_v26, %s5364_s3  ;;  %3752 = vmatpush.msra.mxu3 %v4183_v10  ;;  %s5390_s3 = sld [smem:[#allocation35_spill]] }
0x1e52   : > { %v3515_v27 = vpop.permute.xlu2 %3514 }
0x1e53   : > { %4175 = vmatmul.msk.f32.vlgmr.msrb.gmra.mxu2 %vm1206_vm1, %v3515_v27 }
0x1e5a   : > { %v3645_v28 = vpop.permute.xlu2 %3644 }
0x1e5b   : > { %4181 = vmatmul.msk.f32.vlgmr.msra.gmra.mxu2 %vm1206_vm1, %v3645_v28 }
0x1e6a   : > { %v3580_v30 = vpop.permute.xlu0 %3579 }
0x1e6b   : > { %4178 = vmatmul.msk.f32.vlgmr.msrb.gmra.mxu3 %vm1206_vm1, %v3580_v30 }
0x1e7c   : > { %v3474_v23 = vpop.f32.mrf.mxu3 }
0x1e7d   : > { %v3477_v31 = vsel %vm1206_vm1, %v3474_v23, -inf }
0x1e7e   : > { %3478 = vmax.xlane.f32.xlu1 %v3477_v31 }
0x1ed6   : > { %v3539_v32 = vpop.f32.mrf.mxu2 }
0x1ed7   : > { %v3542_v33 = vsel %vm1206_vm1, %v3539_v32, -inf }
0x1ed8   : > { %3543 = vmax.xlane.f32.xlu2 %v3542_v33 }
0x1ede   : > { %v3669_v34 = vpop.f32.mrf.mxu2 }
0x1edf   : > { %v3672_v35 = vsel %vm1206_vm1, %v3669_v34, -inf }
0x1ee0   : > { %3673 = vmax.xlane.f32.xlu0 %v3672_v35 }
0x1eee   : > { %v3604_v36 = vpop.f32.mrf.mxu3 }
0x1eef   : > { %v3607_v37 = vsel %vm1206_vm1, %v3604_v36, -inf }
0x1ef0   : > { %3608 = vmax.xlane.f32.xlu1 %v3607_v37  ;;  %3616 = vrot.lane.b32.xlu2 %v5108_v22, %s5363_s11 }
0x1ef1   : > { %v3479_v38 = vpop.xlane.xlu1 %3478 }
0x1ef2   : > { %v3480_v40 = vsub.f32 %v3474_v23, %v3479_v38 }
0x1ef4   : > { %v3481_v41 = vmul.f32 1.442695, %v3480_v40  ;;  %v4204_v40 = vld [vmem:[%s5380_s4 + $0x78] sm:$0xff] }
0x1ef5   : > { %3851 = vmatpush.msrb.mxu2 %v4204_v40 }
0x1ef6   : > { %4414 = vpow2.f32 %v3481_v41  ;;  %v4203_v41 = vld [vmem:[%s5380_s4 + $0x70] sm:$0xff] }
0x1ef7   : > { %3852 = vmatpush.msrb.mxu2 %v4203_v41 }
0x1efc   : > { %v4415_v42 = vpop.eup %4414 }
0x1efd   : > { %v3483_v43 = vsel %vm1206_vm1, %v4415_v42, 0.0 }
0x1f09   : > { %3486 = vrot.lane.b32.xlu1 %v5108_v22, %s5376_s29  ;;  %s5387_s29 = sld [smem:[#allocation29_spill]] }
0x1f0f   : > { %v4308_v26 = vld [vmem:[%s5387_s29 + $0x1] ss:$0 sm:$0xff] }
0x1f11   : > { %3551 = vrot.lane.b32.xlu1 %v5108_v22, %s5360_s23  ;;  %s5392_s23 = sld [smem:[#allocation38_spill]] }
0x1f19   : > { %3681 = vrot.lane.b32.xlu1 %v5108_v22, %s5362_s16  ;;  %3484 = vadd.xlane.f32.xlu2 %v3483_v43 }
0x1f4b   : > { %v3544_v19 = vpop.xlane.xlu2 %3543 }
0x1f4c   : > { %v3545_v44 = vsub.f32 %v3539_v32, %v3544_v19 }
0x1f4e   : > { %v3546_v45 = vmul.f32 1.442695, %v3545_v44  ;;  %v4201_v44 = vld [vmem:[%s5380_s4 + $0x60] sm:$0xff] }
0x1f50   : > { %4416 = vpow2.f32 %v3546_v45 }
0x1f53   : > { %v3674_v46 = vpop.xlane.xlu0 %3673  ;;  %v3617_v57 = vpop.permute.xlu2 %3616 }
0x1f54   : > { %v3675_v47 = vsub.f32 %v3669_v34, %v3674_v46  ;;  %v4200_v46 = vld [vmem:[%s5380_s4 + $0x58] sm:$0xff] }
0x1f56   : > { %v4417_v48 = vpop.eup %4416  ;;  %v3676_v13 = vmul.f32 1.442695, %v3675_v47 }
0x1f57   : > { %v3548_v49 = vsel %vm1206_vm1, %v4417_v48, 0.0 }
0x1f58   : > { %4418 = vpow2.f32 %v3676_v13  ;;  %3549 = vadd.xlane.f32.xlu0 %v3548_v49 }
0x1f5e   : > { %v4419_v50 = vpop.eup %4418 }
0x1f5f   : > { %v3678_v51 = vsel %vm1206_vm1, %v4419_v50, 0.0 }
0x1f60   : > { %3679 = vadd.xlane.f32.xlu0 %v3678_v51 }
0x1f63   : > { %v3609_v52 = vpop.xlane.xlu1 %3608 }
0x1f64   : > { %v3610_v53 = vsub.f32 %v3604_v36, %v3609_v52 }
0x1f66   : > { %v3611_v22 = vmul.f32 1.442695, %v3610_v53 }
0x1f68   : > { %4420 = vpow2.f32 %v3611_v22 }
0x1f6e   : > { %v4421_v54 = vpop.eup %4420 }
0x1f6f   : > { %v3613_v55 = vsel %vm1206_vm1, %v4421_v54, 0.0 }
0x1f70   : > { %3614 = vadd.xlane.f32.xlu1 %v3613_v55 }
0x1f7b   : > { %v3487_v56 = vpop.permute.xlu1 %3486 }
0x1f7c   : > { %3507 = vmatpush.msra.mxu0 %v3487_v56 }
0x1f7d   : > { %4173 = vmatmul.msk.f32.vlgmr.msra.gmra.mxu0 %vm1206_vm1, %v4415_v42  ;;  %v4202_v42 = vld [vmem:[%s5380_s4 + $0x68] sm:$0xff] }
0x1f7e   : > { %3637 = vmatpush.msrb.mxu0 %v3617_v57  ;;  %3853 = vmatpush.msrb.mxu2 %v4202_v42  ;;  %v4199_v57 = vld [vmem:[%s5380_s4 + $0x50] sm:$0xff] }
0x1f80   : > { %3854 = vmatpush.msrb.mxu2 %v4201_v44 }
0x1f82   : > { %3855 = vmatpush.msrb.mxu2 %v4200_v46 }
0x1f83   : > { %v3552_v58 = vpop.permute.xlu1 %3551 }
0x1f84   : > { %3572 = vmatpush.msra.mxu1 %v3552_v58  ;;  %3856 = vmatpush.msrb.mxu2 %v4199_v57  ;;  %v4198_v58 = vld [vmem:[%s5380_s4 + $0x48] sm:$0xff] }
0x1f85   : > { %4176 = vmatmul.msk.f32.vlgmr.msra.gmra.mxu1 %vm1206_vm1, %v4417_v48  ;;  %4179 = vmatmul.msk.f32.vlgmr.msrb.gmra.mxu0 %vm1206_vm1, %v4421_v54  ;;  %v4310_v54 = vld [vmem:[%s5382_s17 + $0x1] ss:$0 sm:$0xff] }
0x1f86   : > { %3857 = vmatpush.msrb.mxu2 %v4198_v58 }
0x1f8b   : > { %v3682_v62 = vpop.permute.xlu1 %3681 }
0x1f8c   : > { %3702 = vmatpush.msrb.mxu1 %v3682_v62  ;;  %v3485_v11 = vpop.xlane.xlu2 %3484  ;;  %v4197_v62 = vld [vmem:[%s5380_s4 + $0x40] sm:$0xff] }
0x1f8d   : > { %4182 = vmatmul.msk.f32.vlgmr.msrb.gmra.mxu1 %vm1206_vm1, %v4419_v50  ;;  %3858 = vmatpush.msrb.mxu2 %v4197_v62 }
0x1fcb   : > { %v3550_v59 = vpop.xlane.xlu0 %3549 }
0x1fcc   : > { %4422 = vrcp.f32 %v3550_v59  ;;  %v4311_v59 = vld [vmem:[%s5383_s0 + $0x1] ss:$0 sm:$0xff] }
0x1fd2   : > { %v4423_v29 = vpop.eup %4422 }
0x1fd3   : > { %v3680_v60 = vpop.xlane.xlu0 %3679 }
0x1fd4   : > { %4424 = vrcp.f32 %v3680_v60 }
0x1fda   : > { %v4425_v2 = vpop.eup %4424 }
0x1fe3   : > { %v3615_v61 = vpop.xlane.xlu1 %3614 }
0x1fe4   : > { %4426 = vrcp.f32 %v3615_v61 }
0x1fe5   : > { %4428 = vrcp.f32 %v3485_v11 }
0x1fea   : > { %v4427_v3 = vpop.eup %4426 }
0x1feb   : > { %v4429_v14 = vpop.eup %4428 }
0x1ffa   : > { %v3509_v25 = vpop.f32.mrf.mxu0 }
0x1ffb   : > { %v3513_v15 = vmul.f32 %v4429_v14, %v3509_v25 }
0x2002   : > { %v3574_v63 = vpop.f32.mrf.mxu1  ;;  %v3639_v1 = vpop.f32.mrf.mxu0 }
0x2003   : > { %v3578_v0 = vmul.f32 %v4423_v29, %v3574_v63  ;;  %v3643_v5 = vmul.f32 %v4427_v3, %v3639_v1  ;;  %v4312_v29 = vld [vmem:[%s5390_s3 + $0x1] ss:$0 sm:$0xff] }
0x2005   : > { %3710 = vrot.lane.b32.xlu0 %v3578_v0, %s5365_s5  ;;  %s5388_s5 = sld [smem:[#allocation32_spill]] }
0x200a   : > { %v3704_v4 = vpop.f32.mrf.mxu1 }
0x200b   : > { %v3708_v39 = vmul.f32 %v4425_v2, %v3704_v4  ;;  %v4194_v36 = vld [vmem:[%s5388_s5 + $0x38] sm:$0xff]  ;;  %v4193_v37 = vld [vmem:[%s5388_s5 + $0x30] sm:$0xff]  ;;  %v4191_v38 = vld [vmem:[%s5388_s5 + $0x20] sm:$0xff] }
0x200c   : > { %3817 = vmatpush.msra.mxu0 %v4194_v36 }
0x200d   : > { %3718 = vrot.lane.b32.xlu1 %v3708_v39, %s5367_s13  ;;  %3714 = vrot.lane.b32.xlu0 %v3643_v5, %s5368_s14  ;;  %s5389_s13 = sld [smem:[#allocation30_spill]] }
0x200e   : > { %3818 = vmatpush.msra.mxu0 %v4193_v37  ;;  %s5391_s14 = sld [smem:[#allocation37_spill]] }
0x2013   : > { %v4309_v52 = vld [vmem:[%s5389_s13 + $0x1] ss:$0 sm:$0xff] }
0x2014   : > { %v3901_v8 = vld [vmem:[%s5391_s14 + $0x18] sm:$0xff]  ;;  %v3900_v9 = vld [vmem:[%s5391_s14 + $0x10] sm:$0xff]  ;;  %v3899_v10 = vld [vmem:[%s5391_s14 + $0x8] sm:$0xff] }
0x2015   : > { %3921 = vmatpush.msra.mxu1 %v3901_v8  ;;  %v3898_v11 = vld [vmem:[%s5391_s14] sm:$0xff] }
0x2017   : > { %3922 = vmatpush.msra.mxu1 %v3900_v9 }
0x2019   : > { %3923 = vmatpush.msra.mxu1 %v3899_v10 }
0x201b   : > { %3924 = vmatpush.msra.mxu1 %v3898_v11 }
0x2077   : > { %v3711_v12 = vpop.permute.xlu0 %3710 }
0x2078   : > { %v3721_v16 = vsel %vm1206_vm1, %v3513_v15, %v3711_v12 }
0x207f   : > { %v3719_v18 = vpop.permute.xlu1 %3718  ;;  %v3715_v20 = vpop.permute.xlu0 %3714 }
0x2080   : > { %v3722_v21 = vsel %vm1477_vm2, %v3721_v16, %v3715_v20 }
0x2081   : > { %v3723_v6 = vsel %vm1479_vm3, %v3722_v21, %v3719_v18 }
0x2082   : > { %4188 = vmatmul.msk.f32.vlgmr.msra.gmra.mxu3 %vm1178_vm0, %v3723_v6 }
0x2105   : > { %v3754_v27 = vpop.f32.mrf.mxu3 }
0x2106   : > { %v3755_v28 = vadd.f32 %v4308_v26, %v3754_v27  ;;  %v4313_v27 = vld [vmem:[%s5386_s27 + $0x1] ss:$0 sm:$0xff] }
0x2108   : > { %v3757_v30 = vadd.f32 %v3755_v28, %v5148_v17  ;;  %v4192_v17 = vld [vmem:[%s5388_s5 + $0x28] sm:$0xff] }
0x2109   : > { %3819 = vmatpush.msra.mxu0 %v4192_v17 }
0x210a   : > { %v3762_v23 = vsel %vm1178_vm0, %v3757_v30, 0.0 }
0x210b   : > { %3763 = vadd.xlane.f32.xlu0 %v3762_v23  ;;  %3820 = vmatpush.msra.mxu0 %v4191_v38  ;;  %v4314_v23 = vld [vmem:[%s4678_s9 + $0x1] ss:$0 sm:$0xff] }
0x217e   : > { %v3764_v31 = vpop.xlane.xlu0 %3763 }
0x217f   : > { %v3765_v32 = vmul.f32 %v3764_v31, %v4773_v24 }
0x2181   : > { %v3766_v33 = vsub.f32 %v3757_v30, %v3765_v32  ;;  %v4315_v32 = vld [vmem:[%s5392_s23] ss:$0 sm:$0xff] }
0x2183   : > { %v3767_v34 = vmul.f32 %v3766_v33, %v3766_v33 }
0x2185   : > { %v3768_v35 = vsel %vm1178_vm0, %v3767_v34, 0.0 }
0x2186   : > { %3769 = vadd.xlane.f32.xlu2 %v3768_v35 }
0x21f9   : > { %v3770_v43 = vpop.xlane.xlu2 %3769 }
0x21fa   : > { %v3771_v19 = vmul.f32 %v3770_v43, %v4773_v24 }
0x21fc   : > { %v3772_v45 = vadd.f32 1e-05, %v3771_v19 }
0x21fe   : > { %4430 = vrsqrt.f32 %v3772_v45  ;;  %vm3779_vm2 = vweird.f32 %v3772_v45 }
0x2204   : > { %v4431_v47 = vpop.eup %4430 }
0x2205   : > { %v3774_v48 = vmul.f32 %v4431_v47, %v3772_v45  ;;  %vm3780_vm1 = vweird.f32 %v4431_v47 }
0x2206   : > { %vm3781_vm3 = vmor %vm3779_vm2, %vm3780_vm1 }
0x2207   : > { %v3775_v13 = vmul.f32 %v4431_v47, %v3774_v48 }
0x2209   : > { %v3776_v49 = vmul.f32 0.5, %v3775_v13 }
0x220b   : > { %v3777_v50 = vsub.f32 1.5, %v3776_v49 }
0x220d   : > { %v3778_v51 = vmul.f32 %v4431_v47, %v3777_v50 }
0x220f   : > { %v3782_v53 = vsel %vm3781_vm3, %v4431_v47, %v3778_v51 }
0x2210   : > { %v3783_v22 = vmul.f32 %v3782_v53, %v3766_v33 }
0x2212   : > { %v3787_v55 = vmul.f32 %v4309_v52, %v3783_v22 }
0x2214   : > { %v3791_v56 = vadd.f32 %v4310_v54, %v3787_v55 }
0x2216   : > { %4196 = vmatmul.msk.f32.vlgmr.msra.gmra.mxu0 %vm1178_vm0, %v3791_v56 }
0x2293   : > { %v3822_v25 = vpop.f32.mrf.mxu0 }
0x2294   : > { %v3823_v60 = vadd.f32 %v4311_v59, %v3822_v25 }
0x2296   : > { %v3825_v61 = vmax.f32 %v3823_v60, 0.0 }
0x2298   : > { %4206 = vmatmul.msk.f32.vlgmr.msrb.gmra.mxu2 %vm1596_vm8, %v3825_v61 }
0x231b   : > { %v3860_v63 = vpop.f32.mrf.mxu2 }
0x231c   : > { %v3861_v0 = vadd.f32 %v4312_v29, %v3860_v63 }
0x231e   : > { %v3863_v1 = vadd.f32 %v3861_v0, %v3791_v56 }
0x2320   : > { %v3868_v2 = vsel %vm1178_vm0, %v3863_v1, 0.0 }
0x2321   : > { %3869 = vadd.xlane.f32.xlu2 %v3868_v2 }
0x2394   : > { %v3870_v3 = vpop.xlane.xlu2 %3869 }
0x2395   : > { %v3871_v4 = vmul.f32 %v3870_v3, %v4773_v24 }
0x2397   : > { %v3872_v5 = vsub.f32 %v3863_v1, %v3871_v4 }
0x2399   : > { %v3873_v39 = vmul.f32 %v3872_v5, %v3872_v5 }
0x239b   : > { %v3874_v7 = vsel %vm1178_vm0, %v3873_v39, 0.0 }
0x239c   : > { %3875 = vadd.xlane.f32.xlu1 %v3874_v7 }
0x240f   : > { %v3876_v12 = vpop.xlane.xlu1 %3875 }
0x2410   : > { %v3877_v14 = vmul.f32 %v3876_v12, %v4773_v24 }
0x2412   : > { %v3878_v15 = vadd.f32 1e-05, %v3877_v14 }
0x2414   : > { %4432 = vrsqrt.f32 %v3878_v15  ;;  %vm3885_vm7 = vweird.f32 %v3878_v15 }
0x241a   : > { %v4433_v16 = vpop.eup %4432 }
0x241b   : > { %v3880_v18 = vmul.f32 %v4433_v16, %v3878_v15  ;;  %vm3886_vm8 = vweird.f32 %v4433_v16 }
0x241c   : > { %vm3887_vm9 = vmor %vm3885_vm7, %vm3886_vm8 }
0x241d   : > { %v3881_v20 = vmul.f32 %v4433_v16, %v3880_v18 }
0x241f   : > { %v3882_v21 = vmul.f32 0.5, %v3881_v20 }
0x2421   : > { %v3883_v6 = vsub.f32 1.5, %v3882_v21 }
0x2423   : > { %v3884_v26 = vmul.f32 %v4433_v16, %v3883_v6 }
0x2425   : > { %v3888_v28 = vsel %vm3887_vm9, %v4433_v16, %v3884_v26 }
0x2426   : > { %v3889_v30 = vmul.f32 %v3888_v28, %v3872_v5 }
0x2428   : > { %v3893_v31 = vmul.f32 %v4313_v27, %v3889_v30 }
0x242a   : > { %v3897_v24 = vadd.f32 %v4314_v23, %v3893_v31 }
0x242c   : > { %4209 = vmatmul.msk.f32.vlgmr.msra.gmra.mxu1 %vm1178_vm0, %v3897_v24 }
0x24a9   : > { %v3926_v33 = vpop.f32.mrf.mxu1 }
0x24aa   : > { %v3927_v34 = vadd.f32 %v4315_v32, %v3926_v33 }
0x24ac   : > { %3930 = vst.msk [vmem:[%s1166_s10] sm:$0xff] %vm3929_vm10, %v3927_v34 }
0x24ad PF: > { %s5395_s11 = sld [smem:[#allocation40_spill]] }
0x24b3   : > { %s87_s15 = sadd.s32 1, %s5395_s11  }
0x24b4   : > { %p84_p4 = scmp.ge.s32.totalorder %s87_s15, 4  }
0x24b6   :  { %86 = sbr.rel (!%p84_p4) target bundleno = 91 (0x5b), region = 275 }

</bundles_post_ra>
